<compile_context>
chip_gen: v6e
topology: v6e:2x2x1
jax: 0.10.0
libtpu: 0.0.40
codegen_flags: <defaults>
</compile_context>

<pallas_src>
import jax
import jax.numpy as jnp
from jax.experimental import pallas as pl
from jax.experimental.pallas import tpu as pltpu

# ----------------------------- configuration (small shapes) -----------------
N = 2          # batch
D_IN = 16      # input_dim  (channels of v, dim of u)
H_IMG = 16     # feature height
W_IMG = 16     # feature width
HW = H_IMG * W_IMG
K_HID = 32     # hidden_dim

_VMEM = pl.BlockSpec(memory_space=pltpu.MemorySpace.VMEM)


# ----------------------------- fused StackedAttention kernel -----------------
def stacked_attention_kernel(v_ref, u_ref, wv_ref, bv_ref, wu_ref, bu_ref,
                             wp_ref, bp_ref, u_out_ref, p_out_ref):
    # v : (N, H*W, D)  channel-last pixels (lane dim = D)
    # u : (N, D)
    # wv: (D, K), bv: (1, K)   -- Conv2d(D, K, 1) weights, pre-transposed
    # wu: (D, K), bu: (1, K)   -- Linear(D, K) weights, pre-transposed
    # wp: (1, K), bp: (1, 1)   -- Conv2d(K, 1, 1) weights, flattened
    v3 = v_ref[...]                                   # (N, HW, D)
    n, hw, d = v3.shape
    k = wv_ref.shape[1]
    u = u_ref[...]                                    # (N, D)

    # 1x1 conv over all pixels as a single matmul (trivial im2col).
    v2 = v3.reshape(n * hw, d)
    v_proj = jnp.dot(v2, wv_ref[...],
                     preferred_element_type=jnp.float32) + bv_ref[...]     # (N*HW, K)
    u_proj = jnp.dot(u, wu_ref[...],
                     preferred_element_type=jnp.float32) + bu_ref[...]     # (N, K)

    h = jnp.tanh(v_proj.reshape(n, hw, k) + u_proj[:, None, :])            # (N, HW, K)

    # Wp: K -> 1 channel; weighted lane reduction instead of a width-1 matmul.
    logits = jnp.sum(h * wp_ref[...], axis=-1) + bp_ref[...]               # (N, HW)

    # softmax over the H*W positions
    m = jnp.max(logits, axis=1, keepdims=True)
    e = jnp.exp(logits - m)
    s = jnp.sum(e, axis=1, keepdims=True)
    p = e / s                                                              # (N, HW)
    p_out_ref[...] = p                                                     # lane-dense store

    # attention-weighted spatial pooling of v
    v_tilde = jnp.sum(p[:, :, None] * v3, axis=1)                          # (N, D)
    u_out_ref[...] = u + v_tilde


def stacked_attention(v_nchw, u, params):
    n, d, h, w = v_nchw.shape
    hw = h * w
    # NCHW -> (N, H*W, D): single transpose inside the jit region, channel-last
    # so the conv1x1 becomes one lane-dense matmul.
    v = jnp.transpose(v_nchw, (0, 2, 3, 1)).reshape(n, hw, d)
    next_u, attn = pl.pallas_call(
        stacked_attention_kernel,
        out_shape=(jax.ShapeDtypeStruct((n, d), jnp.float32),
                   jax.ShapeDtypeStruct((n, hw), jnp.float32)),
        in_specs=[_VMEM] * 8,
        out_specs=(_VMEM, _VMEM),
    )(v, u,
      params['wv'], params['bv'],
      params['wu'], params['bu'],
      params['wp'], params['bp'])
    # attn corresponds to self.attention_maps (N, 1, H, W) in the reference.
    return next_u, attn.reshape(n, 1, h, w)


# ----------------------------- deterministic params --------------------------
def make_params(key):
    # init_modules(..., init='normal') -> normal-initialized weights/biases.
    ks = jax.random.split(key, 6)

    def nrm(kk, shape, scale=0.08):
        return (scale * jax.random.normal(kk, shape)).astype(jnp.float32)

    return {
        # Conv2d(D_IN, K_HID, 1): PyTorch weight (K, D, 1, 1) stored as (D, K)
        'wv': nrm(ks[0], (D_IN, K_HID)),
        'bv': nrm(ks[1], (1, K_HID)),
        # Linear(D_IN, K_HID): PyTorch weight (K, D) stored as (D, K)
        'wu': nrm(ks[2], (D_IN, K_HID)),
        'bu': nrm(ks[3], (1, K_HID)),
        # Conv2d(K_HID, 1, 1): PyTorch weight (1, K, 1, 1) stored as (1, K)
        'wp': nrm(ks[4], (1, K_HID)),
        'bp': nrm(ks[5], (1, 1)),
    }


if __name__ == "__main__":
    key = jax.random.PRNGKey(0)
    k_params, k_v, k_u = jax.random.split(key, 3)
    params = make_params(k_params)

    v = jax.random.normal(k_v, (N, D_IN, H_IMG, W_IMG), dtype=jnp.float32)
    u = jax.random.normal(k_u, (N, D_IN), dtype=jnp.float32)

    next_u, attn = jax.jit(stacked_attention)(v, u, params)
    next_u = jax.block_until_ready(next_u)
    attn = jax.block_until_ready(attn)

    assert next_u.shape == (N, D_IN)
    assert attn.shape == (N, 1, H_IMG, W_IMG)
    assert bool(jnp.all(jnp.isfinite(next_u)))
    assert bool(jnp.all(jnp.isfinite(attn)))
    # attention maps are a softmax -> rows sum to 1
    assert bool(jnp.allclose(jnp.sum(attn.reshape(N, -1), axis=1), 1.0, atol=1e-4))
    print("KERNEL_OK")
</pallas_src>

<mosaic_0001>
module attributes {stable_mosaic.version = 11 : i64} {
  func.func @stacked_attention_kernel(%arg0: memref<2x256x16xf32, #tpu.memory_space<vmem>>, %arg1: memref<2x16xf32, #tpu.memory_space<vmem>>, %arg2: memref<16x32xf32, #tpu.memory_space<vmem>>, %arg3: memref<1x32xf32, #tpu.memory_space<vmem>>, %arg4: memref<16x32xf32, #tpu.memory_space<vmem>>, %arg5: memref<1x32xf32, #tpu.memory_space<vmem>>, %arg6: memref<1x32xf32, #tpu.memory_space<vmem>>, %arg7: memref<1x1xf32, #tpu.memory_space<vmem>>, %arg8: memref<2x16xf32, #tpu.memory_space<vmem>>, %arg9: memref<2x256xf32, #tpu.memory_space<vmem>>) attributes {dimension_semantics = [], scalar_prefetch = 0 : i64, scratch_operands = 0 : i64, tpu.core_type = #tpu.core_type<tc>} {
    %c0 = arith.constant 0 : index
    %c0_0 = arith.constant 0 : index
    %c0_1 = arith.constant 0 : index
    %0 = vector.load %arg0[%c0, %c0_0, %c0_1] : memref<2x256x16xf32, #tpu.memory_space<vmem>>, vector<2x256x16xf32>
    %c0_2 = arith.constant 0 : index
    %c0_3 = arith.constant 0 : index
    %1 = vector.load %arg1[%c0_2, %c0_3] : memref<2x16xf32, #tpu.memory_space<vmem>>, vector<2x16xf32>
    %2 = vector.shape_cast %0 : vector<2x256x16xf32> to vector<512x16xf32>
    %c0_4 = arith.constant 0 : index
    %c0_5 = arith.constant 0 : index
    %3 = vector.load %arg2[%c0_4, %c0_5] : memref<16x32xf32, #tpu.memory_space<vmem>>, vector<16x32xf32>
    %cst = arith.constant dense<0.000000e+00> : vector<512x32xf32>
    %4 = tpu.matmul %2, %3, %cst {dimension_numbers = #tpu.dot_dimension_numbers<[1], [0], [0], [1], [0, 0, 1, 1], [], []>} : vector<512x16xf32>, vector<16x32xf32>, vector<512x32xf32> -> vector<512x32xf32>
    %c0_6 = arith.constant 0 : index
    %c0_7 = arith.constant 0 : index
    %5 = vector.load %arg3[%c0_6, %c0_7] : memref<1x32xf32, #tpu.memory_space<vmem>>, vector<1x32xf32>
    %6 = vector.broadcast %5 : vector<1x32xf32> to vector<512x32xf32>
    %7 = arith.addf %4, %6 : vector<512x32xf32>
    %c0_8 = arith.constant 0 : index
    %c0_9 = arith.constant 0 : index
    %8 = vector.load %arg4[%c0_8, %c0_9] : memref<16x32xf32, #tpu.memory_space<vmem>>, vector<16x32xf32>
    %cst_10 = arith.constant dense<0.000000e+00> : vector<2x32xf32>
    %9 = tpu.matmul %1, %8, %cst_10 {dimension_numbers = #tpu.dot_dimension_numbers<[1], [0], [0], [1], [0, 0, 1, 1], [], []>} : vector<2x16xf32>, vector<16x32xf32>, vector<2x32xf32> -> vector<2x32xf32>
    %c0_11 = arith.constant 0 : index
    %c0_12 = arith.constant 0 : index
    %10 = vector.load %arg5[%c0_11, %c0_12] : memref<1x32xf32, #tpu.memory_space<vmem>>, vector<1x32xf32>
    %11 = vector.broadcast %10 : vector<1x32xf32> to vector<2x32xf32>
    %12 = arith.addf %9, %11 : vector<2x32xf32>
    %13 = vector.shape_cast %7 : vector<512x32xf32> to vector<2x256x32xf32>
    %14 = vector.shape_cast %12 : vector<2x32xf32> to vector<2x1x32xf32>
    %15 = vector.broadcast %14 : vector<2x1x32xf32> to vector<2x256x32xf32>
    %16 = arith.addf %13, %15 : vector<2x256x32xf32>
    %17 = math.tanh %16 : vector<2x256x32xf32>
    %c0_13 = arith.constant 0 : index
    %c0_14 = arith.constant 0 : index
    %18 = vector.load %arg6[%c0_13, %c0_14] : memref<1x32xf32, #tpu.memory_space<vmem>>, vector<1x32xf32>
    %19 = vector.shape_cast %18 : vector<1x32xf32> to vector<1x1x32xf32>
    %20 = vector.broadcast %19 : vector<1x1x32xf32> to vector<2x256x32xf32>
    %21 = arith.mulf %17, %20 : vector<2x256x32xf32>
    %cst_15 = arith.constant dense<0.000000e+00> : vector<2x256xf32>
    %22 = vector.multi_reduction <add>, %21, %cst_15 [2] : vector<2x256x32xf32> to vector<2x256xf32>
    %c0_16 = arith.constant 0 : index
    %c0_17 = arith.constant 0 : index
    %23 = vector.load %arg7[%c0_16, %c0_17] : memref<1x1xf32, #tpu.memory_space<vmem>>, vector<1x1xf32>
    %24 = vector.broadcast %23 : vector<1x1xf32> to vector<2x256xf32>
    %25 = arith.addf %22, %24 : vector<2x256xf32>
    %cst_18 = arith.constant dense<0xFF800000> : vector<2xf32>
    %26 = vector.multi_reduction <maximumf>, %25, %cst_18 [1] : vector<2x256xf32> to vector<2xf32>
    %27 = vector.shape_cast %26 : vector<2xf32> to vector<2x1xf32>
    %28 = vector.broadcast %27 : vector<2x1xf32> to vector<2x256xf32>
    %29 = arith.subf %25, %28 : vector<2x256xf32>
    %30 = math.exp %29 : vector<2x256xf32>
    %cst_19 = arith.constant dense<0.000000e+00> : vector<2xf32>
    %31 = vector.multi_reduction <add>, %30, %cst_19 [1] : vector<2x256xf32> to vector<2xf32>
    %32 = vector.shape_cast %31 : vector<2xf32> to vector<2x1xf32>
    %33 = vector.broadcast %32 : vector<2x1xf32> to vector<2x256xf32>
    %34 = arith.divf %30, %33 : vector<2x256xf32>
    %c0_20 = arith.constant 0 : index
    %c0_21 = arith.constant 0 : index
    %35 = vector.load %arg9[%c0_20, %c0_21] : memref<2x256xf32, #tpu.memory_space<vmem>>, vector<2x256xf32>
    tpu.vector_store %arg9[%c0_20, %c0_21], %34 {strides = array<i32>} : memref<2x256xf32, #tpu.memory_space<vmem>>, vector<2x256xf32>,
    %36 = vector.shape_cast %34 : vector<2x256xf32> to vector<2x256x1xf32>
    %37 = vector.broadcast %36 : vector<2x256x1xf32> to vector<2x256x16xf32>
    %38 = arith.mulf %37, %0 : vector<2x256x16xf32>
    %cst_22 = arith.constant dense<0.000000e+00> : vector<2x16xf32>
    %39 = vector.multi_reduction <add>, %38, %cst_22 [1] : vector<2x256x16xf32> to vector<2x16xf32>
    %40 = arith.addf %1, %39 : vector<2x16xf32>
    %c0_23 = arith.constant 0 : index
    %c0_24 = arith.constant 0 : index
    %41 = vector.load %arg8[%c0_23, %c0_24] : memref<2x16xf32, #tpu.memory_space<vmem>>, vector<2x16xf32>
    tpu.vector_store %arg8[%c0_23, %c0_24], %40 {strides = array<i32>} : memref<2x16xf32, #tpu.memory_space<vmem>>, vector<2x16xf32>,
    return
  }
}

</mosaic_0001>

<bundles_post_ra>
// kernel: stacked_attention.1
= control target key start
LH: loop header
LB: loop body
LE: loop exit
PB: predicated region body
PF: predicated region fallthrough
CT: control target
= control target key end

     0   :  { %s10407_s0 = inlined_call_operand.vmem [shape: f32[2,256,16], index: 0, kind: input, shape index: {}]   ;;  %s10408_s1 = inlined_call_operand.vmem [shape: f32[2,16], index: 1, kind: input, shape index: {}]   ;;  %s10409_s2 = inlined_call_operand.vmem [shape: f32[16,32], index: 2, kind: input, shape index: {}]   ;;  %s10410_s3 = inlined_call_operand.vmem [shape: f32[1,32], index: 3, kind: input, shape index: {}]   ;;  %s10411_s4 = inlined_call_operand.vmem [shape: f32[16,32], index: 4, kind: input, shape index: {}]   ;;  %s10412_s5 = inlined_call_operand.vmem [shape: f32[1,32], index: 5, kind: input, shape index: {}]   ;;  %s10413_s6 = inlined_call_operand.vmem [shape: f32[1,32], index: 6, kind: input, shape index: {}]   ;;  %s10414_s7 = inlined_call_operand.<no memory space> [shape: f32[1,1], index: 7, kind: input, shape index: {}]   ;;  %s10415_s8 = inlined_call_operand.hbm [shape: f32[2,16], index: 8, kind: output, shape index: {0}]   ;;  %s10416_s9 = inlined_call_operand.vmem [shape: f32[2,256], index: 9, kind: output, shape index: {1}]  }
   0x1   :  { %v15_v0 = vstv %s10414_s7 }
   0x2   :  { %16 = vst [vmem:[#allocation2] sm:$0x1] %v15_v0 }
   0x3   :  { %v100_v1 = vld [vmem:[%s10409_s2 + $0x8] sm:$0xff]  ;;  %v99_v2 = vld [vmem:[%s10409_s2] sm:$0xff]  ;;  %v68_v3 = vld [vmem:[%s10407_s0 + $0x110] sm:$0xff]  ;;  %vm10472_vm0 = vcmask 130048   ;;  %v6399_v8 = vmov 0.0  }
   0x4   :  { %6040 = vmatprep.subr.mxu1 %v100_v1  ;;  %5933 = vmatprep.subr.mxu0 %v100_v1  ;;  %v69_v4 = vld [vmem:[%s10407_s0 + $0x118] sm:$0xff]  ;;  %v687_v5 = vld [vmem:[%s10411_s4 + $0x8] sm:$0xff]  ;;  %v34_v6 = vld [vmem:[%s10407_s0] sm:$0xff] }
   0x5   :  { %6042 = vmatpush3.msra.mxu1 %v100_v1  ;;  %5988 = vmatprep.mubr.msk.f32.mxu1 %vm10472_vm0, %v68_v3  ;;  %v70_v7 = vld [vmem:[%s10407_s0 + $0x120] sm:$0xff]  ;;  %v35_v9 = vld [vmem:[%s10407_s0 + $0x8] sm:$0xff]  ;;  %v36_v11 = vld [vmem:[%s10407_s0 + $0x10] sm:$0xff] }
   0x6   :  { %6041 = vmatprep.subr.mxu1 %v99_v2  ;;  %5934 = vmatpush3.msra.mxu0 %v100_v1  ;;  %v71_v10 = vld [vmem:[%s10407_s0 + $0x128] sm:$0xff]  ;;  %v72_v12 = vld [vmem:[%s10407_s0 + $0x130] sm:$0xff]  ;;  %v37_v13 = vld [vmem:[%s10407_s0 + $0x18] sm:$0xff] }
   0x7   :  { %6043 = vmatpush3.msra.mxu1 %v99_v2  ;;  %5935 = vmatprep.subr.mxu0 %v99_v2  ;;  %v73_v14 = vld [vmem:[%s10407_s0 + $0x138] sm:$0xff]  ;;  %v38_v15 = vld [vmem:[%s10407_s0 + $0x20] sm:$0xff]  ;;  %v39_v18 = vld [vmem:[%s10407_s0 + $0x28] sm:$0xff] }
   0x8   :  { %5989 = vmatmul.mubr.msk.f32.vlgmr.msra.gmra.mxu1 %vm10472_vm0, %v69_v4  ;;  %6033 = vmatprep.subr.mxu1 %v6399_v8  ;;  %v74_v16 = vld [vmem:[%s10407_s0 + $0x140] sm:$0xff]  ;;  %v75_v19 = vld [vmem:[%s10407_s0 + $0x148] sm:$0xff]  ;;  %v40_v20 = vld [vmem:[%s10407_s0 + $0x30] sm:$0xff] }
   0x9   :  { %6034 = vmatpush3.msra.mxu1 %v687_v5  ;;  %5936 = vmatpush3.msra.mxu0 %v99_v2  ;;  %v686_v17 = vld [vmem:[%s10411_s4] sm:$0xff]  ;;  %v76_v21 = vld [vmem:[%s10407_s0 + $0x150] sm:$0xff]  ;;  %v41_v22 = vld [vmem:[%s10407_s0 + $0x38] sm:$0xff] }
   0xa   :  { %5937 = vmatprep.mubr.msk.f32.mxu0 %vm10472_vm0, %v34_v6  ;;  %5991 = vmatprep.mubr.msk.f32.mxu1 %vm10472_vm0, %v70_v7  ;;  %v77_v23 = vld [vmem:[%s10407_s0 + $0x158] sm:$0xff]  ;;  %v42_v24 = vld [vmem:[%s10407_s0 + $0x40] sm:$0xff]  ;;  %v43_v26 = vld [vmem:[%s10407_s0 + $0x48] sm:$0xff] }
   0xb   :  { %5938 = vmatmul.mubr.msk.f32.vlgmr.msra.gmra.mxu0 %vm10472_vm0, %v35_v9  ;;  %6035 = vmatprep.subr.mxu1 %v6399_v8  ;;  %v78_v25 = vld [vmem:[%s10407_s0 + $0x160] sm:$0xff]  ;;  %v79_v27 = vld [vmem:[%s10407_s0 + $0x168] sm:$0xff]  ;;  %v44_v28 = vld [vmem:[%s10407_s0 + $0x50] sm:$0xff] }
   0xc   :  { %5992 = vmatmul.mubr.msk.f32.gmra.mxu1 %vm10472_vm0, %v71_v10  ;;  %5940 = vmatprep.mubr.msk.f32.mxu0 %vm10472_vm0, %v36_v11  ;;  %v80_v29 = vld [vmem:[%s10407_s0 + $0x170] sm:$0xff] }
   0xd   :  { %5994 = vmatprep.mubr.msk.f32.mxu1 %vm10472_vm0, %v72_v12  ;;  %6036 = vmatpush3.msra.mxu1 %v686_v17 }
   0xf   :  { %5941 = vmatmul.mubr.msk.f32.gmra.mxu0 %vm10472_vm0, %v37_v13 }
  0x10   :  { %5995 = vmatmul.mubr.msk.f32.gmra.mxu1 %vm10472_vm0, %v73_v14  ;;  %5943 = vmatprep.mubr.msk.f32.mxu0 %vm10472_vm0, %v38_v15 }
  0x11   :  { %5997 = vmatprep.mubr.msk.f32.mxu1 %vm10472_vm0, %v74_v16 }
  0x13   :  { %5944 = vmatmul.mubr.msk.f32.gmra.mxu0 %vm10472_vm0, %v39_v18 }
  0x14   :  { %5998 = vmatmul.mubr.msk.f32.gmra.mxu1 %vm10472_vm0, %v75_v19  ;;  %5946 = vmatprep.mubr.msk.f32.mxu0 %vm10472_vm0, %v40_v20 }
  0x15   :  { %6000 = vmatprep.mubr.msk.f32.mxu1 %vm10472_vm0, %v76_v21 }
  0x17   :  { %5947 = vmatmul.mubr.msk.f32.gmra.mxu0 %vm10472_vm0, %v41_v22 }
  0x18   :  { %6001 = vmatmul.mubr.msk.f32.gmra.mxu1 %vm10472_vm0, %v77_v23  ;;  %5949 = vmatprep.mubr.msk.f32.mxu0 %vm10472_vm0, %v42_v24 }
  0x19   :  { %6003 = vmatprep.mubr.msk.f32.mxu1 %vm10472_vm0, %v78_v25 }
  0x1a   :  { %17 = vsyncpa [#allocation4], 0  ;;  %v45_v30 = vld [vmem:[%s10407_s0 + $0x58] sm:$0xff]  ;;  %v46_v32 = vld [vmem:[%s10407_s0 + $0x60] sm:$0xff]  ;;  %vm6400_vm1 = vmmov 0   ;;  %v6401_v7 = vmov 0  }
  0x1b   :  { %5950 = vmatmul.mubr.msk.f32.gmra.mxu0 %vm10472_vm0, %v43_v26  ;;  %v81_v31 = vld [vmem:[%s10407_s0 + $0x178] sm:$0xff]  ;;  %v82_v33 = vld [vmem:[%s10407_s0 + $0x180] sm:$0xff]  ;;  %v47_v34 = vld [vmem:[%s10407_s0 + $0x68] sm:$0xff]  ;;  %6050 = vset.pattern.permute.xlu0 %v6401_v7  ;;  %vm1000_vm2 = vcmask 261120   ;;  %vm1342_vm3 = vcmask 130112   ;;  %vm1349_vm4 = vcmask 195712  }
  0x1c   :  { %6004 = vmatmul.mubr.msk.f32.gmra.mxu1 %vm10472_vm0, %v79_v27  ;;  %5952 = vmatprep.mubr.msk.f32.mxu0 %vm10472_vm0, %v44_v28  ;;  %v83_v35 = vld [vmem:[%s10407_s0 + $0x188] sm:$0xff]  ;;  %v48_v36 = vld [vmem:[%s10407_s0 + $0x70] sm:$0xff]  ;;  %v49_v38 = vld [vmem:[%s10407_s0 + $0x78] sm:$0xff]  ;;  %vm1356_vm5 = vcmask 261312   ;;  %vm1363_vm6 = vcmask 326912   ;;  %vm1370_vm7 = vcmask 392512  }
  0x1d   :  { %6006 = vmatprep.mubr.msk.f32.mxu1 %vm10472_vm0, %v80_v29  ;;  %v84_v37 = vld [vmem:[%s10407_s0 + $0x190] sm:$0xff]  ;;  %v85_v39 = vld [vmem:[%s10407_s0 + $0x198] sm:$0xff]  ;;  %v50_v40 = vld [vmem:[%s10407_s0 + $0x80] sm:$0xff]  ;;  %6051 = vset.pattern.permute.xlu1 %v6401_v7  ;;  %vm1377_vm8 = vcmask 458112   ;;  %vm10542_vm9 = vcmask 523712   ;;  %vm10543_vm10 = vcmask 589312  }
  0x1e   :  { %v86_v41 = vld [vmem:[%s10407_s0 + $0x1a0] sm:$0xff]  ;;  %v51_v42 = vld [vmem:[%s10407_s0 + $0x88] sm:$0xff]  ;;  %v52_v44 = vld [vmem:[%s10407_s0 + $0x90] sm:$0xff]  ;;  %vm1398_vm11 = vcmask 654912   ;;  %vm1405_vm12 = vcmask 720512   ;;  %vm1412_vm13 = vcmask 786112  }
  0x1f   :  { %5953 = vmatmul.mubr.msk.f32.gmra.mxu0 %vm10472_vm0, %v45_v30  ;;  %v87_v43 = vld [vmem:[%s10407_s0 + $0x1a8] sm:$0xff]  ;;  %v88_v45 = vld [vmem:[%s10407_s0 + $0x1b0] sm:$0xff]  ;;  %v53_v46 = vld [vmem:[%s10407_s0 + $0x98] sm:$0xff]  ;;  %vm10473_vm14 = vcmask 851712   ;;  %vm1426_vm15 = vcmask 917312  }
  0x20   :  { %6007 = vmatmul.mubr.msk.f32.gmra.mxu1 %vm10472_vm0, %v81_v31  ;;  %5955 = vmatprep.mubr.msk.f32.mxu0 %vm10472_vm0, %v46_v32  ;;  %v89_v47 = vld [vmem:[%s10407_s0 + $0x1b8] sm:$0xff]  ;;  %v54_v48 = vld [vmem:[%s10407_s0 + $0xa0] sm:$0xff]  ;;  %v55_v50 = vld [vmem:[%s10407_s0 + $0xa8] sm:$0xff] }
  0x21   :  { %6009 = vmatprep.mubr.msk.f32.mxu1 %vm10472_vm0, %v82_v33  ;;  %v90_v49 = vld [vmem:[%s10407_s0 + $0x1c0] sm:$0xff]  ;;  %v91_v51 = vld [vmem:[%s10407_s0 + $0x1c8] sm:$0xff]  ;;  %v56_v52 = vld [vmem:[%s10407_s0 + $0xb0] sm:$0xff] }
  0x22   :  { %v92_v53 = vld [vmem:[%s10407_s0 + $0x1d0] sm:$0xff]  ;;  %v57_v54 = vld [vmem:[%s10407_s0 + $0xb8] sm:$0xff]  ;;  %v58_v56 = vld [vmem:[%s10407_s0 + $0xc0] sm:$0xff] }
  0x23   :  { %5956 = vmatmul.mubr.msk.f32.gmra.mxu0 %vm10472_vm0, %v47_v34  ;;  %v93_v55 = vld [vmem:[%s10407_s0 + $0x1d8] sm:$0xff]  ;;  %v94_v57 = vld [vmem:[%s10407_s0 + $0x1e0] sm:$0xff]  ;;  %v59_v58 = vld [vmem:[%s10407_s0 + $0xc8] sm:$0xff] }
  0x24   :  { %6010 = vmatmul.mubr.msk.f32.gmra.mxu1 %vm10472_vm0, %v83_v35  ;;  %5958 = vmatprep.mubr.msk.f32.mxu0 %vm10472_vm0, %v48_v36  ;;  %v95_v59 = vld [vmem:[%s10407_s0 + $0x1e8] sm:$0xff]  ;;  %v60_v60 = vld [vmem:[%s10407_s0 + $0xd0] sm:$0xff]  ;;  %v61_v62 = vld [vmem:[%s10407_s0 + $0xd8] sm:$0xff] }
  0x25   :  { %6012 = vmatprep.mubr.msk.f32.mxu1 %vm10472_vm0, %v84_v37  ;;  %v96_v61 = vld [vmem:[%s10407_s0 + $0x1f0] sm:$0xff]  ;;  %v97_v63 = vld [vmem:[%s10407_s0 + $0x1f8] sm:$0xff]  ;;  %v62_v0 = vld [vmem:[%s10407_s0 + $0xe0] sm:$0xff] }
  0x26   :  { %v63_v1 = vld [vmem:[%s10407_s0 + $0xe8] sm:$0xff]  ;;  %v98_v2 = vld [vmem:[%s10408_s1] sm:$0x3]  ;;  %v64_v3 = vld [vmem:[%s10407_s0 + $0xf0] sm:$0xff] }
  0x27   :  { %5959 = vmatmul.mubr.msk.f32.gmra.mxu0 %vm10472_vm0, %v49_v38  ;;  %v65_v4 = vld [vmem:[%s10407_s0 + $0xf8] sm:$0xff]  ;;  %v66_v5 = vld [vmem:[%s10407_s0 + $0x100] sm:$0xff]  ;;  %v67_v6 = vld [vmem:[%s10407_s0 + $0x108] sm:$0xff] }
  0x28   :  { %6013 = vmatmul.mubr.msk.f32.gmra.mxu1 %vm10472_vm0, %v85_v39  ;;  %5961 = vmatprep.mubr.msk.f32.mxu0 %vm10472_vm0, %v50_v40 }
  0x29   :  { %6015 = vmatprep.mubr.msk.f32.mxu1 %vm10472_vm0, %v86_v41 }
  0x2b   :  { %5962 = vmatmul.mubr.msk.f32.gmra.mxu0 %vm10472_vm0, %v51_v42 }
  0x2c   :  { %6016 = vmatmul.mubr.msk.f32.gmra.mxu1 %vm10472_vm0, %v87_v43  ;;  %5964 = vmatprep.mubr.msk.f32.mxu0 %vm10472_vm0, %v52_v44 }
  0x2d   :  { %6018 = vmatprep.mubr.msk.f32.mxu1 %vm10472_vm0, %v88_v45 }
  0x2f   :  { %5965 = vmatmul.mubr.msk.f32.gmra.mxu0 %vm10472_vm0, %v53_v46 }
  0x30   :  { %6019 = vmatmul.mubr.msk.f32.gmra.mxu1 %vm10472_vm0, %v89_v47  ;;  %5967 = vmatprep.mubr.msk.f32.mxu0 %vm10472_vm0, %v54_v48 }
  0x31   :  { %6021 = vmatprep.mubr.msk.f32.mxu1 %vm10472_vm0, %v90_v49 }
  0x33   :  { %5968 = vmatmul.mubr.msk.f32.gmra.mxu0 %vm10472_vm0, %v55_v50 }
  0x34   :  { %6022 = vmatmul.mubr.msk.f32.gmra.mxu1 %vm10472_vm0, %v91_v51  ;;  %5970 = vmatprep.mubr.msk.f32.mxu0 %vm10472_vm0, %v56_v52 }
  0x35   :  { %6024 = vmatprep.mubr.msk.f32.mxu1 %vm10472_vm0, %v92_v53 }
  0x37   :  { %5971 = vmatmul.mubr.msk.f32.gmra.mxu0 %vm10472_vm0, %v57_v54 }
  0x38   :  { %6025 = vmatmul.mubr.msk.f32.gmra.mxu1 %vm10472_vm0, %v93_v55  ;;  %5973 = vmatprep.mubr.msk.f32.mxu0 %vm10472_vm0, %v58_v56 }
  0x39   :  { %6027 = vmatprep.mubr.msk.f32.mxu1 %vm10472_vm0, %v94_v57 }
  0x3b   :  { %5974 = vmatmul.mubr.msk.f32.gmra.mxu0 %vm10472_vm0, %v59_v58 }
  0x3c   :  { %6028 = vmatmul.mubr.msk.f32.gmra.mxu1 %vm10472_vm0, %v95_v59  ;;  %5976 = vmatprep.mubr.msk.f32.mxu0 %vm10472_vm0, %v60_v60  ;;  %v6402_v59 = vmov 1966171168  }
  0x3d   :  { %6030 = vmatprep.mubr.msk.f32.mxu1 %vm10472_vm0, %v96_v61  ;;  %v770_v60 = vunpack.c.l.s4 %v6402_v59  ;;  %v10417_v61 = vlaneseq }
  0x3f   :  { %5977 = vmatmul.mubr.msk.f32.gmra.mxu0 %vm10472_vm0, %v61_v62 }
  0x40   :  { %6031 = vmatmul.mubr.msk.f32.gmra.mxu1 %vm10472_vm0, %v97_v63  ;;  %5979 = vmatprep.mubr.msk.f32.mxu0 %vm10472_vm0, %v62_v0 }
  0x41   :  { %6037 = vmatprep.mubr.msk.f32.mxu1 %vm6400_vm1, %v6399_v8  ;;  %v5862_v8 = vld [vmem:[#allocation2] ss:$0 sm:$0xff]  ;;  %vm1433_vm1 = vcmask 982912  }
  0x42   :  { %1200 = vperm.xlu0 %6050, %v5862_v8  }
  0x43   :  { %5980 = vmatmul.mubr.msk.f32.gmra.mxu0 %vm10472_vm0, %v63_v1  ;;  %v771_v1 = vunpack.c.0.s8 %v770_v60 }
  0x44   :  { %6038 = vmatmul.mubr.msk.f32.vlgmr.msra.gmra.mxu1 %vm10472_vm0, %v98_v2  ;;  %5982 = vmatprep.mubr.msk.f32.mxu0 %vm10472_vm0, %v64_v3  ;;  %v6830_v2 = vshrl.u32 %v10417_v61, 7 }
  0x46   :  { %10678 = vst [vmem:[#allocation11_spill] sm:$0xff] %v6830_v2  ;;  %v774_v7 = vsub.s32 %v771_v1, %v6830_v2 }
  0x47   :  { %5983 = vmatmul.mubr.msk.f32.gmra.mxu0 %vm10472_vm0, %v65_v4 }
  0x48   :  { %5985 = vmatprep.mubr.msk.f32.mxu0 %vm10472_vm0, %v66_v5 }
  0x4b   :  { %5986 = vmatmul.mubr.msk.f32.gmra.mxu0 %vm10472_vm0, %v67_v6  ;;  %v5859_v6 = vld [vmem:[%s10412_s5] ss:$0 sm:$0xff]  ;;  %vm1679_vm0 = vcmask 1041409  }
  0xc8   :  { %v6733_v9 = vpop.f32.mrf.mxu1 }
  0xca   :  { %v6735_v10 = vpop.f32.mrf.mxu1 }
  0xcb   :  { %v6737_v11 = vpop.f32.mrf.mxu0 }
  0xcc   :  { %v6739_v12 = vpop.f32.mrf.mxu1 }
  0xcd   :  { %v6741_v13 = vpop.f32.mrf.mxu0 }
  0xce   :  { %v6743_v14 = vpop.f32.mrf.mxu1 }
  0xcf   :  { %v6745_v15 = vpop.f32.mrf.mxu0 }
  0xd0   :  { %v6747_v16 = vpop.f32.mrf.mxu1 }
  0xd1   :  { %v6749_v17 = vpop.f32.mrf.mxu0 }
  0xd2   :  { %v6751_v18 = vpop.f32.mrf.mxu1 }
  0xd3   :  { %v6753_v19 = vpop.f32.mrf.mxu0 }
  0xd4   :  { %v6755_v20 = vpop.f32.mrf.mxu1 }
  0xd5   :  { %v6757_v21 = vpop.f32.mrf.mxu0 }
  0xd6   :  { %v6759_v22 = vpop.f32.mrf.mxu1 }
  0xd7   :  { %v6761_v23 = vpop.f32.mrf.mxu0 }
  0xd8   :  { %v6763_v24 = vpop.f32.mrf.mxu1 }
  0xd9   :  { %v6765_v25 = vpop.f32.mrf.mxu0 }
  0xda   :  { %v6767_v26 = vpop.f32.mrf.mxu1 }
  0xdb   :  { %v6769_v27 = vpop.f32.mrf.mxu0 }
  0xdc   :  { %v6771_v28 = vpop.f32.mrf.mxu1 }
  0xdd   :  { %v6773_v29 = vpop.f32.mrf.mxu0 }
  0xde   :  { %v6775_v30 = vpop.f32.mrf.mxu1 }
  0xdf   :  { %v6777_v31 = vpop.f32.mrf.mxu0 }
  0xe0   :  { %v6779_v32 = vpop.f32.mrf.mxu1 }
  0xe1   :  { %v6781_v33 = vpop.f32.mrf.mxu0 }
  0xe2   :  { %v6783_v34 = vpop.f32.mrf.mxu1 }
  0xe3   :  { %v6785_v35 = vpop.f32.mrf.mxu0 }
  0xe4   :  { %v6787_v36 = vpop.f32.mrf.mxu1 }
  0xe5   :  { %v6789_v37 = vpop.f32.mrf.mxu0 }
  0xe6   :  { %v6791_v38 = vpop.f32.mrf.mxu1 }
  0xe7   :  { %v6793_v39 = vpop.f32.mrf.mxu0 }
  0xe8   :  { %v6795_v40 = vpop.f32.mrf.mxu1 }
  0xe9   :  { %v6797_v41 = vpop.f32.mrf.mxu0 }
  0xea   :  { %v6799_v42 = vpop.f32.mrf.mxu1 }
  0xeb   :  { %v6801_v43 = vpop.f32.mrf.mxu0 }
  0xec   :  { %v6803_v44 = vpop.f32.mrf.mxu1 }
  0xed   :  { %v6805_v45 = vpop.f32.mrf.mxu0 }
  0xee   :  { %v6807_v46 = vpop.f32.mrf.mxu1 }
  0xef   :  { %v6809_v47 = vpop.f32.mrf.mxu0 }
  0xf0   :  { %v6811_v48 = vpop.f32.mrf.mxu1 }
  0xf1   :  { %v6813_v49 = vpop.f32.mrf.mxu0 }
  0xf2   :  { %v6815_v50 = vpop.f32.mrf.mxu1 }
  0xf3   :  { %v6817_v51 = vpop.f32.mrf.mxu0 }
  0xf4   :  { %10673 = vst [vmem:[#allocation6_spill] sm:$0xff] %v6817_v51  ;;  %v6819_v52 = vpop.f32.mrf.mxu1 }
  0xf5   :  { %v6821_v53 = vpop.f32.mrf.mxu0 }
  0xf6   :  { %10674 = vst [vmem:[#allocation7_spill] sm:$0xff] %v6821_v53  ;;  %v647_v54 = vpop.f32.mrf.mxu1 }
  0xf7   :  { %v6823_v55 = vpop.f32.mrf.mxu0 }
  0xf8   :  { %10675 = vst [vmem:[#allocation8_spill] sm:$0xff] %v6823_v55  ;;  %v6026_v56 = vpop.f32.mrf.mxu1 }
  0xf9   :  { %v6825_v57 = vpop.f32.mrf.mxu0 }
  0xfa   :  { %10676 = vst [vmem:[#allocation9_spill] sm:$0xff] %v6825_v57  ;;  %v657_v58 = vpop.f32.mrf.mxu1 }
  0xfb   :  { %v6827_v63 = vpop.f32.mrf.mxu0 }
  0xfc   :  { %v6029_v62 = vpop.f32.mrf.mxu1  ;;  %10677 = vst [vmem:[#allocation10_spill] sm:$0xff] %v6827_v63  ;;  %v6841_v63 = vld [vmem:[%s10410_s3] ss:$0 sm:$0xff] }
  0xfd   :  { %v6832_v4 = vpop.f32.mrf.mxu0  ;;  %v543_v55 = vadd.f32 %v6733_v9, %v6841_v63  ;;  %v538_v1 = vadd.f32 %v6841_v63, %v6735_v10  ;;  %v553_v53 = vadd.f32 %v6739_v12, %v6841_v63  ;;  %v563_v10 = vadd.f32 %v6747_v16, %v6841_v63 }
  0xfe   :  { %v667_v0 = vpop.f32.mrf.mxu1  ;;  %10679 = vst [vmem:[#allocation12_spill] sm:$0xff] %v6832_v4  ;;  %v6846_v4 = vsub.s32 0, %v6830_v2  ;;  %v6862_v2 = vadd.f32 %v6745_v15, %v6841_v63  ;;  %v573_v15 = vadd.f32 %v6755_v20, %v6841_v63  ;;  %v568_v16 = vadd.f32 %v6841_v63, %v6759_v22 }
  0xff   :  { %v6843_v60 = vpop.f32.mrf.mxu0  ;;  %v593_v20 = vadd.f32 %v6771_v28, %v6841_v63  ;;  %v598_v22 = vadd.f32 %v6841_v63, %v6783_v34  ;;  %v623_v28 = vadd.f32 %v6795_v40, %v6841_v63  ;;  %v628_v34 = vadd.f32 %v6841_v63, %v6807_v46 }
 0x100   :  { %v6032_v3 = vpop.f32.mrf.mxu1  ;;  %10680 = vst [vmem:[#allocation13_spill] sm:$0xff] %v6843_v60  ;;  %10681 = vst [vmem:[#allocation14_spill] sm:$0xff] %v6846_v4  ;;  %v638_v40 = vadd.f32 %v6841_v63, %v6815_v50  ;;  %v673_v46 = vadd.f32 %v6029_v62, %v6841_v63 }
 0x101   :  { %v6864_v9 = vpop.f32.mrf.mxu0 }
 0x102   :  { %v677_v5 = vpop.f32.mrf.mxu1  ;;  %10682 = vst [vmem:[#allocation15_spill] sm:$0xff] %v6864_v9  ;;  %v6880_v9 = vadd.f32 %v6841_v63, %v6757_v21  ;;  %v588_v21 = vadd.f32 %v6841_v63, %v6775_v30  ;;  %v618_v30 = vadd.f32 %v6841_v63, %v6799_v42  ;;  %v648_v42 = vadd.f32 %v6841_v63, %v647_v54 }
 0x104   :  { %v764_v8 = vpop.f32.mrf.mxu1 }
 0x105   :  { %v765_v59 = vadd.f32 %v5859_v6, %v764_v8  ;;  %v373_v6 = vadd.f32 %v6737_v11, %v6841_v63  ;;  %v378_v11 = vadd.f32 %v6841_v63, %v6749_v17  ;;  %v583_v17 = vadd.f32 %v6763_v24, %v6841_v63  ;;  %v6900_v24 = vpop.f32.mrf.mxu0 }
 0x106   :  { %v6039_v61 = vpop.f32.mrf.mxu1  ;;  %10683 = vst [vmem:[#allocation16_spill] sm:$0xff] %v6900_v24  ;;  %v683_v24 = vadd.f32 %v6032_v3, %v6841_v63 }
 0x107   :  { %v775_v57 = vrot.slane %v765_v59, %v774_v7  ;;  %v368_v61 = vadd.f32 %v6841_v63, %v6741_v13  ;;  %v548_v59 = vadd.f32 %v6841_v63, %v6743_v14  ;;  %v558_v13 = vadd.f32 %v6841_v63, %v6751_v18 }
 0x108   :  { %v6874_v14 = vadd.f32 %v6753_v19, %v6841_v63  ;;  %v6888_v18 = vadd.f32 %v6841_v63, %v6765_v25  ;;  %v578_v19 = vadd.f32 %v6841_v63, %v6767_v26  ;;  %v613_v25 = vadd.f32 %v6787_v36, %v6841_v63 }
 0x109   :  { %v776_v8 = vcombine.high %v775_v57, %v775_v57  ;;  %v783_v60 = vrot.slane %v775_v57, %v774_v7  ;;  %v603_v57 = vadd.f32 %v6779_v32, %v6841_v63  ;;  %v608_v26 = vadd.f32 %v6841_v63, %v6791_v38 }
 0x10a   :  { %v633_v32 = vadd.f32 %v6803_v44, %v6841_v63  ;;  %v643_v38 = vadd.f32 %v6811_v48, %v6841_v63  ;;  %v658_v44 = vadd.f32 %v6841_v63, %v657_v58  ;;  %v678_v48 = vadd.f32 %v6841_v63, %v677_v5 }
 0x10b   :  { %v790_v12 = vrot.slane %v776_v8, %v774_v7  ;;  %v6909_v7 = vrot.slane %v783_v60, %v6846_v4  ;;  %v653_v60 = vadd.f32 %v6819_v52, %v6841_v63  ;;  %v663_v8 = vadd.f32 %v6026_v56, %v6841_v63 }
 0x10d   :  { %v6918_v36 = vrot.slane %v790_v12, %v6846_v4  ;;  %v668_v12 = vadd.f32 %v6841_v63, %v667_v0  ;;  %v507_v4 = vpop.f32.mrf.mxu0  ;;  %v801_v50 = vadd.f32 %v6909_v7, %v368_v61  ;;  %v802_v52 = vadd.f32 %v6909_v7, %v373_v6 }
 0x10e   :  { %v508_v51 = vadd.f32 %v6841_v63, %v507_v4  ;;  %v803_v54 = vadd.f32 %v6909_v7, %v378_v11 }
 0x10f   :  { %v6938_v56 = vadd.f32 %v6918_v36, %v538_v1  ;;  %v6941_v58 = vadd.f32 %v6918_v36, %v543_v55  ;;  %v6944_v62 = vadd.f32 %v6918_v36, %v548_v59  ;;  %v6947_v0 = vadd.f32 %v6918_v36, %v553_v53 }
 0x110   :  { %v6950_v3 = vadd.f32 %v6918_v36, %v558_v13  ;;  %v6953_v4 = vadd.f32 %v6918_v36, %v563_v10  ;;  %v6956_v5 = vadd.f32 %v6918_v36, %v568_v16  ;;  %v6959_v1 = vadd.f32 %v6918_v36, %v573_v15 }
 0x111   :  { %v6962_v55 = vadd.f32 %v6918_v36, %v578_v19  ;;  %v6965_v6 = vadd.f32 %v6918_v36, %v583_v17  ;;  %v6968_v53 = vadd.f32 %v6918_v36, %v588_v21  ;;  %v6971_v61 = vadd.f32 %v6918_v36, %v593_v20 }
 0x112   :  { %v6974_v59 = vadd.f32 %v6918_v36, %v598_v22  ;;  %v6977_v10 = vadd.f32 %v6918_v36, %v603_v57  ;;  %v6980_v11 = vadd.f32 %v6918_v36, %v608_v26  ;;  %v6983_v13 = vadd.f32 %v6918_v36, %v613_v25 }
 0x113   :  { %v6986_v15 = vadd.f32 %v6918_v36, %v618_v30  ;;  %v6989_v16 = vadd.f32 %v6918_v36, %v623_v28  ;;  %v6992_v17 = vadd.f32 %v6918_v36, %v628_v34  ;;  %v6995_v19 = vadd.f32 %v6918_v36, %v633_v32 }
 0x114   :  { %v6998_v20 = vadd.f32 %v6918_v36, %v638_v40  ;;  %v7001_v21 = vadd.f32 %v6918_v36, %v643_v38  ;;  %v7004_v57 = vadd.f32 %v6918_v36, %v648_v42  ;;  %v7007_v22 = vadd.f32 %v6918_v36, %v653_v60 }
 0x115   :  { %v7010_v25 = vadd.f32 %v6918_v36, %v658_v44  ;;  %v7013_v26 = vadd.f32 %v6918_v36, %v663_v8  ;;  %v7016_v28 = vadd.f32 %v6918_v36, %v668_v12  ;;  %v7019_v30 = vadd.f32 %v6918_v36, %v673_v46 }
 0x116   :  { %v7022_v32 = vadd.f32 %v6918_v36, %v678_v48  ;;  %v7025_v34 = vadd.f32 %v6918_v36, %v683_v24  ;;  %v403_v38 = vadd.f32 %v6761_v23, %v6841_v63  ;;  %v804_v40 = vadd.f32 %v6909_v7, %v6862_v2 }
 0x117   :  { %v829_v60 = vadd.f32 %v6909_v7, %v508_v51  ;;  %6052 = vtanh.f32 %v801_v50  ;;  %v408_v42 = vadd.f32 %v6841_v63, %v6773_v29  ;;  %v805_v8 = vadd.f32 %v6909_v7, %v6880_v9 }
 0x118   :  { %6054 = vtanh.f32 %v802_v52  ;;  %v413_v24 = vadd.f32 %v6769_v27, %v6841_v63  ;;  %v806_v44 = vadd.f32 %v6909_v7, %v6874_v14  ;;  %v418_v23 = vadd.f32 %v6841_v63, %v6781_v33  ;;  %v7071_v52 = vld [vmem:[%s10413_s6] ss:$0 sm:$0xff] }
 0x119   :  { %6056 = vtanh.f32 %v829_v60  ;;  %v807_v51 = vadd.f32 %v6909_v7, %v6888_v18  ;;  %v423_v29 = vadd.f32 %v6777_v31, %v6841_v63  ;;  %v808_v2 = vadd.f32 %v6909_v7, %v403_v38  ;;  %v10684_v38 = vld [vmem:[#allocation6_spill] sm:$0xff] }
 0x11a   :  { %6058 = vtanh.f32 %v803_v54  ;;  %v428_v27 = vadd.f32 %v6841_v63, %v6789_v37  ;;  %v809_v9 = vadd.f32 %v6909_v7, %v408_v42  ;;  %v433_v14 = vadd.f32 %v6785_v35, %v6841_v63 }
 0x11b   :  { %6060 = vtanh.f32 %v804_v40  ;;  %v810_v33 = vadd.f32 %v6909_v7, %v413_v24  ;;  %v438_v18 = vadd.f32 %v6841_v63, %v6797_v41  ;;  %v811_v31 = vadd.f32 %v6909_v7, %v418_v23  ;;  %v10686_v24 = vld [vmem:[#allocation8_spill] sm:$0xff] }
 0x11c   :  { %6062 = vtanh.f32 %v805_v8  ;;  %v443_v46 = vadd.f32 %v6793_v39, %v6841_v63  ;;  %v812_v37 = vadd.f32 %v6909_v7, %v423_v29  ;;  %v448_v12 = vadd.f32 %v6841_v63, %v6805_v45  ;;  %v10687_v29 = vld [vmem:[#allocation9_spill] sm:$0xff] }
 0x11d   :  { %6064 = vtanh.f32 %v806_v44  ;;  %v813_v35 = vadd.f32 %v6909_v7, %v428_v27  ;;  %v453_v48 = vadd.f32 %v6801_v43, %v6841_v63  ;;  %v814_v41 = vadd.f32 %v6909_v7, %v433_v14  ;;  %v10688_v27 = vld [vmem:[#allocation10_spill] sm:$0xff] }
 0x11e   :  { %6066 = vtanh.f32 %v807_v51  ;;  %v458_v50 = vadd.f32 %v6841_v63, %v6813_v49  ;;  %v815_v39 = vadd.f32 %v6909_v7, %v438_v18  ;;  %v463_v45 = vadd.f32 %v6809_v47, %v6841_v63  ;;  %v10685_v49 = vld [vmem:[#allocation7_spill] sm:$0xff] }
 0x11f   :  { %6068 = vtanh.f32 %v808_v2  ;;  %v816_v54 = vadd.f32 %v6909_v7, %v443_v46  ;;  %v473_v40 = vadd.f32 %v10684_v38, %v6841_v63  ;;  %v468_v60 = vadd.f32 %v6841_v63, %v10685_v49 }
 0x120   :  { %6070 = vtanh.f32 %v809_v9  ;;  %v817_v42 = vadd.f32 %v6909_v7, %v448_v12  ;;  %v483_v44 = vadd.f32 %v10686_v24, %v6841_v63  ;;  %v818_v47 = vadd.f32 %v6909_v7, %v453_v48  ;;  %v10689_v12 = vld [vmem:[#allocation12_spill] sm:$0xff] }
 0x121   :  { %6072 = vtanh.f32 %v810_v33  ;;  %v478_v2 = vadd.f32 %v6841_v63, %v10687_v29  ;;  %v493_v9 = vadd.f32 %v10688_v27, %v6841_v63  ;;  %v819_v14 = vadd.f32 %v6909_v7, %v458_v50 }
 0x122   :  { %6074 = vtanh.f32 %v811_v31  ;;  %v820_v18 = vadd.f32 %v6909_v7, %v463_v45  ;;  %v821_v48 = vadd.f32 %v6909_v7, %v468_v60  ;;  %v10691_v45 = vld [vmem:[#allocation15_spill] sm:$0xff]  ;;  %v822_v38 = vadd.f32 %v6909_v7, %v473_v40  ;;  %v10692_v40 = vld [vmem:[#allocation16_spill] sm:$0xff] }
 0x123   :  { %6076 = vtanh.f32 %v812_v37 }
 0x124   :  { %v6053_v43 = vpop.eup %6052  ;;  %6078 = vtanh.f32 %v813_v35  ;;  %v488_v35 = vadd.f32 %v6841_v63, %v10689_v12 }
 0x125   :  { %v6055_v8 = vpop.eup %6054  ;;  %6080 = vtanh.f32 %v814_v41  ;;  %v936_v23 = vmul.f32 %v6053_v43, %v7071_v52 }
 0x126   :  { %v7085_v51 = vpop.eup %6056  ;;  %6082 = vtanh.f32 %v815_v39  ;;  %v937_v46 = vmul.f32 %v6055_v8, %v7071_v52  ;;  %v10690_v39 = vld [vmem:[#allocation13_spill] sm:$0xff]  ;;  %v823_v8 = vadd.f32 %v6909_v7, %v478_v2  ;;  %v825_v2 = vadd.f32 %v6909_v7, %v488_v35 }
 0x127   :  { %v6059_v33 = vpop.eup %6058  ;;  %6084 = vtanh.f32 %v816_v54  ;;  %v1001_v31 = vsel %vm1000_vm2, %v936_v23, 0.0  ;;  %v503_v43 = vadd.f32 %v10690_v39, %v6841_v63  ;;  %v498_v54 = vadd.f32 %v6841_v63, %v10691_v45  ;;  %v5984_v45 = vpop.f32.mrf.mxu0 }
 0x128   :  { %v6061_v37 = vpop.eup %6060  ;;  %6086 = vtanh.f32 %v817_v42  ;;  %v938_v41 = vmul.f32 %v6059_v33, %v7071_v52  ;;  %1002 = vadd.xlane.f32.xlu0 %v1001_v31  ;;  %v824_v23 = vadd.f32 %v6909_v7, %v483_v44  ;;  %v1004_v29 = vsel %vm1000_vm2, %v937_v46, 0.0 }
 0x129   :  { %v6063_v50 = vpop.eup %6062  ;;  %6088 = vtanh.f32 %v818_v47  ;;  %v939_v42 = vmul.f32 %v6061_v37, %v7071_v52  ;;  %v513_v47 = vadd.f32 %v10692_v40, %v6841_v63  ;;  %v826_v31 = vadd.f32 %v6909_v7, %v493_v9 }
 0x12a   :  { %v6065_v49 = vpop.eup %6064  ;;  %6090 = vtanh.f32 %v819_v14  ;;  %v1007_v60 = vsel %vm1000_vm2, %v938_v41, 0.0  ;;  %v940_v27 = vmul.f32 %v6063_v50, %v7071_v52  ;;  %v827_v44 = vadd.f32 %v6909_v7, %v498_v54 }
 0x12b   :  { %v6067_v24 = vpop.eup %6066  ;;  %6092 = vtanh.f32 %v820_v18  ;;  %1008 = vadd.xlane.f32.xlu1 %v1007_v60  ;;  %v1010_v18 = vsel %vm1000_vm2, %v939_v42, 0.0  ;;  %v941_v46 = vmul.f32 %v6065_v49, %v7071_v52  ;;  %v828_v41 = vadd.f32 %v6909_v7, %v503_v43 }
 0x12c   :  { %v6069_v33 = vpop.eup %6068  ;;  %6094 = vtanh.f32 %v821_v48  ;;  %1005 = vadd.xlane.f32.xlu0 %v1004_v29  ;;  %v1013_v35 = vsel %vm1000_vm2, %v940_v27, 0.0  ;;  %v942_v48 = vmul.f32 %v6067_v24, %v7071_v52  ;;  %v830_v9 = vadd.f32 %v6909_v7, %v513_v47 }
 0x12d   :  { %v6071_v14 = vpop.eup %6070  ;;  %6096 = vtanh.f32 %v822_v38  ;;  %v1016_v38 = vsel %vm1000_vm2, %v941_v46, 0.0  ;;  %v943_v43 = vmul.f32 %v6069_v33, %v7071_v52 }
 0x12e   :  { %v6073_v37 = vpop.eup %6072  ;;  %6098 = vtanh.f32 %v823_v8  ;;  %v1019_v8 = vsel %vm1000_vm2, %v942_v48, 0.0  ;;  %v944_v60 = vmul.f32 %v6071_v14, %v7071_v52 }
 0x12f   :  { %v6075_v12 = vpop.eup %6074  ;;  %6100 = vtanh.f32 %v824_v23  ;;  %1011 = vadd.xlane.f32.xlu1 %v1010_v18  ;;  %v517_v23 = vpop.f32.mrf.mxu0  ;;  %v1022_v27 = vsel %vm1000_vm2, %v943_v43, 0.0  ;;  %v945_v33 = vmul.f32 %v6073_v37, %v7071_v52 }
 0x130   :  { %v6077_v50 = vpop.eup %6076  ;;  %6102 = vtanh.f32 %v825_v2  ;;  %1014 = vadd.xlane.f32.xlu0 %v1013_v35  ;;  %v1025_v47 = vsel %vm1000_vm2, %v944_v60, 0.0  ;;  %v946_v2 = vmul.f32 %v6075_v12, %v7071_v52  ;;  %v518_v12 = vadd.f32 %v6841_v63, %v517_v23 }
 0x131   :  { %v6079_v39 = vpop.eup %6078  ;;  %6104 = vtanh.f32 %v826_v31  ;;  %v947_v37 = vmul.f32 %v6077_v50, %v7071_v52 }
 0x132   :  { %v6081_v54 = vpop.eup %6080  ;;  %6106 = vtanh.f32 %v827_v44  ;;  %v948_v18 = vmul.f32 %v6079_v39, %v7071_v52  ;;  %v7184_v43 = vadd.f32 %v6909_v7, %v518_v12 }
 0x133   :  { %v6083_v49 = vpop.eup %6082  ;;  %6108 = vtanh.f32 %v828_v41  ;;  %1017 = vadd.xlane.f32.xlu1 %v1016_v38  ;;  %v1034_v48 = vsel %vm1000_vm2, %v947_v37, 0.0 }
 0x134   :  { %v6085_v42 = vpop.eup %6084  ;;  %6110 = vtanh.f32 %v830_v9  ;;  %1020 = vadd.xlane.f32.xlu0 %v1019_v8  ;;  %v950_v9 = vmul.f32 %v6083_v49, %v7071_v52 }
 0x135   :  { %v6087_v24 = vpop.eup %6086  ;;  %6112 = vtanh.f32 %v6938_v56 }
 0x136   :  { %v7126_v29 = vpop.eup %6088  ;;  %6114 = vtanh.f32 %v6941_v58  ;;  %v5987_v58 = vpop.f32.mrf.mxu0  ;;  %v952_v8 = vmul.f32 %v6087_v24, %v7071_v52 }
 0x137   :  { %v7131_v40 = vpop.eup %6090  ;;  %6116 = vtanh.f32 %v6944_v62  ;;  %1023 = vadd.xlane.f32.xlu1 %v1022_v27  ;;  %v1028_v62 = vsel %vm1000_vm2, %v945_v33, 0.0  ;;  %v533_v35 = vadd.f32 %v5987_v58, %v6841_v63 }
 0x138   :  { %v7136_v14 = vpop.eup %6092  ;;  %6118 = vtanh.f32 %v6947_v0  ;;  %1026 = vadd.xlane.f32.xlu0 %v1025_v47  ;;  %v1031_v0 = vsel %vm1000_vm2, %v946_v2, 0.0  ;;  %v527_v41 = vpop.f32.mrf.mxu0 }
 0x139   :  { %v7139_v56 = vpop.eup %6094  ;;  %6120 = vtanh.f32 %v6950_v3 }
 0x13a   :  { %v7142_v31 = vpop.eup %6096  ;;  %6122 = vtanh.f32 %v6953_v4  ;;  %v523_v4 = vadd.f32 %v5984_v45, %v6841_v63 }
 0x13b   :  { %v7147_v44 = vpop.eup %6098  ;;  %6124 = vtanh.f32 %v6956_v5  ;;  %1029 = vadd.xlane.f32.xlu1 %v1028_v62 }
 0x13c   :  { %v7152_v46 = vpop.eup %6100  ;;  %6126 = vtanh.f32 %v6959_v1  ;;  %1032 = vadd.xlane.f32.xlu0 %v1031_v0  ;;  %v949_v1 = vmul.f32 %v6081_v54, %v7071_v52  ;;  %v7179_v54 = vadd.f32 %v6909_v7, %v523_v4 }
 0x13d   :  { %v7155_v3 = vpop.eup %6102  ;;  %6128 = vtanh.f32 %v6962_v55  ;;  %v1037_v55 = vsel %vm1000_vm2, %v948_v18, 0.0  ;;  %v955_v18 = vmul.f32 %v7136_v14, %v7071_v52 }
 0x13e   :  { %v7160_v5 = vpop.eup %6104  ;;  %6130 = vtanh.f32 %v6965_v6  ;;  %v528_v6 = vadd.f32 %v6841_v63, %v527_v41  ;;  %v1040_v63 = vsel %vm1000_vm2, %v949_v1, 0.0 }
 0x13f   :  { %v7166_v50 = vpop.eup %6106  ;;  %6132 = vtanh.f32 %v6968_v53  ;;  %1035 = vadd.xlane.f32.xlu1 %v1034_v48  ;;  %v951_v53 = vmul.f32 %v6085_v42, %v7071_v52 }
 0x140   :  { %v7171_v39 = vpop.eup %6108  ;;  %6134 = vtanh.f32 %v6971_v61  ;;  %1038 = vadd.xlane.f32.xlu0 %v1037_v55  ;;  %v7187_v61 = vadd.f32 %v6918_v36, %v533_v35  ;;  %v7196_v7 = vadd.f32 %v6918_v36, %v528_v6  ;;  %v954_v36 = vmul.f32 %v7131_v40, %v7071_v52 }
 0x141   :  { %v7175_v45 = vpop.eup %6110  ;;  %6136 = vtanh.f32 %v6974_v59  ;;  %v1043_v59 = vsel %vm1000_vm2, %v950_v9, 0.0  ;;  %v1046_v27 = vsel %vm1000_vm2, %v951_v53, 0.0  ;;  %v957_v9 = vmul.f32 %v7142_v31, %v7071_v52 }
 0x142   :  { %v6113_v38 = vpop.eup %6112  ;;  %6138 = vtanh.f32 %v6977_v10  ;;  %v953_v10 = vmul.f32 %v7126_v29, %v7071_v52  ;;  %v1055_v41 = vsel %vm1000_vm2, %v954_v36, 0.0  ;;  %v958_v31 = vmul.f32 %v7147_v44, %v7071_v52 }
 0x143   :  { %v6115_v49 = vpop.eup %6114  ;;  %6140 = vtanh.f32 %v6980_v11  ;;  %1041 = vadd.xlane.f32.xlu1 %v1040_v63  ;;  %v970_v60 = vmul.f32 %v6113_v38, %v7071_v52  ;;  %v1064_v44 = vsel %vm1000_vm2, %v957_v9, 0.0 }
 0x144   :  { %v6117_v42 = vpop.eup %6116  ;;  %6142 = vtanh.f32 %v6983_v13  ;;  %1044 = vadd.xlane.f32.xlu0 %v1043_v59  ;;  %v971_v23 = vmul.f32 %v6115_v49, %v7071_v52  ;;  %v1052_v40 = vsel %vm1000_vm2, %v953_v10, 0.0 }
 0x145   :  { %v6119_v11 = vpop.eup %6118  ;;  %6144 = vtanh.f32 %v6986_v15  ;;  %v7204_v24 = vsel %vm1000_vm2, %v970_v60, 0.0  ;;  %v972_v33 = vmul.f32 %v6117_v42, %v7071_v52  ;;  %v1049_v15 = vsel %vm1000_vm2, %v952_v8, 0.0 }
 0x146   :  { %v6121_v13 = vpop.eup %6120  ;;  %6146 = vtanh.f32 %v6989_v16  ;;  %v7211_v29 = vsel %vm1000_vm2, %v971_v23, 0.0  ;;  %v973_v47 = vmul.f32 %v6119_v11, %v7071_v52  ;;  %v959_v11 = vmul.f32 %v7152_v46, %v7071_v52 }
 0x147   :  { %v6123_v2 = vpop.eup %6122  ;;  %6148 = vtanh.f32 %v6992_v17  ;;  %1047 = vadd.xlane.f32.xlu1 %v1046_v27  ;;  %v7217_v58 = vsel %vm1000_vm2, %v972_v33, 0.0  ;;  %v974_v62 = vmul.f32 %v6121_v13, %v7071_v52  ;;  %v1067_v13 = vsel %vm1000_vm2, %v958_v31, 0.0 }
 0x148   :  { %v6125_v16 = vpop.eup %6124  ;;  %6150 = vtanh.f32 %v6995_v19  ;;  %1050 = vadd.xlane.f32.xlu0 %v1049_v15  ;;  %v7223_v37 = vsel %vm1000_vm2, %v973_v47, 0.0  ;;  %v975_v0 = vmul.f32 %v6123_v2, %v7071_v52 }
 0x149   :  { %v6127_v17 = vpop.eup %6126  ;;  %6152 = vtanh.f32 %v6998_v20  ;;  %v7230_v4 = vsel %vm1000_vm2, %v974_v62, 0.0  ;;  %v976_v12 = vmul.f32 %v6125_v16, %v7071_v52  ;;  %v956_v20 = vmul.f32 %v7139_v56, %v7071_v52 }
 0x14a   :  { %v6129_v19 = vpop.eup %6128  ;;  %6154 = vtanh.f32 %v7001_v21  ;;  %v7236_v35 = vsel %vm1000_vm2, %v975_v0, 0.0  ;;  %v977_v48 = vmul.f32 %v6127_v17, %v7071_v52  ;;  %v1058_v56 = vsel %vm1000_vm2, %v955_v18, 0.0 }
 0x14b   :  { %v6131_v1 = vpop.eup %6130  ;;  %6156 = vtanh.f32 %v7004_v57  ;;  %1053 = vadd.xlane.f32.xlu1 %v1052_v40  ;;  %v7243_v14 = vsel %vm1000_vm2, %v976_v12, 0.0  ;;  %v978_v55 = vmul.f32 %v6129_v19, %v7071_v52 }
 0x14c   :  { %v6133_v21 = vpop.eup %6132  ;;  %6158 = vtanh.f32 %v7007_v22  ;;  %1056 = vadd.xlane.f32.xlu0 %v1055_v41  ;;  %v7250_v6 = vsel %vm1000_vm2, %v977_v48, 0.0  ;;  %v979_v57 = vmul.f32 %v6131_v1, %v7071_v52  ;;  %v962_v41 = vmul.f32 %v7166_v50, %v7071_v52 }
 0x14d   :  { %v6135_v53 = vpop.eup %6134  ;;  %6160 = vtanh.f32 %v7010_v25  ;;  %v7256_v38 = vsel %vm1000_vm2, %v978_v55, 0.0  ;;  %v980_v63 = vmul.f32 %v6133_v21, %v7071_v52  ;;  %v1061_v25 = vsel %vm1000_vm2, %v956_v20, 0.0 }
 0x14e   :  { %v6137_v22 = vpop.eup %6136  ;;  %6162 = vtanh.f32 %v7013_v26  ;;  %v7263_v49 = vsel %vm1000_vm2, %v979_v57, 0.0  ;;  %v981_v59 = vmul.f32 %v6135_v53, %v7071_v52  ;;  %v963_v53 = vmul.f32 %v7171_v39, %v7071_v52 }
 0x14f   :  { %v6139_v8 = vpop.eup %6138  ;;  %6164 = vtanh.f32 %v7016_v28  ;;  %1059 = vadd.xlane.f32.xlu1 %v1058_v56  ;;  %v7269_v60 = vsel %vm1000_vm2, %v980_v63, 0.0  ;;  %v982_v42 = vmul.f32 %v6137_v22, %v7071_v52  ;;  %v1079_v31 = vsel %vm1000_vm2, %v962_v41, 0.0 }
 0x150   :  { %v6141_v26 = vpop.eup %6140  ;;  %6166 = vtanh.f32 %v7019_v30  ;;  %1062 = vadd.xlane.f32.xlu0 %v1061_v25  ;;  %v7275_v10 = vsel %vm1000_vm2, %v981_v59, 0.0  ;;  %v983_v23 = vmul.f32 %v6139_v8, %v7071_v52  ;;  %v964_v59 = vmul.f32 %v7085_v51, %v7071_v52 }
 0x151   :  { %v6143_v28 = vpop.eup %6142  ;;  %6168 = vtanh.f32 %v7022_v32  ;;  %v7282_v27 = vsel %vm1000_vm2, %v982_v42, 0.0  ;;  %v984_v33 = vmul.f32 %v6141_v26, %v7071_v52  ;;  %v960_v32 = vmul.f32 %v7155_v3, %v7071_v52 }
 0x152   :  { %v6145_v30 = vpop.eup %6144  ;;  %6170 = vtanh.f32 %v7025_v34  ;;  %v7288_v36 = vsel %vm1000_vm2, %v983_v23, 0.0  ;;  %v985_v47 = vmul.f32 %v6143_v28, %v7071_v52  ;;  %v965_v51 = vmul.f32 %v7175_v45, %v7071_v52 }
 0x153   :  { %v6147_v2 = vpop.eup %6146  ;;  %6172 = vtanh.f32 %v7179_v54  ;;  %1065 = vadd.xlane.f32.xlu1 %v1064_v44  ;;  %v7295_v46 = vsel %vm1000_vm2, %v984_v33, 0.0  ;;  %v986_v15 = vmul.f32 %v6145_v30, %v7071_v52  ;;  %v1070_v54 = vsel %vm1000_vm2, %v959_v11, 0.0 }
 0x154   :  { %v6149_v34 = vpop.eup %6148  ;;  %6174 = vtanh.f32 %v7184_v43  ;;  %1068 = vadd.xlane.f32.xlu0 %v1067_v13  ;;  %v7300_v62 = vsel %vm1000_vm2, %v985_v47, 0.0  ;;  %v987_v16 = vmul.f32 %v6147_v2, %v7071_v52  ;;  %v961_v43 = vmul.f32 %v7160_v5, %v7071_v52 }
 0x155   :  { %v6151_v40 = vpop.eup %6150  ;;  %6176 = vtanh.f32 %v7187_v61  ;;  %v7306_v3 = vsel %vm1000_vm2, %v986_v15, 0.0  ;;  %v988_v0 = vmul.f32 %v6149_v34, %v7071_v52  ;;  %v1073_v61 = vsel %vm1000_vm2, %v960_v32, 0.0 }
 0x156   :  { %v6153_v17 = vpop.eup %6152  ;;  %6178 = vtanh.f32 %v7196_v7  ;;  %v7313_v18 = vsel %vm1000_vm2, %v987_v16, 0.0  ;;  %v989_v12 = vmul.f32 %v6151_v40, %v7071_v52  ;;  %v1076_v50 = vsel %vm1000_vm2, %v961_v43, 0.0 }
 0x157   :  { %v6155_v19 = vpop.eup %6154  ;;  %1071 = vadd.xlane.f32.xlu1 %v1070_v54  ;;  %v7320_v48 = vsel %vm1000_vm2, %v988_v0, 0.0  ;;  %v990_v7 = vmul.f32 %v6153_v17, %v7071_v52  ;;  %v1082_v33 = vsel %vm1000_vm2, %v963_v53, 0.0  ;;  %v1085_v2 = vsel %vm1000_vm2, %v964_v59, 0.0 }
 0x158   :  { %v6157_v1 = vpop.eup %6156  ;;  %1074 = vadd.xlane.f32.xlu0 %v1073_v61  ;;  %v7324_v5 = vsel %vm1000_vm2, %v989_v12, 0.0  ;;  %v991_v20 = vmul.f32 %v6155_v19, %v7071_v52  ;;  %v1088_v17 = vsel %vm1000_vm2, %v965_v51, 0.0 }
 0x159   :  { %v6159_v55 = vpop.eup %6158  ;;  %v7328_v21 = vsel %vm1000_vm2, %v990_v7, 0.0  ;;  %v992_v9 = vmul.f32 %v6157_v1, %v7071_v52 }
 0x15a   :  { %v6161_v57 = vpop.eup %6160  ;;  %v7335_v56 = vsel %vm1000_vm2, %v991_v20, 0.0  ;;  %v993_v63 = vmul.f32 %v6159_v55, %v7071_v52 }
 0x15b   :  { %v6163_v22 = vpop.eup %6162  ;;  %1077 = vadd.xlane.f32.xlu1 %v1076_v50  ;;  %v7342_v8 = vsel %vm1000_vm2, %v992_v9, 0.0  ;;  %v994_v25 = vmul.f32 %v6161_v57, %v7071_v52 }
 0x15c   :  { %v6165_v42 = vpop.eup %6164  ;;  %1080 = vadd.xlane.f32.xlu0 %v1079_v31  ;;  %v1172_v39 = vsel %vm1000_vm2, %v993_v63, 0.0  ;;  %v995_v26 = vmul.f32 %v6163_v22, %v7071_v52 }
 0x15d   :  { %v6167_v44 = vpop.eup %6166  ;;  %v1175_v23 = vsel %vm1000_vm2, %v994_v25, 0.0  ;;  %v996_v28 = vmul.f32 %v6165_v42, %v7071_v52 }
 0x15e   :  { %v6169_v11 = vpop.eup %6168  ;;  %v1178_v30 = vsel %vm1000_vm2, %v995_v26, 0.0  ;;  %v997_v13 = vmul.f32 %v6167_v44, %v7071_v52 }
 0x15f   :  { %v6171_v47 = vpop.eup %6170  ;;  %1083 = vadd.xlane.f32.xlu1 %v1082_v33  ;;  %v1181_v32 = vsel %vm1000_vm2, %v996_v28, 0.0  ;;  %v998_v15 = vmul.f32 %v6169_v11, %v7071_v52 }
 0x160   :  { %v6173_v34 = vpop.eup %6172  ;;  %1086 = vadd.xlane.f32.xlu0 %v1085_v2  ;;  %v1184_v16 = vsel %vm1000_vm2, %v997_v13, 0.0  ;;  %v999_v40 = vmul.f32 %v6171_v47, %v7071_v52 }
 0x161   :  { %v6175_v54 = vpop.eup %6174  ;;  %v1187_v45 = vsel %vm1000_vm2, %v998_v15, 0.0  ;;  %v967_v43 = vmul.f32 %v6173_v34, %v7071_v52 }
 0x162   :  { %v6177_v0 = vpop.eup %6176  ;;  %v966_v12 = vmul.f32 %v6175_v54, %v7071_v52  ;;  %v1190_v19 = vsel %vm1000_vm2, %v999_v40, 0.0 }
 0x163   :  { %v6179_v61 = vpop.eup %6178  ;;  %1089 = vadd.xlane.f32.xlu1 %v1088_v17  ;;  %v969_v41 = vmul.f32 %v6177_v0, %v7071_v52  ;;  %v1094_v55 = vsel %vm1000_vm2, %v967_v43, 0.0 }
 0x164   :  { %v1091_v7 = vsel %vm1000_vm2, %v966_v12, 0.0  ;;  %v968_v1 = vmul.f32 %v6179_v61, %v7071_v52  ;;  %v7393_v52 = vpop.permute.xlu0 %1200 }
 0x165   :  { %1092 = vadd.xlane.f32.xlu0 %v1091_v7  ;;  %v1100_v20 = vsel %vm1000_vm2, %v969_v41, 0.0 }
 0x166   :  { %v1097_v9 = vsel %vm1000_vm2, %v968_v1, 0.0  ;;  %vm1440_vm2 = vcmask 1048512  }
 0x167   :  { %1095 = vadd.xlane.f32.xlu1 %v1094_v55 }
 0x169   :  { %1098 = vadd.xlane.f32.xlu0 %v1097_v9 }
 0x16b   :  { %1101 = vadd.xlane.f32.xlu1 %v1100_v20 }
 0x16d   :  { %1104 = vadd.xlane.f32.xlu0 %v7204_v24 }
 0x16f   :  { %1107 = vadd.xlane.f32.xlu1 %v7211_v29 }
 0x171   :  { %1110 = vadd.xlane.f32.xlu0 %v7217_v58 }
 0x173   :  { %1113 = vadd.xlane.f32.xlu1 %v7223_v37 }
 0x175   :  { %1116 = vadd.xlane.f32.xlu0 %v7230_v4 }
 0x177   :  { %1119 = vadd.xlane.f32.xlu1 %v7236_v35 }
 0x179   :  { %1122 = vadd.xlane.f32.xlu0 %v7243_v14 }
 0x17b   :  { %1125 = vadd.xlane.f32.xlu1 %v7250_v6 }
 0x17d   :  { %1128 = vadd.xlane.f32.xlu0 %v7256_v38 }
 0x17f   :  { %1131 = vadd.xlane.f32.xlu1 %v7263_v49 }
 0x181   :  { %1134 = vadd.xlane.f32.xlu0 %v7269_v60 }
 0x183   :  { %1137 = vadd.xlane.f32.xlu1 %v7275_v10 }
 0x185   :  { %1140 = vadd.xlane.f32.xlu0 %v7282_v27 }
 0x187   :  { %1143 = vadd.xlane.f32.xlu1 %v7288_v36 }
 0x189   :  { %1146 = vadd.xlane.f32.xlu0 %v7295_v46 }
 0x18b   :  { %1149 = vadd.xlane.f32.xlu1 %v7300_v62 }
 0x18d   :  { %1152 = vadd.xlane.f32.xlu0 %v7306_v3 }
 0x18f   :  { %1155 = vadd.xlane.f32.xlu1 %v7313_v18 }
 0x191   :  { %1158 = vadd.xlane.f32.xlu0 %v7320_v48 }
 0x193   :  { %1161 = vadd.xlane.f32.xlu1 %v7324_v5 }
 0x195   :  { %1164 = vadd.xlane.f32.xlu0 %v7328_v21 }
 0x197   :  { %1167 = vadd.xlane.f32.xlu1 %v7335_v56 }
 0x199   :  { %1170 = vadd.xlane.f32.xlu0 %v7342_v8  ;;  %v10693_v8 = vlaneseq }
 0x19b   :  { %1173 = vadd.xlane.f32.xlu1 %v1172_v39  ;;  %v7442_v25 = vand.u32 127, %v10693_v8 }
 0x19d   :  { %1176 = vadd.xlane.f32.xlu0 %v1175_v23  ;;  %v1337_v39 = vadd.s32 4294967288, %v7442_v25  ;;  %v10694_v23 = vld [vmem:[#allocation11_spill] sm:$0xff]  ;;  %v1344_v51 = vadd.s32 4294967280, %v7442_v25  ;;  %v1351_v2 = vadd.s32 4294967272, %v7442_v25  ;;  %v1358_v40 = vadd.s32 4294967264, %v7442_v25 }
 0x19e   :  { %v1365_v0 = vadd.s32 4294967256, %v7442_v25  ;;  %v1372_v1 = vadd.s32 4294967248, %v7442_v25 }
 0x19f   :  { %1179 = vadd.xlane.f32.xlu1 %v1178_v30  ;;  %v7452_v28 = vsub.s32 %v1337_v39, %v10694_v23  ;;  %v7462_v30 = vsub.s32 %v7442_v25, %v10694_v23  ;;  %v7475_v34 = vsub.s32 %v1344_v51, %v10694_v23  ;;  %v7487_v17 = vsub.s32 %v1351_v2, %v10694_v23 }
 0x1a0   :  { %v7498_v41 = vsub.s32 %v1358_v40, %v10694_v23  ;;  %v7508_v9 = vsub.s32 %v1365_v0, %v10694_v23  ;;  %v7522_v39 = vsub.s32 %v1372_v1, %v10694_v23 }
 0x1a1   :  { %1182 = vadd.xlane.f32.xlu0 %v1181_v32  ;;  %10695 = vst [vmem:[#allocation6_spill] sm:$0xff] %v7452_v28  ;;  %10697 = vst [vmem:[#allocation8_spill] sm:$0xff] %v7462_v30 }
 0x1a2   :  { %10699 = vst [vmem:[#allocation10_spill] sm:$0xff] %v7475_v34  ;;  %10701 = vst [vmem:[#allocation13_spill] sm:$0xff] %v7487_v17 }
 0x1a3   :  { %1185 = vadd.xlane.f32.xlu1 %v1184_v16  ;;  %10703 = vst [vmem:[#allocation16_spill] sm:$0xff] %v7498_v41  ;;  %10705 = vst [vmem:[#allocation18_spill] sm:$0xff] %v7508_v9 }
 0x1a4   :  { %10707 = vst [vmem:[#allocation20_spill] sm:$0xff] %v7522_v39 }
 0x1a5   :  { %1188 = vadd.xlane.f32.xlu0 %v1187_v45 }
 0x1a7   :  { %1191 = vadd.xlane.f32.xlu1 %v1190_v19 }
 0x1b1   :  { %v1003_v24 = vpop.xlane.xlu0 %1002 }
 0x1b2   :  { %v7465_v13 = vadd.f32 %v7393_v52, %v1003_v24 }
 0x1b4   :  { %v1009_v29 = vpop.xlane.xlu1 %1008  ;;  %10698 = vst [vmem:[#allocation9_spill] sm:$0xff] %v7465_v13  ;;  %v1336_v54 = vrot.slane %v7465_v13, %v7462_v30 }
 0x1b5   :  { %v1006_v58 = vpop.xlane.xlu0 %1005  ;;  %v7478_v16 = vadd.f32 %v7393_v52, %v1009_v29 }
 0x1b6   :  { %v7455_v11 = vadd.f32 %v7393_v52, %v1006_v58  ;;  %v1379_v58 = vadd.s32 4294967240, %v7442_v25 }
 0x1b7   :  { %10700 = vst [vmem:[#allocation12_spill] sm:$0xff] %v7478_v16  ;;  %v1348_v61 = vrot.slane %v7478_v16, %v7475_v34 }
 0x1b8   :  { %v1012_v37 = vpop.xlane.xlu1 %1011  ;;  %10696 = vst [vmem:[#allocation7_spill] sm:$0xff] %v7455_v11  ;;  %v1341_v32 = vrot.slane %v7455_v11, %v7452_v28 }
 0x1b9   :  { %v1015_v4 = vpop.xlane.xlu0 %1014  ;;  %v7490_v43 = vadd.f32 %v7393_v52, %v1012_v37  ;;  %v1386_v37 = vadd.s32 4294967232, %v7442_v25 }
 0x1ba   :  { %v1343_v12 = vsel %vm1342_vm3, %v1341_v32, %v1336_v54  ;;  %v7501_v7 = vadd.f32 %v7393_v52, %v1015_v4  ;;  %v1393_v32 = vadd.s32 4294967224, %v7442_v25  ;;  %v7535_v54 = vsub.s32 %v1379_v58, %v10694_v23 }
 0x1bb   :  { %10702 = vst [vmem:[#allocation15_spill] sm:$0xff] %v7490_v43  ;;  %v1350_v55 = vsel %vm1349_vm4, %v1348_v61, %v1343_v12  ;;  %v1355_v24 = vrot.slane %v7490_v43, %v7487_v17 }
 0x1bc   :  { %v1018_v35 = vpop.xlane.xlu1 %1017  ;;  %10704 = vst [vmem:[#allocation17_spill] sm:$0xff] %v7501_v7  ;;  %v1362_v8 = vrot.slane %v7501_v7, %v7498_v41  ;;  %10709 = vst [vmem:[#allocation22_spill] sm:$0xff] %v7535_v54 }
 0x1bd   :  { %v7395_v14 = vpop.xlane.xlu0 %1020  ;;  %v7513_v29 = vadd.f32 %v7393_v52, %v1018_v35  ;;  %v1357_v2 = vsel %vm1356_vm5, %v1355_v24, %v1350_v55  ;;  %v1400_v24 = vadd.s32 4294967216, %v7442_v25 }
 0x1be   :  { %v7526_v51 = vadd.f32 %v7393_v52, %v7395_v14  ;;  %v7542_v14 = vsub.s32 %v1386_v37, %v10694_v23  ;;  %v1364_v61 = vsel %vm1363_vm6, %v1362_v8, %v1357_v2  ;;  %v7558_v37 = vsub.s32 %v1393_v32, %v10694_v23 }
 0x1bf   :  { %10706 = vst [vmem:[#allocation19_spill] sm:$0xff] %v7513_v29  ;;  %v1369_v40 = vrot.slane %v7513_v29, %v7508_v9  ;;  %v1421_v8 = vadd.s32 4294967192, %v7442_v25  ;;  %v7574_v43 = vsub.s32 %v1400_v24, %v10694_v23 }
 0x1c0   :  { %v7397_v6 = vpop.xlane.xlu1 %1023  ;;  %10708 = vst [vmem:[#allocation21_spill] sm:$0xff] %v7526_v51  ;;  %10711 = vst [vmem:[#allocation24_spill] sm:$0xff] %v7542_v14  ;;  %v1376_v1 = vrot.slane %v7526_v51, %v7522_v39 }
 0x1c1   :  { %v7399_v38 = vpop.xlane.xlu0 %1026  ;;  %v7539_v0 = vadd.f32 %v7393_v52, %v7397_v6  ;;  %v1407_v6 = vadd.s32 4294967208, %v7442_v25  ;;  %10713 = vst [vmem:[#allocation26_spill] sm:$0xff] %v7558_v37  ;;  %v1371_v51 = vsel %vm1370_vm7, %v1369_v40, %v1364_v61  ;;  %10715 = vst [vmem:[#allocation28_spill] sm:$0xff] %v7574_v43 }
 0x1c2   :  { %v7551_v55 = vadd.f32 %v7393_v52, %v7399_v38  ;;  %v1378_v7 = vsel %vm1377_vm8, %v1376_v1, %v1371_v51  ;;  %v7587_v51 = vsub.s32 %v1421_v8, %v10694_v23 }
 0x1c3   :  { %10710 = vst [vmem:[#allocation23_spill] sm:$0xff] %v7539_v0  ;;  %v1383_v2 = vrot.slane %v7539_v0, %v7535_v54  ;;  %v7581_v40 = vsub.s32 %v1407_v6, %v10694_v23 }
 0x1c4   :  { %v7401_v49 = vpop.xlane.xlu1 %1029  ;;  %10712 = vst [vmem:[#allocation25_spill] sm:$0xff] %v7551_v55  ;;  %v1390_v32 = vrot.slane %v7551_v55, %v7542_v14  ;;  %10718 = vst [vmem:[#allocation31_spill] sm:$0xff] %v7587_v51 }
 0x1c5   :  { %v7403_v60 = vpop.xlane.xlu0 %1032  ;;  %v7566_v38 = vadd.f32 %v7393_v52, %v7401_v49  ;;  %10717 = vst [vmem:[#allocation30_spill] sm:$0xff] %v7581_v40  ;;  %v1414_v49 = vadd.s32 4294967200, %v7442_v25  ;;  %v1385_v6 = vsel %vm10542_vm9, %v1383_v2, %v1378_v7  ;;  %v1428_v2 = vadd.s32 4294967184, %v7442_v25 }
 0x1c6   :  { %v7578_v16 = vadd.f32 %v7393_v52, %v7403_v60  ;;  %v1392_v0 = vsel %vm10543_vm10, %v1390_v32, %v1385_v6 }
 0x1c7   :  { %10714 = vst [vmem:[#allocation27_spill] sm:$0xff] %v7566_v38  ;;  %v1397_v24 = vrot.slane %v7566_v38, %v7558_v37  ;;  %v7622_v7 = vsub.s32 %v1414_v49, %v10694_v23 }
 0x1c8   :  { %v7405_v10 = vpop.xlane.xlu1 %1035  ;;  %10716 = vst [vmem:[#allocation29_spill] sm:$0xff] %v7578_v16 }
 0x1c9   :  { %v7407_v27 = vpop.xlane.xlu0 %1038  ;;  %v7602_v55 = vadd.f32 %v7393_v52, %v7405_v10  ;;  %10725 = vst [vmem:[#allocation38_spill] sm:$0xff] %v7622_v7 }
 0x1cb   :  { %10721 = vst [vmem:[#allocation34_spill] sm:$0xff] %v7602_v55 }
 0x1cc   :  { %v7409_v36 = vpop.xlane.xlu1 %1041 }
 0x1cd   :  { %v7411_v46 = vpop.xlane.xlu0 %1044 }
 0x1d0   :  { %v7413_v62 = vpop.xlane.xlu1 %1047 }
 0x1d1   :  { %v7415_v3 = vpop.xlane.xlu0 %1050 }
 0x1d2   :  { %v7595_v60 = vadd.f32 %v7393_v52, %v7415_v3  ;;  %v1404_v3 = vrot.slane %v7578_v16, %v7574_v43 }
 0x1d4   :  { %v7417_v18 = vpop.xlane.xlu1 %1053  ;;  %10720 = vst [vmem:[#allocation33_spill] sm:$0xff] %v7595_v60  ;;  %v1445_v49 = vrot.slane %v7595_v60, %v7462_v30 }
 0x1d5   :  { %v7419_v48 = vpop.xlane.xlu0 %1056  ;;  %v7591_v1 = vadd.f32 %v7393_v52, %v7417_v18 }
 0x1d6   :  { %v7606_v8 = vadd.f32 %v7393_v52, %v7419_v48  ;;  %v1435_v48 = vadd.s32 4294967176, %v7442_v25  ;;  %v1411_v25 = vrot.slane %v7602_v55, %v7581_v40 }
 0x1d7   :  { %10719 = vst [vmem:[#allocation32_spill] sm:$0xff] %v7591_v1 }
 0x1d8   :  { %v7421_v5 = vpop.xlane.xlu1 %1059  ;;  %10722 = vst [vmem:[#allocation35_spill] sm:$0xff] %v7606_v8  ;;  %v1454_v11 = vrot.slane %v7606_v8, %v7475_v34 }
 0x1d9   :  { %v7423_v21 = vpop.xlane.xlu0 %1062  ;;  %v7642_v16 = vadd.f32 %v7393_v52, %v7421_v5 }
 0x1dc   :  { %v7425_v57 = vpop.xlane.xlu1 %1065 }
 0x1dd   :  { %v7427_v50 = vpop.xlane.xlu0 %1068 }
 0x1e0   :  { %v7429_v53 = vpop.xlane.xlu1 %1071 }
 0x1e1   :  { %v7431_v56 = vpop.xlane.xlu0 %1074 }
 0x1e4   :  { %v7433_v63 = vpop.xlane.xlu1 %1077 }
 0x1e5   :  { %v7435_v22 = vpop.xlane.xlu0 %1080 }
 0x1e8   :  { %v7437_v31 = vpop.xlane.xlu1 %1083 }
 0x1e9   :  { %v7439_v59 = vpop.xlane.xlu0 %1086 }
 0x1ec   :  { %v7444_v42 = vpop.xlane.xlu1 %1089 }
 0x1ee   :  { %v7447_v26 = vpop.xlane.xlu0 %1092 }
 0x1f0   :  { %v7449_v44 = vpop.xlane.xlu1 %1095 }
 0x1f2   :  { %v7457_v33 = vpop.xlane.xlu0 %1098 }
 0x1f3   :  { %v7619_v10 = vadd.f32 %v7393_v52, %v7457_v33  ;;  %v1449_v33 = vrot.slane %v7591_v1, %v7452_v28 }
 0x1f4   :  { %v7467_v47 = vpop.xlane.xlu1 %1101 }
 0x1f5   :  { %v7615_v38 = vadd.f32 %v7393_v52, %v7467_v47  ;;  %10724 = vst [vmem:[#allocation37_spill] sm:$0xff] %v7619_v10  ;;  %v7634_v47 = vadd.f32 %v7393_v52, %v7407_v27  ;;  %v7651_v27 = vadd.f32 %v7393_v52, %v7423_v21  ;;  %v1524_v13 = vrot.slane %v7619_v10, %v7462_v30 }
 0x1f6   :  { %v7472_v15 = vpop.xlane.xlu0 %1104  ;;  %v7668_v21 = vsub.s32 %v1428_v2, %v10694_v23  ;;  %v7680_v10 = vadd.f32 %v7393_v52, %v7409_v36  ;;  %v1459_v2 = vrot.slane %v7642_v16, %v7487_v17 }
 0x1f7   :  { %10723 = vst [vmem:[#allocation36_spill] sm:$0xff] %v7615_v38  ;;  %v7628_v32 = vadd.f32 %v7393_v52, %v7472_v15  ;;  %v1399_v15 = vsel %vm1398_vm11, %v1397_v24, %v1392_v0  ;;  %v1528_v5 = vrot.slane %v7615_v38, %v7452_v28  ;;  %v7665_v24 = vsub.s32 %v1435_v48, %v10694_v23 }
 0x1f8   :  { %v7483_v45 = vpop.xlane.xlu1 %1107  ;;  %v1406_v60 = vsel %vm1405_vm12, %v1404_v3, %v1399_v15  ;;  %10728 = vst [vmem:[#allocation41_spill] sm:$0xff] %v7668_v21  ;;  %v1450_v48 = vsel %vm1342_vm3, %v1449_v33, %v1445_v49  ;;  %v1464_v36 = vrot.slane %v7651_v27, %v7498_v41 }
 0x1f9   :  { %10726 = vst [vmem:[#allocation39_spill] sm:$0xff] %v7628_v32  ;;  %v7662_v0 = vadd.f32 %v7393_v52, %v7483_v45  ;;  %10727 = vst [vmem:[#allocation40_spill] sm:$0xff] %v7665_v24  ;;  %v1533_v8 = vrot.slane %v7628_v32, %v7475_v34  ;;  %v1418_v45 = vrot.slane %v7634_v47, %v7622_v7 }
 0x1fa   :  { %v7493_v19 = vpop.xlane.xlu0 %1110  ;;  %v1413_v32 = vsel %vm1412_vm13, %v1411_v25, %v1406_v60  ;;  %v1455_v38 = vsel %vm1349_vm4, %v1454_v11, %v1450_v48  ;;  %v1529_v55 = vsel %vm1342_vm3, %v1528_v5, %v1524_v13 }
 0x1fb   :  { %v7674_v3 = vadd.f32 %v7393_v52, %v7493_v19  ;;  %v7691_v19 = vadd.f32 %v7393_v52, %v7425_v57  ;;  %v1538_v33 = vrot.slane %v7662_v0, %v7487_v17  ;;  %v7707_v57 = vadd.f32 %v7393_v52, %v7427_v50 }
 0x1fc   :  { %v7504_v20 = vpop.xlane.xlu1 %1113  ;;  %v1534_v11 = vsel %vm1349_vm4, %v1533_v8, %v1529_v55  ;;  %v1460_v50 = vsel %vm1356_vm5, %v1459_v2, %v1455_v38 }
 0x1fd   :  { %v7700_v49 = vadd.f32 %v7393_v52, %v7504_v20  ;;  %v1543_v25 = vrot.slane %v7674_v3, %v7498_v41  ;;  %v7717_v20 = vsel %vm10473_vm14, %v1418_v45, %v1413_v32  ;;  %v1469_v55 = vrot.slane %v7691_v19, %v7508_v9 }
 0x1fe   :  { %v7517_v4 = vpop.xlane.xlu0 %1116  ;;  %v1465_v8 = vsel %vm1363_vm6, %v1464_v36, %v1460_v50  ;;  %v1539_v38 = vsel %vm1356_vm5, %v1538_v33, %v1534_v11  ;;  %v1474_v36 = vrot.slane %v7707_v57, %v7522_v39 }
 0x1ff   :  { %v7714_v13 = vadd.f32 %v7393_v52, %v7517_v4  ;;  %v7732_v4 = vadd.f32 %v7393_v52, %v7429_v53  ;;  %v1544_v53 = vsel %vm1363_vm6, %v1543_v25, %v1539_v38  ;;  %v1470_v38 = vsel %vm1370_vm7, %v1469_v55, %v1465_v8 }
 0x200   :  { %v7529_v35 = vpop.xlane.xlu1 %1119 }
 0x201   :  { %10730 = vst [vmem:[#allocation43_spill] sm:$0xff] %v7714_v13  ;;  %v7749_v50 = vadd.f32 %v7393_v52, %v7529_v35  ;;  %v1479_v35 = vrot.slane %v7732_v4, %v7535_v54 }
 0x202   :  { %v7544_v12 = vpop.xlane.xlu0 %1122 }
 0x203   :  { %v7757_v11 = vadd.f32 %v7393_v52, %v7544_v12  ;;  %v1558_v55 = vrot.slane %v7749_v50, %v7535_v54 }
 0x204   :  { %v7555_v58 = vpop.xlane.xlu1 %1125 }
 0x205   :  { %v7785_v8 = vadd.f32 %v7393_v52, %v7555_v58  ;;  %v7804_v58 = vadd.f32 %v7393_v52, %v7433_v63  ;;  %v7818_v63 = vadd.f32 %v7393_v52, %v7435_v22 }
 0x206   :  { %v7568_v29 = vpop.xlane.xlu0 %1128 }
 0x208   :  { %v7584_v61 = vpop.xlane.xlu1 %1131 }
 0x20a   :  { %v7608_v18 = vpop.xlane.xlu0 %1134 }
 0x20c   :  { %v7630_v6 = vpop.xlane.xlu1 %1137 }
 0x20e   :  { %v7653_v1 = vpop.xlane.xlu0 %1140 }
 0x210   :  { %v7676_v15 = vpop.xlane.xlu1 %1143 }
 0x212   :  { %v1147_v23 = vpop.xlane.xlu0 %1146 }
 0x213   :  { %v7703_v60 = vadd.f32 %v7393_v52, %v1147_v23  ;;  %v7721_v23 = vadd.f32 %v7393_v52, %v7411_v46  ;;  %v1548_v46 = vrot.slane %v7700_v49, %v7508_v9 }
 0x214   :  { %v1150_v5 = vpop.xlane.xlu1 %1149 }
 0x215   :  { %10729 = vst [vmem:[#allocation42_spill] sm:$0xff] %v7703_v60  ;;  %v7725_v48 = vadd.f32 %v7393_v52, %v1150_v5  ;;  %v1603_v32 = vrot.slane %v7703_v60, %v7462_v30  ;;  %v1553_v30 = vrot.slane %v7714_v13, %v7522_v39  ;;  %v1549_v12 = vsel %vm1370_vm7, %v1548_v46, %v1544_v53 }
 0x216   :  { %v1153_v45 = vpop.xlane.xlu0 %1152  ;;  %v1563_v46 = vrot.slane %v7757_v11, %v7542_v14 }
 0x217   :  { %10731 = vst [vmem:[#allocation44_spill] sm:$0xff] %v7725_v48  ;;  %v1607_v2 = vrot.slane %v7725_v48, %v7452_v28  ;;  %v7742_v5 = vadd.f32 %v7393_v52, %v1153_v45  ;;  %v7769_v28 = vadd.f32 %v7393_v52, %v7431_v56  ;;  %v1554_v56 = vsel %vm1377_vm8, %v1553_v30, %v1549_v12 }
 0x218   :  { %v1156_v60 = vpop.xlane.xlu1 %1155  ;;  %v7800_v30 = vadd.f32 %v7393_v52, %v7413_v62 }
 0x219   :  { %10732 = vst [vmem:[#allocation45_spill] sm:$0xff] %v7742_v5  ;;  %v7760_v45 = vadd.f32 %v7393_v52, %v1156_v60  ;;  %v1612_v25 = vrot.slane %v7742_v5, %v7475_v34  ;;  %v1608_v33 = vsel %vm1342_vm3, %v1607_v2, %v1603_v32  ;;  %v1475_v5 = vsel %vm1377_vm8, %v1474_v36, %v1470_v38 }
 0x21a   :  { %v1159_v48 = vpop.xlane.xlu0 %1158  ;;  %v7791_v2 = vadd.f32 %v7393_v52, %v7568_v29  ;;  %v1484_v53 = vrot.slane %v7769_v28, %v7542_v14 }
 0x21b   :  { %v1617_v60 = vrot.slane %v7760_v45, %v7487_v17  ;;  %v1613_v13 = vsel %vm1349_vm4, %v1612_v25, %v1608_v33  ;;  %v7777_v34 = vadd.f32 %v7393_v52, %v1159_v48  ;;  %v1480_v25 = vsel %vm10542_vm9, %v1479_v35, %v1475_v5 }
 0x21c   :  { %v1162_v32 = vpop.xlane.xlu1 %1161  ;;  %v7825_v5 = vadd.f32 %v7393_v52, %v7584_v61  ;;  %v7840_v61 = vadd.f32 %v7393_v52, %v7608_v18  ;;  %v1494_v18 = vrot.slane %v7818_v63, %v7574_v43 }
 0x21d   :  { %v7794_v48 = vadd.f32 %v7393_v52, %v1162_v32  ;;  %v1622_v36 = vrot.slane %v7777_v34, %v7498_v41  ;;  %v1618_v29 = vsel %vm1356_vm5, %v1617_v60, %v1613_v13  ;;  %v1568_v32 = vrot.slane %v7785_v8, %v7558_v37 }
 0x21e   :  { %v1165_v33 = vpop.xlane.xlu0 %1164  ;;  %v1559_v13 = vsel %vm10542_vm9, %v1558_v55, %v1554_v56  ;;  %v1485_v55 = vsel %vm10543_vm10, %v1484_v53, %v1480_v25  ;;  %v7857_v53 = vadd.f32 %v7393_v52, %v7439_v59  ;;  %v1439_v41 = vrot.slane %v7800_v30, %v7665_v24 }
 0x21f   :  { %v1627_v38 = vrot.slane %v7794_v48, %v7508_v9  ;;  %v1623_v12 = vsel %vm1363_vm6, %v1622_v36, %v1618_v29  ;;  %v7814_v62 = vadd.f32 %v7393_v52, %v1165_v33  ;;  %v1564_v60 = vsel %vm10543_vm10, %v1563_v46, %v1559_v13 }
 0x220   :  { %v1168_v35 = vpop.xlane.xlu1 %1167  ;;  %v1573_v36 = vrot.slane %v7791_v2, %v7574_v43  ;;  %v1489_v33 = vrot.slane %v7804_v58, %v7558_v37  ;;  %v7845_v13 = vadd.f32 %v7393_v52, %v7437_v31  ;;  %v1578_v31 = vrot.slane %v7825_v5, %v7581_v40 }
 0x221   :  { %v7831_v29 = vadd.f32 %v7393_v52, %v1168_v35  ;;  %v1632_v22 = vrot.slane %v7814_v62, %v7522_v39  ;;  %v1628_v56 = vsel %vm1370_vm7, %v1627_v38, %v1623_v12  ;;  %v1569_v25 = vsel %vm1398_vm11, %v1568_v32, %v1564_v60 }
 0x222   :  { %v1171_v46 = vpop.xlane.xlu0 %1170  ;;  %v1574_v12 = vsel %vm1405_vm12, %v1573_v36, %v1569_v25  ;;  %v1490_v59 = vsel %vm1398_vm11, %v1489_v33, %v1485_v55  ;;  %v7877_v32 = vadd.f32 %v7393_v52, %v7653_v1  ;;  %v1499_v36 = vrot.slane %v7845_v13, %v7581_v40 }
 0x223   :  { %v1637_v35 = vrot.slane %v7831_v29, %v7535_v54  ;;  %v1633_v9 = vsel %vm1377_vm8, %v1632_v22, %v1628_v56  ;;  %v7851_v39 = vadd.f32 %v7393_v52, %v1171_v46  ;;  %v7865_v22 = vadd.f32 %v7393_v52, %v7630_v6 }
 0x224   :  { %v1174_v38 = vpop.xlane.xlu1 %1173  ;;  %v1583_v54 = vrot.slane %v7840_v61, %v7622_v7  ;;  %v1495_v55 = vsel %vm1405_vm12, %v1494_v18, %v1490_v59  ;;  %v7891_v1 = vadd.f32 %v7393_v52, %v7444_v42  ;;  %v7909_v18 = vadd.f32 %v7393_v52, %v7447_v26 }
 0x225   :  { %v7868_v56 = vadd.f32 %v7393_v52, %v1174_v38  ;;  %v1642_v46 = vrot.slane %v7851_v39, %v7542_v14  ;;  %v1638_v60 = vsel %vm10542_vm9, %v1637_v35, %v1633_v9  ;;  %v1504_v9 = vrot.slane %v7857_v53, %v7622_v7 }
 0x226   :  { %v1177_v6 = vpop.xlane.xlu0 %1176  ;;  %v1579_v35 = vsel %vm1412_vm13, %v1578_v31, %v1574_v12  ;;  %v1593_v12 = vrot.slane %v7877_v32, %v7668_v21  ;;  %v1432_v26 = vrot.slane %v7721_v23, %v7668_v21 }
 0x227   :  { %v1647_v25 = vrot.slane %v7868_v56, %v7558_v37  ;;  %v1643_v38 = vsel %vm10543_vm10, %v1642_v46, %v1638_v60  ;;  %v7886_v33 = vadd.f32 %v7393_v52, %v1177_v6  ;;  %v1588_v37 = vrot.slane %v7865_v22, %v7587_v51 }
 0x228   :  { %v1180_v14 = vpop.xlane.xlu1 %1179  ;;  %v7900_v46 = vadd.f32 %v7393_v52, %v7676_v15  ;;  %v1584_v31 = vsel %vm10473_vm14, %v1583_v54, %v1579_v35  ;;  %v1500_v15 = vsel %vm1412_vm13, %v1499_v36, %v1495_v55  ;;  %v1509_v54 = vrot.slane %v7891_v1, %v7587_v51 }
 0x229   :  { %v7903_v60 = vadd.f32 %v7393_v52, %v1180_v14  ;;  %v1652_v42 = vrot.slane %v7886_v33, %v7574_v43  ;;  %v1648_v59 = vsel %vm1398_vm11, %v1647_v25, %v1643_v38  ;;  %v1505_v35 = vsel %vm10473_vm14, %v1504_v9, %v1500_v15 }
 0x22a   :  { %v1183_v6 = vpop.xlane.xlu0 %1182  ;;  %v7929_v25 = vadd.f32 %v7393_v52, %v7449_v44  ;;  %v1598_v38 = vrot.slane %v7900_v46, %v7665_v24  ;;  %v10734_v44 = vrot.slane %v7680_v10, %v7587_v51 }
 0x22b   :  { %v1657_v14 = vrot.slane %v7903_v60, %v7581_v40  ;;  %v1653_v17 = vsel %vm1405_vm12, %v1652_v42, %v1648_v59  ;;  %v7920_v43 = vadd.f32 %v7393_v52, %v1183_v6  ;;  %v1589_v59 = vsel %vm1426_vm15, %v1588_v37, %v1584_v31 }
 0x22c   :  { %v1186_v36 = vpop.xlane.xlu1 %1185  ;;  %v1514_v6 = vrot.slane %v7909_v18, %v7668_v21  ;;  %v1427_v40 = vsel %vm1426_vm15, %v10734_v44, %v7717_v20  ;;  %v1519_v20 = vrot.slane %v7929_v25, %v7665_v24 }
 0x22d   :  { %10733 = vst [vmem:[#allocation46_spill] sm:$0xff] %v7920_v43  ;;  %v7934_v55 = vadd.f32 %v7393_v52, %v1186_v36  ;;  %v1662_v42 = vrot.slane %v7920_v43, %v7622_v7  ;;  %v1658_v9 = vsel %vm1412_vm13, %v1657_v14, %v1653_v17  ;;  %v1594_v36 = vsel %vm1433_vm1, %v1593_v12, %v1589_v59 }
 0x22e   :  { %v1189_v15 = vpop.xlane.xlu0 %1188  ;;  %v1434_v14 = vsel %vm1433_vm1, %v1432_v26, %v1427_v40  ;;  %v1510_v43 = vsel %vm1426_vm15, %v1509_v54, %v1505_v35 }
 0x22f   :  { %v1667_v37 = vrot.slane %v7934_v55, %v7587_v51  ;;  %v1663_v31 = vsel %vm10473_vm14, %v1662_v42, %v1658_v9  ;;  %v7954_v7 = vadd.f32 %v7393_v52, %v1189_v15  ;;  %v1599_v42 = vsel %vm1440_vm2, %v1598_v38, %v1594_v36 }
 0x230   :  { %v1192_v17 = vpop.xlane.xlu1 %1191  ;;  %v1515_v9 = vsel %vm1433_vm1, %v1514_v6, %v1510_v43  ;;  %v1441_v26 = vsel %vm1440_vm2, %v1439_v41, %v1434_v14  ;;  %vm1684_vm14 = vcmask 1041408   ;;  %v10735_v41 = vld [vmem:[#allocation14_spill] sm:$0xff] }
 0x231   :  { %v7961_v12 = vadd.f32 %v7393_v52, %v1192_v17  ;;  %v1672_v59 = vrot.slane %v7954_v7, %v7668_v21  ;;  %v1668_v15 = vsel %vm1426_vm15, %v1667_v37, %v1663_v31  ;;  %v1680_v35 = vsel %vm1679_vm0, %v1599_v42, %v1441_v26  ;;  %v10736_v17 = vld [vmem:[#allocation9_spill] sm:$0xff]  ;;  %v10738_v42 = vld [vmem:[#allocation23_spill] sm:$0xff] }
 0x232   :  { %v1520_v52 = vsel %vm1440_vm2, %v1519_v20, %v1515_v9  ;;  %v1685_v43 = vsel %vm1684_vm14, %v1680_v35, -inf  ;;  %v10737_v20 = vld [vmem:[#allocation7_spill] sm:$0xff] }
 0x233   :  { %v1677_v40 = vrot.slane %v7961_v12, %v7665_v24  ;;  %v1673_v54 = vsel %vm1433_vm1, %v1672_v59, %v1668_v15 }
 0x235   :  { %v1678_v44 = vsel %vm1440_vm2, %v1677_v40, %v1673_v54  ;;  %v10739_v40 = vld [vmem:[#allocation12_spill] sm:$0xff] }
 0x236   :  { %v1681_v38 = vsel %vm1679_vm0, %v1678_v44, %v1520_v52  ;;  %v10740_v52 = vld [vmem:[#allocation27_spill] sm:$0xff] }
 0x237   :  { %v1686_v6 = vsel %vm1684_vm14, %v1681_v38, -inf  ;;  %v10741_v38 = vld [vmem:[#allocation15_spill] sm:$0xff] }
 0x238   :  { %v1687_v36 = vmax.f32 %v1685_v43, %v1686_v6 }
 0x23a   :  { %1688 = vmax.xlane.f32.xlu1 %v1687_v36  ;;  %v10742_v36 = vld [vmem:[#allocation34_spill] sm:$0xff] }
 0x2c3   :  { %v7978_v37 = vpop.xlane.xlu1 %1688 }
 0x2c4   :  { %v7982_v31 = vrot.slane %v7978_v37, %v10735_v41 }
 0x2c6   :  { %v1701_v14 = vsub.f32 %v10736_v17, %v7982_v31  ;;  %v1702_v59 = vsub.f32 %v10737_v20, %v7982_v31  ;;  %v1708_v9 = vsub.f32 %v10738_v42, %v7982_v31  ;;  %v1703_v26 = vsub.f32 %v10739_v40, %v7982_v31 }
 0x2c7   :  { %v1710_v44 = vsub.f32 %v10740_v52, %v7982_v31  ;;  %v1704_v43 = vsub.f32 %v10741_v38, %v7982_v31  ;;  %v1712_v17 = vsub.f32 %v10742_v36, %v7982_v31 }
 0x2c8   :  { %v1765_v15 = vmul.f32 1.442695, %v1701_v14  ;;  %v1767_v54 = vmul.f32 1.442695, %v1702_v59  ;;  %v1779_v35 = vmul.f32 1.442695, %v1708_v9  ;;  %v1714_v59 = vsub.f32 %v7680_v10, %v7982_v31 }
 0x2c9   :  { %v1769_v6 = vmul.f32 1.442695, %v1703_v26  ;;  %v1783_v20 = vmul.f32 1.442695, %v1710_v44  ;;  %v10743_v14 = vld [vmem:[#allocation17_spill] sm:$0xff] }
 0x2ca   :  { %6180 = vpow2.f32 %v1765_v15  ;;  %v1705_v42 = vsub.f32 %v10743_v14, %v7982_v31  ;;  %v1771_v40 = vmul.f32 1.442695, %v1704_v43  ;;  %v1787_v9 = vmul.f32 1.442695, %v1712_v17  ;;  %v10744_v15 = vld [vmem:[#allocation19_spill] sm:$0xff]  ;;  %v10747_v10 = vld [vmem:[#allocation21_spill] sm:$0xff] }
 0x2cb   :  { %6182 = vpow2.f32 %v1779_v35  ;;  %v1706_v35 = vsub.f32 %v10744_v15, %v7982_v31  ;;  %v1791_v44 = vmul.f32 1.442695, %v1714_v59  ;;  %v1707_v43 = vsub.f32 %v10747_v10, %v7982_v31  ;;  %v10749_v17 = vld [vmem:[#allocation32_spill] sm:$0xff] }
 0x2cc   :  { %6184 = vpow2.f32 %v1767_v54  ;;  %v1773_v52 = vmul.f32 1.442695, %v1705_v42  ;;  %v1716_v54 = vsub.f32 %v7800_v30, %v7982_v31  ;;  %v10750_v30 = vld [vmem:[#allocation25_spill] sm:$0xff] }
 0x2cd   :  { %6186 = vpow2.f32 %v1769_v6  ;;  %v1775_v6 = vmul.f32 1.442695, %v1706_v35  ;;  %v1709_v42 = vsub.f32 %v10750_v30, %v7982_v31  ;;  %v1724_v30 = vsub.f32 %v7732_v4, %v7982_v31 }
 0x2ce   :  { %6188 = vpow2.f32 %v1783_v20  ;;  %v1718_v20 = vsub.f32 %v10749_v17, %v7982_v31  ;;  %v1795_v14 = vmul.f32 1.442695, %v1716_v54  ;;  %v1713_v17 = vsub.f32 %v7634_v47, %v7982_v31 }
 0x2cf   :  { %6190 = vpow2.f32 %v1771_v40  ;;  %v1777_v40 = vmul.f32 1.442695, %v1707_v43  ;;  %v1722_v43 = vsub.f32 %v7691_v19, %v7982_v31 }
 0x2d0   :  { %6192 = vpow2.f32 %v1787_v9  ;;  %v1720_v9 = vsub.f32 %v7642_v16, %v7982_v31  ;;  %v1799_v15 = vmul.f32 1.442695, %v1718_v20 }
 0x2d1   :  { %6194 = vpow2.f32 %v1773_v52  ;;  %v10753_v52 = vld [vmem:[#allocation29_spill] sm:$0xff] }
 0x2d2   :  { %6196 = vpow2.f32 %v1791_v44  ;;  %v1711_v54 = vsub.f32 %v10753_v52, %v7982_v31  ;;  %v1781_v44 = vmul.f32 1.442695, %v1709_v42  ;;  %v1807_v42 = vmul.f32 1.442695, %v1722_v43 }
 0x2d3   :  { %6198 = vpow2.f32 %v1775_v6  ;;  %v1803_v6 = vmul.f32 1.442695, %v1720_v9  ;;  %v1789_v9 = vmul.f32 1.442695, %v1713_v17  ;;  %v1811_v52 = vmul.f32 1.442695, %v1724_v30 }
 0x2d4   :  { %6200 = vpow2.f32 %v1795_v14  ;;  %v1785_v20 = vmul.f32 1.442695, %v1711_v54  ;;  %v10760_v54 = vld [vmem:[#allocation33_spill] sm:$0xff] }
 0x2d5   :  { %6202 = vpow2.f32 %v1777_v40  ;;  %v1715_v40 = vsub.f32 %v7721_v23, %v7982_v31 }
 0x2d6   :  { %6204 = vpow2.f32 %v1799_v15  ;;  %v1726_v15 = vsub.f32 %v7804_v58, %v7982_v31 }
 0x2d7   :  { %v8004_v26 = vpop.eup %6180  ;;  %6206 = vpow2.f32 %v1781_v44  ;;  %v1717_v44 = vsub.f32 %v10760_v54, %v7982_v31  ;;  %v1793_v43 = vmul.f32 1.442695, %v1715_v40 }
 0x2d8   :  { %10745 = vst [vmem:[#allocation9_spill] sm:$0xff] %v8004_v26  ;;  %1958 = vperm.xlu1 %6051, %v8004_v26   ;;  %v8009_v38 = vpop.eup %6182  ;;  %6208 = vpow2.f32 %v1803_v6  ;;  %v1728_v6 = vsub.f32 %v7845_v13, %v7982_v31  ;;  %v1815_v17 = vmul.f32 1.442695, %v1726_v15  ;;  %v1730_v13 = vsub.f32 %v7891_v1, %v7982_v31 }
 0x2d9   :  { %10746 = vst [vmem:[#allocation7_spill] sm:$0xff] %v8009_v38  ;;  %1979 = vperm.xlu0 %6050, %v8009_v38   ;;  %v8014_v36 = vpop.eup %6184  ;;  %6210 = vpow2.f32 %v1785_v20  ;;  %v10763_v20 = vld [vmem:[#allocation35_spill] sm:$0xff]  ;;  %v1732_v1 = vsub.f32 %v7929_v25, %v7982_v31 }
 0x2da   :  { %10748 = vst [vmem:[#allocation23_spill] sm:$0xff] %v8014_v36  ;;  %v8021_v59 = vpop.eup %6186  ;;  %6212 = vpow2.f32 %v1807_v42  ;;  %v1719_v30 = vsub.f32 %v10763_v20, %v7982_v31  ;;  %v1797_v42 = vmul.f32 1.442695, %v1717_v44  ;;  %v1819_v15 = vmul.f32 1.442695, %v1728_v6 }
 0x2db   :  { %10751 = vst [vmem:[#allocation12_spill] sm:$0xff] %v8021_v59  ;;  %v8025_v35 = vpop.eup %6188  ;;  %6214 = vpow2.f32 %v1789_v9  ;;  %v10765_v9 = vld [vmem:[#allocation11_spill] sm:$0xff]  ;;  %v1721_v20 = vsub.f32 %v7651_v27, %v7982_v31  ;;  %v1823_v6 = vmul.f32 1.442695, %v1730_v13  ;;  %v1723_v27 = vsub.f32 %v7707_v57, %v7982_v31 }
 0x2dc   :  { %1961 = vperm.xlu1 %6051, %v8014_v36   ;;  %10752 = vst [vmem:[#allocation27_spill] sm:$0xff] %v8025_v35  ;;  %v8031_v10 = vpop.eup %6190  ;;  %6216 = vpow2.f32 %v1811_v52  ;;  %v10475_v54 = vsub.s32 1, %v10765_v9  ;;  %v1801_v44 = vmul.f32 1.442695, %v1719_v30  ;;  %v1725_v13 = vsub.f32 %v7769_v28, %v7982_v31 }
 0x2dd   :  { %1985 = vperm.xlu0 %6050, %v8025_v35   ;;  %10754 = vst [vmem:[#allocation15_spill] sm:$0xff] %v8031_v10  ;;  %v8035_v16 = vpop.eup %6192  ;;  %6218 = vpow2.f32 %v1793_v43  ;;  %v1805_v30 = vmul.f32 1.442695, %v1721_v20 }
 0x2de   :  { %10755 = vst [vmem:[#allocation34_spill] sm:$0xff] %v8035_v16  ;;  %v8041_v14 = vpop.eup %6194  ;;  %6220 = vpow2.f32 %v1815_v17 }
 0x2df   :  { %10756 = vst [vmem:[#allocation17_spill] sm:$0xff] %v8041_v14  ;;  %v8045_v19 = vpop.eup %6196  ;;  %6222 = vpow2.f32 %v1797_v42 }
 0x2e0   :  { %1964 = vperm.xlu1 %6051, %v8021_v59   ;;  %10757 = vst [vmem:[#allocation19_spill] sm:$0xff] %v8045_v19  ;;  %v8051_v47 = vpop.eup %6198  ;;  %6224 = vpow2.f32 %v1819_v15  ;;  %v1809_v15 = vmul.f32 1.442695, %v1723_v27 }
 0x2e1   :  { %1991 = vperm.xlu0 %6050, %v8035_v16   ;;  %10758 = vst [vmem:[#allocation21_spill] sm:$0xff] %v8051_v47  ;;  %v8055_v4 = vpop.eup %6200  ;;  %6226 = vpow2.f32 %v1801_v44  ;;  %v10828_v16 = vld [vmem:[#allocation8_spill] sm:$0xff] }
 0x2e2   :  { %10759 = vst [vmem:[#allocation32_spill] sm:$0xff] %v8055_v4  ;;  %v8061_v23 = vpop.eup %6202  ;;  %6228 = vpow2.f32 %v1823_v6  ;;  %v1727_v6 = vsub.f32 %v7818_v63, %v7982_v31 }
 0x2e3   :  { %10761 = vst [vmem:[#allocation25_spill] sm:$0xff] %v8061_v23  ;;  %v8065_v58 = vpop.eup %6204  ;;  %6230 = vpow2.f32 %v1805_v30 }
 0x2e4   :  { %1967 = vperm.xlu1 %6051, %v8031_v10   ;;  %10762 = vst [vmem:[#allocation29_spill] sm:$0xff] %v8065_v58  ;;  %v8071_v40 = vpop.eup %6206 }
 0x2e5   :  { %1997 = vperm.xlu0 %6050, %v8045_v19   ;;  %10764 = vst [vmem:[#allocation33_spill] sm:$0xff] %v8071_v40  ;;  %v8076_v52 = vpop.eup %6208 }
 0x2e6   :  { %10766 = vst [vmem:[#allocation35_spill] sm:$0xff] %v8076_v52  ;;  %v8082_v43 = vpop.eup %6210 }
 0x2e7   :  { %10767 = vst [vmem:[#allocation47_spill] sm:$0xff] %v8082_v43  ;;  %v8091_v17 = vpop.eup %6212 }
 0x2e8   :  { %1970 = vperm.xlu1 %6051, %v8041_v14   ;;  %10768 = vst [vmem:[#allocation48_spill] sm:$0xff] %v8091_v17  ;;  %v8097_v42 = vpop.eup %6214 }
 0x2e9   :  { %2003 = vperm.xlu0 %6050, %v8055_v4   ;;  %10769 = vst [vmem:[#allocation49_spill] sm:$0xff] %v8097_v42  ;;  %v8101_v25 = vpop.eup %6216 }
 0x2ea   :  { %v8107_v57 = vpop.eup %6218 }
 0x2eb   :  { %10772 = vst [vmem:[#allocation50_spill] sm:$0xff] %v8107_v57 }
 0x2ec   :  { %1973 = vperm.xlu1 %6051, %v8051_v47   ;;  %v10830_v47 = vld [vmem:[#allocation6_spill] sm:$0xff] }
 0x2ed   :  { %2009 = vperm.xlu0 %6050, %v8065_v58   ;;  %v8087_v58 = vrot.slane %v7978_v37, %v10475_v54  ;;  %v10770_v37 = vld [vmem:[#allocation36_spill] sm:$0xff] }
 0x2ee   :  { %10771 = vst [vmem:[#allocation36_spill] sm:$0xff] %v8101_v25 }
 0x2ef   :  { %v1734_v54 = vsub.f32 %v10770_v37, %v8087_v58  ;;  %v1736_v20 = vsub.f32 %v7662_v0, %v8087_v58  ;;  %v1813_v37 = vmul.f32 1.442695, %v1725_v13  ;;  %v1738_v27 = vsub.f32 %v7700_v49, %v8087_v58 }
 0x2f0   :  { %1976 = vperm.xlu1 %6051, %v8061_v23   ;;  %v1740_v13 = vsub.f32 %v7749_v50, %v8087_v58  ;;  %v10829_v23 = vld [vmem:[#allocation10_spill] sm:$0xff] }
 0x2f1   :  { %2015 = vperm.xlu0 %6050, %v8076_v52   ;;  %v1827_v52 = vmul.f32 1.442695, %v1732_v1  ;;  %v1831_v44 = vmul.f32 1.442695, %v1734_v54  ;;  %v8111_v1 = vpop.eup %6220  ;;  %v1835_v30 = vmul.f32 1.442695, %v1736_v20  ;;  %v1729_v54 = vsub.f32 %v7857_v53, %v7982_v31 }
 0x2f2   :  { %10773 = vst [vmem:[#allocation51_spill] sm:$0xff] %v8111_v1  ;;  %v8117_v28 = vpop.eup %6222  ;;  %v1731_v20 = vsub.f32 %v7909_v18, %v7982_v31  ;;  %v1744_v31 = vsub.f32 %v7825_v5, %v8087_v58 }
 0x2f3   :  { %6232 = vpow2.f32 %v1827_v52  ;;  %10774 = vst [vmem:[#allocation52_spill] sm:$0xff] %v8117_v28  ;;  %v8121_v0 = vpop.eup %6224  ;;  %v1817_v52 = vmul.f32 1.442695, %v1727_v6  ;;  %v1742_v6 = vsub.f32 %v7785_v8, %v8087_v58 }
 0x2f4   :  { %1982 = vperm.xlu1 %6051, %v8071_v40   ;;  %6234 = vpow2.f32 %v1809_v15  ;;  %10775 = vst [vmem:[#allocation53_spill] sm:$0xff] %v8121_v0  ;;  %v8127_v63 = vpop.eup %6226  ;;  %v1839_v15 = vmul.f32 1.442695, %v1738_v27  ;;  %v10780_v27 = vld [vmem:[#allocation37_spill] sm:$0xff] }
 0x2f5   :  { %2021 = vperm.xlu0 %6050, %v8091_v17   ;;  %6236 = vpow2.f32 %v1831_v44  ;;  %10776 = vst [vmem:[#allocation54_spill] sm:$0xff] %v8127_v63  ;;  %v8131_v49 = vpop.eup %6228  ;;  %v1821_v44 = vmul.f32 1.442695, %v1729_v54  ;;  %v1847_v54 = vmul.f32 1.442695, %v1742_v6  ;;  %v1737_v6 = vsub.f32 %v7674_v3, %v8087_v58 }
 0x2f6   :  { %6238 = vpow2.f32 %v1813_v37  ;;  %10777 = vst [vmem:[#allocation55_spill] sm:$0xff] %v8131_v49  ;;  %v8137_v53 = vpop.eup %6230  ;;  %v1843_v37 = vmul.f32 1.442695, %v1740_v13 }
 0x2f7   :  { %6240 = vpow2.f32 %v1835_v30  ;;  %10778 = vst [vmem:[#allocation56_spill] sm:$0xff] %v8137_v53  ;;  %v1733_v30 = vsub.f32 %v10780_v27, %v8087_v58  ;;  %v1851_v27 = vmul.f32 1.442695, %v1744_v31  ;;  %v10788_v31 = vld [vmem:[#allocation43_spill] sm:$0xff] }
 0x2f8   :  { %1988 = vperm.xlu1 %6051, %v8082_v43   ;;  %6242 = vpow2.f32 %v1817_v52  ;;  %v10783_v52 = vld [vmem:[#allocation39_spill] sm:$0xff] }
 0x2f9   :  { %2027 = vperm.xlu0 %6050, %v8101_v25   ;;  %6244 = vpow2.f32 %v1839_v15  ;;  %v1735_v13 = vsub.f32 %v10783_v52, %v8087_v58  ;;  %v1829_v15 = vmul.f32 1.442695, %v1733_v30 }
 0x2fa   :  { %6246 = vpow2.f32 %v1821_v44  ;;  %v1746_v44 = vsub.f32 %v7865_v22, %v8087_v58 }
 0x2fb   :  { %6248 = vpow2.f32 %v1843_v37  ;;  %v1833_v37 = vmul.f32 1.442695, %v1735_v13  ;;  %v10790_v13 = vld [vmem:[#allocation44_spill] sm:$0xff] }
 0x2fc   :  { %1994 = vperm.xlu1 %6051, %v8097_v42   ;;  %v1855_v52 = vmul.f32 1.442695, %v1746_v44  ;;  %v1741_v44 = vsub.f32 %v7757_v11, %v8087_v58 }
 0x2fd   :  { %2033 = vperm.xlu0 %6050, %v8111_v1  }
 0x300   :  { %2000 = vperm.xlu1 %6051, %v8107_v57   ;;  %v8141_v50 = vpop.eup %6232 }
 0x301   :  { %2039 = vperm.xlu0 %6050, %v8121_v0   ;;  %10779 = vst [vmem:[#allocation57_spill] sm:$0xff] %v8141_v50  ;;  %v8147_v18 = vpop.eup %6234 }
 0x302   :  { %10781 = vst [vmem:[#allocation37_spill] sm:$0xff] %v8147_v18  ;;  %v8151_v8 = vpop.eup %6236 }
 0x303   :  { %10782 = vst [vmem:[#allocation58_spill] sm:$0xff] %v8151_v8 }
 0x304   :  { %2006 = vperm.xlu1 %6051, %v8117_v28  }
 0x305   :  { %2045 = vperm.xlu0 %6050, %v8131_v49   ;;  %v1825_v49 = vmul.f32 1.442695, %v1731_v20  ;;  %v8157_v20 = vpop.eup %6238 }
 0x306   :  { %10784 = vst [vmem:[#allocation39_spill] sm:$0xff] %v8157_v20  ;;  %v8161_v5 = vpop.eup %6240 }
 0x307   :  { %6250 = vpow2.f32 %v1825_v49  ;;  %10785 = vst [vmem:[#allocation59_spill] sm:$0xff] %v8161_v5  ;;  %v8167_v30 = vpop.eup %6242  ;;  %v1748_v49 = vsub.f32 %v7900_v46, %v8087_v58 }
 0x308   :  { %2012 = vperm.xlu1 %6051, %v8127_v63   ;;  %6252 = vpow2.f32 %v1847_v54  ;;  %10786 = vst [vmem:[#allocation60_spill] sm:$0xff] %v8167_v30  ;;  %v8171_v22 = vpop.eup %6244  ;;  %v1739_v54 = vsub.f32 %v10788_v31, %v8087_v58 }
 0x309   :  { %2051 = vperm.xlu0 %6050, %v8141_v50   ;;  %6254 = vpow2.f32 %v1829_v15  ;;  %10787 = vst [vmem:[#allocation61_spill] sm:$0xff] %v8171_v22  ;;  %v1837_v50 = vmul.f32 1.442695, %v1737_v6  ;;  %v8177_v3 = vpop.eup %6246  ;;  %v1750_v15 = vsub.f32 %v10790_v13, %v8087_v58  ;;  %v1845_v13 = vmul.f32 1.442695, %v1741_v44 }
 0x30a   :  { %6256 = vpow2.f32 %v1851_v27  ;;  %10789 = vst [vmem:[#allocation43_spill] sm:$0xff] %v8177_v3  ;;  %v8181_v46 = vpop.eup %6248  ;;  %v1841_v27 = vmul.f32 1.442695, %v1739_v54  ;;  %v1756_v44 = vsub.f32 %v7831_v29, %v8087_v58 }
 0x30b   :  { %6258 = vpow2.f32 %v1833_v37  ;;  %10791 = vst [vmem:[#allocation44_spill] sm:$0xff] %v8181_v46  ;;  %v1752_v37 = vsub.f32 %v7760_v45, %v8087_v58  ;;  %v1863_v31 = vmul.f32 1.442695, %v1750_v15 }
 0x30c   :  { %2018 = vperm.xlu1 %6051, %v8137_v53   ;;  %6260 = vpow2.f32 %v1855_v52  ;;  %v1743_v52 = vsub.f32 %v7791_v2, %v8087_v58 }
 0x30d   :  { %2057 = vperm.xlu0 %6050, %v8151_v8   ;;  %6262 = vpow2.f32 %v1837_v50  ;;  %v1754_v50 = vsub.f32 %v7794_v48, %v8087_v58  ;;  %v1867_v54 = vmul.f32 1.442695, %v1752_v37  ;;  %v1747_v37 = vsub.f32 %v7877_v32, %v8087_v58 }
 0x30e   :  { %v1849_v15 = vmul.f32 1.442695, %v1743_v52  ;;  %v1758_v52 = vsub.f32 %v7868_v56, %v8087_v58 }
 0x310   :  { %2024 = vperm.xlu1 %6051, %v8147_v18  }
 0x311   :  { %2063 = vperm.xlu0 %6050, %v8161_v5   ;;  %v1859_v5 = vmul.f32 1.442695, %v1748_v49 }
 0x313   :  { %6264 = vpow2.f32 %v1859_v5  ;;  %v1745_v5 = vsub.f32 %v7840_v61, %v8087_v58 }
 0x314   :  { %2030 = vperm.xlu1 %6051, %v8157_v20   ;;  %v8187_v6 = vpop.eup %6250  ;;  %6266 = vpow2.f32 %v1841_v27  ;;  %v1871_v27 = vmul.f32 1.442695, %v1754_v50  ;;  %v10800_v50 = vld [vmem:[#allocation42_spill] sm:$0xff] }
 0x315   :  { %2069 = vperm.xlu0 %6050, %v8171_v22   ;;  %10792 = vst [vmem:[#allocation62_spill] sm:$0xff] %v8187_v6  ;;  %v8191_v49 = vpop.eup %6252  ;;  %6268 = vpow2.f32 %v1863_v31  ;;  %v1853_v31 = vmul.f32 1.442695, %v1745_v5  ;;  %v1760_v5 = vsub.f32 %v7903_v60, %v8087_v58 }
 0x316   :  { %10793 = vst [vmem:[#allocation63_spill] sm:$0xff] %v8191_v49  ;;  %v8197_v11 = vpop.eup %6254  ;;  %6270 = vpow2.f32 %v1845_v13  ;;  %v1875_v13 = vmul.f32 1.442695, %v1756_v44  ;;  %v10803_v44 = vld [vmem:[#allocation45_spill] sm:$0xff] }
 0x317   :  { %10794 = vst [vmem:[#allocation64_spill] sm:$0xff] %v8197_v11  ;;  %v8201_v45 = vpop.eup %6256  ;;  %6272 = vpow2.f32 %v1867_v54  ;;  %v1749_v54 = vsub.f32 %v10800_v50, %v8087_v58  ;;  %v1883_v50 = vmul.f32 1.442695, %v1760_v5  ;;  %v1755_v5 = vsub.f32 %v7814_v62, %v8087_v58 }
 0x318   :  { %2036 = vperm.xlu1 %6051, %v8167_v30   ;;  %10795 = vst [vmem:[#allocation65_spill] sm:$0xff] %v8201_v45  ;;  %v8207_v2 = vpop.eup %6258  ;;  %6274 = vpow2.f32 %v1849_v15  ;;  %v1879_v15 = vmul.f32 1.442695, %v1758_v52  ;;  %v1753_v52 = vsub.f32 %v7777_v34, %v8087_v58 }
 0x319   :  { %2075 = vperm.xlu0 %6050, %v8181_v46   ;;  %10796 = vst [vmem:[#allocation66_spill] sm:$0xff] %v8207_v2  ;;  %v8211_v48 = vpop.eup %6260  ;;  %6276 = vpow2.f32 %v1871_v27  ;;  %v1751_v27 = vsub.f32 %v10803_v44, %v8087_v58 }
 0x31a   :  { %10797 = vst [vmem:[#allocation67_spill] sm:$0xff] %v8211_v48  ;;  %v8217_v61 = vpop.eup %6262  ;;  %6278 = vpow2.f32 %v1853_v31  ;;  %v1762_v31 = vsub.f32 %v7934_v55, %v8087_v58 }
 0x31b   :  { %10798 = vst [vmem:[#allocation68_spill] sm:$0xff] %v8217_v61  ;;  %6280 = vpow2.f32 %v1875_v13  ;;  %v1865_v13 = vmul.f32 1.442695, %v1751_v27 }
 0x31c   :  { %2042 = vperm.xlu1 %6051, %v8177_v3   ;;  %v1861_v3 = vmul.f32 1.442695, %v1749_v54  ;;  %v1887_v44 = vmul.f32 1.442695, %v1762_v31  ;;  %v1873_v31 = vmul.f32 1.442695, %v1755_v5 }
 0x31d   :  { %2081 = vperm.xlu0 %6050, %v8191_v49  }
 0x320   :  { %2048 = vperm.xlu1 %6051, %v8187_v6   ;;  %v8221_v29 = vpop.eup %6264  ;;  %v1857_v6 = vmul.f32 1.442695, %v1747_v37 }
 0x321   :  { %2087 = vperm.xlu0 %6050, %v8201_v45   ;;  %10799 = vst [vmem:[#allocation69_spill] sm:$0xff] %v8221_v29  ;;  %v8227_v32 = vpop.eup %6266 }
 0x322   :  { %10801 = vst [vmem:[#allocation42_spill] sm:$0xff] %v8227_v32  ;;  %v8231_v56 = vpop.eup %6268  ;;  %6282 = vpow2.f32 %v1857_v6  ;;  %v1764_v6 = vsub.f32 %v7961_v12, %v8087_v58  ;;  %v1757_v12 = vsub.f32 %v7851_v39, %v8087_v58  ;;  %v10814_v39 = vld [vmem:[#allocation46_spill] sm:$0xff] }
 0x323   :  { %10802 = vst [vmem:[#allocation70_spill] sm:$0xff] %v8231_v56  ;;  %v8237_v37 = vpop.eup %6270  ;;  %6284 = vpow2.f32 %v1879_v15  ;;  %v1869_v15 = vmul.f32 1.442695, %v1753_v52  ;;  %v1759_v52 = vsub.f32 %v7886_v33, %v8087_v58  ;;  %v1761_v5 = vsub.f32 %v10814_v39, %v8087_v58 }
 0x324   :  { %2054 = vperm.xlu1 %6051, %v8197_v11   ;;  %10804 = vst [vmem:[#allocation45_spill] sm:$0xff] %v8237_v37  ;;  %v8241_v60 = vpop.eup %6272  ;;  %6286 = vpow2.f32 %v1861_v3  ;;  %v1891_v3 = vmul.f32 1.442695, %v1764_v6  ;;  %v1763_v33 = vsub.f32 %v7954_v7, %v8087_v58 }
 0x325   :  { %2093 = vperm.xlu0 %6050, %v8211_v48   ;;  %10805 = vst [vmem:[#allocation71_spill] sm:$0xff] %v8241_v60  ;;  %v8247_v54 = vpop.eup %6274  ;;  %6288 = vpow2.f32 %v1883_v50 }
 0x326   :  { %10806 = vst [vmem:[#allocation72_spill] sm:$0xff] %v8247_v54  ;;  %v8251_v55 = vpop.eup %6276  ;;  %6290 = vpow2.f32 %v1865_v13  ;;  %v1877_v13 = vmul.f32 1.442695, %v1757_v12  ;;  %v1885_v12 = vmul.f32 1.442695, %v1761_v5 }
 0x327   :  { %10807 = vst [vmem:[#allocation73_spill] sm:$0xff] %v8251_v55  ;;  %v8257_v34 = vpop.eup %6278  ;;  %6292 = vpow2.f32 %v1887_v44 }
 0x328   :  { %2060 = vperm.xlu1 %6051, %v8207_v2   ;;  %10808 = vst [vmem:[#allocation74_spill] sm:$0xff] %v8257_v34  ;;  %v8259_v27 = vpop.eup %6280  ;;  %6294 = vpow2.f32 %v1869_v15  ;;  %v1881_v15 = vmul.f32 1.442695, %v1759_v52  ;;  %v1889_v52 = vmul.f32 1.442695, %v1763_v33 }
 0x329   :  { %2099 = vperm.xlu0 %6050, %v8221_v29   ;;  %10809 = vst [vmem:[#allocation75_spill] sm:$0xff] %v8259_v27  ;;  %6296 = vpow2.f32 %v1891_v3 }
 0x32a   :  { %6298 = vpow2.f32 %v1873_v31 }
 0x32b   :  { %6300 = vpow2.f32 %v1877_v13 }
 0x32c   :  { %2066 = vperm.xlu1 %6051, %v8217_v61   ;;  %6302 = vpow2.f32 %v1881_v15 }
 0x32d   :  { %2105 = vperm.xlu0 %6050, %v8231_v56   ;;  %6304 = vpow2.f32 %v1885_v12 }
 0x32e   :  { %6306 = vpow2.f32 %v1889_v52 }
 0x32f   :  { %v8265_v50 = vpop.eup %6282 }
 0x330   :  { %2072 = vperm.xlu1 %6051, %v8227_v32   ;;  %10810 = vst [vmem:[#allocation76_spill] sm:$0xff] %v8265_v50  ;;  %v8267_v62 = vpop.eup %6284 }
 0x331   :  { %2111 = vperm.xlu0 %6050, %v8241_v60   ;;  %10811 = vst [vmem:[#allocation77_spill] sm:$0xff] %v8267_v62  ;;  %v8273_v6 = vpop.eup %6286 }
 0x332   :  { %10812 = vst [vmem:[#allocation78_spill] sm:$0xff] %v8273_v6  ;;  %v8275_v44 = vpop.eup %6288 }
 0x333   :  { %10813 = vst [vmem:[#allocation79_spill] sm:$0xff] %v8275_v44  ;;  %v8281_v3 = vpop.eup %6290 }
 0x334   :  { %2078 = vperm.xlu1 %6051, %v8237_v37   ;;  %10815 = vst [vmem:[#allocation46_spill] sm:$0xff] %v8281_v3 }
 0x335   :  { %2117 = vperm.xlu0 %6050, %v8251_v55  }
 0x338   :  { %2084 = vperm.xlu1 %6051, %v8247_v54  }
 0x339   :  { %2123 = vperm.xlu0 %6050, %v8259_v27  }
 0x33c   :  { %2090 = vperm.xlu1 %6051, %v8257_v34  }
 0x33d   :  { %2129 = vperm.xlu0 %6050, %v8267_v62   ;;  %v8283_v62 = vpop.eup %6292 }
 0x33e   :  { %10816 = vst [vmem:[#allocation80_spill] sm:$0xff] %v8283_v62  ;;  %v8289_v31 = vpop.eup %6294 }
 0x33f   :  { %10817 = vst [vmem:[#allocation81_spill] sm:$0xff] %v8289_v31 }
 0x340   :  { %2096 = vperm.xlu1 %6051, %v8265_v50  }
 0x341   :  { %2135 = vperm.xlu0 %6050, %v8275_v44   ;;  %v8291_v44 = vpop.eup %6296 }
 0x342   :  { %10818 = vst [vmem:[#allocation82_spill] sm:$0xff] %v8291_v44  ;;  %v8295_v13 = vpop.eup %6298 }
 0x343   :  { %10819 = vst [vmem:[#allocation83_spill] sm:$0xff] %v8295_v13  ;;  %v8298_v39 = vpop.eup %6300 }
 0x344   :  { %2102 = vperm.xlu1 %6051, %v8273_v6   ;;  %10820 = vst [vmem:[#allocation84_spill] sm:$0xff] %v8298_v39  ;;  %v8305_v5 = vpop.eup %6302 }
 0x345   :  { %2141 = vperm.xlu0 %6050, %v8283_v62   ;;  %10821 = vst [vmem:[#allocation85_spill] sm:$0xff] %v8305_v5  ;;  %v8310_v33 = vpop.eup %6304 }
 0x346   :  { %10822 = vst [vmem:[#allocation86_spill] sm:$0xff] %v8310_v33  ;;  %v8317_v52 = vpop.eup %6306 }
 0x347   :  { %10823 = vst [vmem:[#allocation87_spill] sm:$0xff] %v8317_v52 }
 0x348   :  { %2108 = vperm.xlu1 %6051, %v8281_v3  }
 0x349   :  { %2147 = vperm.xlu0 %6050, %v8291_v44  }
 0x34c   :  { %2114 = vperm.xlu1 %6051, %v8289_v31  }
 0x350   :  { %2120 = vperm.xlu1 %6051, %v8295_v13  }
 0x353   :  { %v8300_v7 = vpop.permute.xlu1 %1958 }
 0x354   :  { %2126 = vperm.xlu1 %6051, %v8298_v39   ;;  %v8303_v58 = vpop.permute.xlu0 %1979  ;;  %v2152_v41 = vrot.slane %v8300_v7, %v10828_v16 }
 0x357   :  { %v8307_v15 = vpop.permute.xlu1 %1961 }
 0x358   :  { %2132 = vperm.xlu1 %6051, %v8305_v5   ;;  %v8314_v44 = vpop.permute.xlu0 %1985  ;;  %v2156_v59 = vrot.slane %v8307_v15, %v10830_v47  ;;  %v10831_v15 = vld [vmem:[#allocation16_spill] sm:$0xff] }
 0x35b   :  { %v8312_v12 = vpop.permute.xlu1 %1964 }
 0x35c   :  { %2138 = vperm.xlu1 %6051, %v8310_v33   ;;  %v8321_v27 = vpop.permute.xlu0 %1991  ;;  %v2161_v26 = vrot.slane %v8312_v12, %v10829_v23 }
 0x35f   :  { %v8319_v62 = vpop.permute.xlu1 %1967 }
 0x360   :  { %2144 = vperm.xlu1 %6051, %v8317_v52   ;;  %v8326_v13 = vpop.permute.xlu0 %1997 }
 0x363   :  { %v8324_v39 = vpop.permute.xlu1 %1970 }
 0x364   :  { %v8330_v31 = vpop.permute.xlu0 %2003 }
 0x365   :  { %10824 = vst [vmem:[#allocation88_spill] sm:$0xff] %v8330_v31 }
 0x367   :  { %v8328_v5 = vpop.permute.xlu1 %1973 }
 0x368   :  { %v2010_v3 = vpop.permute.xlu0 %2009 }
 0x369   :  { %v2235_v31 = vrot.slane %v2010_v3, %v10830_v47 }
 0x36b   :  { %v8332_v55 = vpop.permute.xlu1 %1976 }
 0x36c   :  { %v8336_v60 = vpop.permute.xlu0 %2015 }
 0x36f   :  { %v8334_v33 = vpop.permute.xlu1 %1982 }
 0x370   :  { %v8340_v56 = vpop.permute.xlu0 %2021 }
 0x373   :  { %v8338_v6 = vpop.permute.xlu1 %1988 }
 0x374   :  { %v8344_v50 = vpop.permute.xlu0 %2027 }
 0x377   :  { %v8342_v52 = vpop.permute.xlu1 %1994 }
 0x378   :  { %v8348_v34 = vpop.permute.xlu0 %2033 }
 0x37b   :  { %v8346_v29 = vpop.permute.xlu1 %2000 }
 0x37c   :  { %v8350_v54 = vpop.permute.xlu0 %2039 }
 0x37f   :  { %v2007_v48 = vpop.permute.xlu1 %2006 }
 0x380   :  { %v8352_v37 = vpop.permute.xlu0 %2045  ;;  %v2231_v36 = vrot.slane %v2007_v48, %v10828_v16 }
 0x381   :  { %10825 = vst [vmem:[#allocation89_spill] sm:$0xff] %v8352_v37  ;;  %v10832_v37 = vld [vmem:[#allocation13_spill] sm:$0xff] }
 0x382   :  { %v2166_v12 = vrot.slane %v8319_v62, %v10832_v37  ;;  %v10833_v62 = vld [vmem:[#allocation20_spill] sm:$0xff] }
 0x383   :  { %v2013_v45 = vpop.permute.xlu1 %2012 }
 0x384   :  { %v8356_v32 = vpop.permute.xlu0 %2051 }
 0x385   :  { %10826 = vst [vmem:[#allocation90_spill] sm:$0xff] %v8356_v32 }
 0x387   :  { %v8354_v49 = vpop.permute.xlu1 %2018 }
 0x388   :  { %v2058_v61 = vpop.permute.xlu0 %2057 }
 0x389   :  { %v2314_v10 = vrot.slane %v2058_v61, %v10830_v47  ;;  %v2157_v61 = vsel %vm1342_vm3, %v2156_v59, %v2152_v41  ;;  %v2250_v41 = vrot.slane %v8354_v49, %v10831_v15 }
 0x38b   :  { %v8358_v46 = vpop.permute.xlu1 %2024 }
 0x38c   :  { %v2064_v2 = vpop.permute.xlu0 %2063 }
 0x38d   :  { %v2324_v48 = vrot.slane %v2064_v2, %v10832_v37 }
 0x38f   :  { %v8360_v22 = vpop.permute.xlu1 %2030 }
 0x390   :  { %v2070_v8 = vpop.permute.xlu0 %2069 }
 0x393   :  { %v8362_v11 = vpop.permute.xlu1 %2036 }
 0x394   :  { %v8366_v0 = vpop.permute.xlu0 %2075 }
 0x397   :  { %v8364_v30 = vpop.permute.xlu1 %2042 }
 0x398   :  { %v8370_v1 = vpop.permute.xlu0 %2081 }
 0x39b   :  { %v8368_v20 = vpop.permute.xlu1 %2048 }
 0x39c   :  { %v8372_v25 = vpop.permute.xlu0 %2087 }
 0x39f   :  { %v2055_v18 = vpop.permute.xlu1 %2054 }
 0x3a0   :  { %v8374_v17 = vpop.permute.xlu0 %2093  ;;  %v2310_v40 = vrot.slane %v2055_v18, %v10828_v16  ;;  %v2240_v18 = vrot.slane %v2013_v45, %v10829_v23  ;;  %v2162_v45 = vsel %vm1349_vm4, %v2161_v26, %v2157_v61  ;;  %v2245_v26 = vrot.slane %v8336_v60, %v10832_v37 }
 0x3a1   :  { %v2181_v60 = vrot.slane %v8332_v55, %v10833_v62  ;;  %v10835_v55 = vld [vmem:[#allocation24_spill] sm:$0xff] }
 0x3a2   :  { %v2315_v32 = vsel %vm1342_vm3, %v2314_v10, %v2310_v40  ;;  %v2171_v10 = vrot.slane %v8324_v39, %v10831_v15  ;;  %v2236_v40 = vsel %vm1342_vm3, %v2235_v31, %v2231_v36  ;;  %v2167_v31 = vsel %vm1356_vm5, %v2166_v12, %v2162_v45 }
 0x3a3   :  { %v2061_v53 = vpop.permute.xlu1 %2060  ;;  %v2260_v12 = vrot.slane %v8358_v46, %v10833_v62 }
 0x3a4   :  { %v8376_v28 = vpop.permute.xlu0 %2099  ;;  %v2319_v38 = vrot.slane %v2061_v53, %v10829_v23 }
 0x3a5   :  { %10827 = vst [vmem:[#allocation91_spill] sm:$0xff] %v8376_v28 }
 0x3a6   :  { %v2320_v28 = vsel %vm1349_vm4, %v2319_v38, %v2315_v32  ;;  %v2241_v38 = vsel %vm1349_vm4, %v2240_v18, %v2236_v40  ;;  %v10834_v18 = vld [vmem:[#allocation18_spill] sm:$0xff] }
 0x3a7   :  { %v2067_v63 = vpop.permute.xlu1 %2066  ;;  %v2334_v49 = vrot.slane %v2070_v8, %v10834_v18 }
 0x3a8   :  { %v2106_v4 = vpop.permute.xlu0 %2105  ;;  %v2329_v24 = vrot.slane %v2067_v63, %v10831_v15  ;;  %v2325_v63 = vsel %vm1356_vm5, %v2324_v48, %v2320_v28  ;;  %v2172_v28 = vsel %vm1363_vm6, %v2171_v10, %v2167_v31 }
 0x3a9   :  { %v2393_v59 = vrot.slane %v2106_v4, %v10830_v47 }
 0x3aa   :  { %v2330_v32 = vsel %vm1363_vm6, %v2329_v24, %v2325_v63  ;;  %v2246_v24 = vsel %vm1356_vm5, %v2245_v26, %v2241_v38 }
 0x3ab   :  { %v2073_v9 = vpop.permute.xlu1 %2072  ;;  %v2251_v61 = vsel %vm1363_vm6, %v2250_v41, %v2246_v24  ;;  %v2335_v8 = vsel %vm1370_vm7, %v2334_v49, %v2330_v32  ;;  %v10836_v41 = vld [vmem:[#allocation22_spill] sm:$0xff] }
 0x3ac   :  { %v2112_v19 = vpop.permute.xlu0 %2111  ;;  %v2339_v39 = vrot.slane %v2073_v9, %v10833_v62  ;;  %v2265_v31 = vrot.slane %v8344_v50, %v10836_v41 }
 0x3ae   :  { %v2340_v45 = vsel %vm1377_vm8, %v2339_v39, %v2335_v8 }
 0x3af   :  { %v8378_v57 = vpop.permute.xlu1 %2078 }
 0x3b0   :  { %v8388_v14 = vpop.permute.xlu0 %2117  ;;  %v2349_v10 = vrot.slane %v8378_v57, %v10835_v55 }
 0x3b1   :  { %v2413_v39 = vrot.slane %v8388_v14, %v10834_v18 }
 0x3b3   :  { %v8380_v42 = vpop.permute.xlu1 %2084 }
 0x3b4   :  { %v8412_v3 = vpop.permute.xlu0 %2123 }
 0x3b7   :  { %v8382_v43 = vpop.permute.xlu1 %2090 }
 0x3b8   :  { %v2130_v40 = vpop.permute.xlu0 %2129 }
 0x3bb   :  { %v8385_v35 = vpop.permute.xlu1 %2096 }
 0x3bf   :  { %v2103_v53 = vpop.permute.xlu1 %2102 }
 0x3c0   :  { %v2389_v7 = vrot.slane %v2103_v53, %v10828_v16  ;;  %v2176_v53 = vrot.slane %v8328_v5, %v10834_v18  ;;  %v2403_v5 = vrot.slane %v2112_v19, %v10832_v37  ;;  %v2344_v19 = vrot.slane %v8366_v0, %v10836_v41 }
 0x3c2   :  { %v2394_v4 = vsel %vm1342_vm3, %v2393_v59, %v2389_v7  ;;  %v2255_v7 = vrot.slane %v8340_v56, %v10834_v18  ;;  %v2186_v59 = vrot.slane %v8303_v58, %v10836_v41  ;;  %v2177_v46 = vsel %vm1370_vm7, %v2176_v53, %v2172_v28  ;;  %v10837_v53 = vld [vmem:[#allocation28_spill] sm:$0xff]  ;;  %v10838_v28 = vld [vmem:[#allocation26_spill] sm:$0xff] }
 0x3c3   :  { %v2109_v2 = vpop.permute.xlu1 %2108  ;;  %v2182_v56 = vsel %vm1377_vm8, %v2181_v60, %v2177_v46  ;;  %v2270_v58 = vrot.slane %v8360_v22, %v10835_v55  ;;  %v2345_v0 = vsel %vm10542_vm9, %v2344_v19, %v2340_v45  ;;  %v2359_v49 = vrot.slane %v8380_v42, %v10837_v53  ;;  %v2136_v42 = vpop.permute.xlu0 %2135  ;;  %v10839_v45 = vld [vmem:[#allocation38_spill] sm:$0xff] }
 0x3c4   :  { %v2398_v36 = vrot.slane %v2109_v2, %v10829_v23  ;;  %v2191_v2 = vrot.slane %v8334_v33, %v10835_v55  ;;  %v2256_v57 = vsel %vm1370_vm7, %v2255_v7, %v2251_v61  ;;  %v2350_v33 = vsel %vm10543_vm10, %v2349_v10, %v2345_v0  ;;  %v10840_v46 = vld [vmem:[#allocation30_spill] sm:$0xff]  ;;  %v10910_v23 = vld [vmem:[#allocation59_spill] sm:$0xff] }
 0x3c5   :  { %v2261_v32 = vsel %vm1377_vm8, %v2260_v12, %v2256_v57  ;;  %v2196_v60 = vrot.slane %v8314_v44, %v10838_v28  ;;  %v2187_v22 = vsel %vm10542_vm9, %v2186_v59, %v2182_v56  ;;  %v2354_v14 = vrot.slane %v8370_v1, %v10838_v28 }
 0x3c6   :  { %v2399_v9 = vsel %vm1349_vm4, %v2398_v36, %v2394_v4  ;;  %v2201_v50 = vrot.slane %v8338_v6, %v10837_v53  ;;  %v2266_v61 = vsel %vm10542_vm9, %v2265_v31, %v2261_v32  ;;  %v2280_v44 = vrot.slane %v8362_v11, %v10837_v53 }
 0x3c7   :  { %v2115_v48 = vpop.permute.xlu1 %2114  ;;  %v2404_v63 = vsel %vm1356_vm5, %v2403_v5, %v2399_v9  ;;  %v2192_v9 = vsel %vm10543_vm10, %v2191_v2, %v2187_v22  ;;  %v2271_v5 = vsel %vm10543_vm10, %v2270_v58, %v2266_v61  ;;  %v2423_v1 = vrot.slane %v8412_v3, %v10836_v41  ;;  %v10844_v61 = vld [vmem:[#allocation40_spill] sm:$0xff] }
 0x3c8   :  { %v2408_v38 = vrot.slane %v2115_v48, %v10831_v15  ;;  %v2355_v8 = vsel %vm1398_vm11, %v2354_v14, %v2350_v33  ;;  %v2275_v7 = vrot.slane %v8348_v34, %v10838_v28  ;;  %v2369_v10 = vrot.slane %v8382_v43, %v10839_v45 }
 0x3c9   :  { %v2360_v6 = vsel %vm1405_vm12, %v2359_v49, %v2355_v8  ;;  %v2197_v59 = vsel %vm1398_vm11, %v2196_v60, %v2192_v9  ;;  %v2364_v11 = vrot.slane %v8372_v25, %v10840_v46  ;;  %v2206_v43 = vrot.slane %v8321_v27, %v10840_v46 }
 0x3ca   :  { %v2409_v26 = vsel %vm1363_vm6, %v2408_v38, %v2404_v63  ;;  %v2202_v19 = vsel %vm1405_vm12, %v2201_v50, %v2197_v59  ;;  %v2211_v63 = vrot.slane %v8342_v52, %v10839_v45  ;;  %v2276_v34 = vsel %vm1398_vm11, %v2275_v7, %v2271_v5 }
 0x3cb   :  { %v2121_v36 = vpop.permute.xlu1 %2120  ;;  %v2414_v24 = vsel %vm1370_vm7, %v2413_v39, %v2409_v26  ;;  %v2281_v2 = vsel %vm1405_vm12, %v2280_v44, %v2276_v34  ;;  %v2433_v57 = vrot.slane %v2130_v40, %v10838_v28  ;;  %v2365_v25 = vsel %vm1412_vm13, %v2364_v11, %v2360_v6  ;;  %v2142_v39 = vpop.permute.xlu0 %2141  ;;  %v10901_v28 = vld [vmem:[#allocation53_spill] sm:$0xff] }
 0x3cc   :  { %v2418_v4 = vrot.slane %v2121_v36, %v10833_v62  ;;  %v2290_v32 = vrot.slane %v8364_v30, %v10839_v45  ;;  %v2379_v52 = vrot.slane %v8385_v35, %v7668_v21  ;;  %v2207_v27 = vsel %vm1412_vm13, %v2206_v43, %v2202_v19 }
 0x3cd   :  { %v2285_v36 = vrot.slane %v8350_v54, %v10840_v46  ;;  %v2374_v40 = vrot.slane %v8374_v17, %v7587_v51  ;;  %v2221_v33 = vrot.slane %v8346_v29, %v7668_v21  ;;  %v2216_v49 = vrot.slane %v8326_v13, %v7587_v51  ;;  %v10843_v13 = vld [vmem:[#allocation89_spill] sm:$0xff] }
 0x3ce   :  { %v2419_v12 = vsel %vm1377_vm8, %v2418_v4, %v2414_v24  ;;  %v2443_v60 = vrot.slane %v2136_v42, %v10840_v46  ;;  %v2300_v14 = vrot.slane %v8368_v20, %v7668_v21  ;;  %v2295_v50 = vrot.slane %v10843_v13, %v7587_v51  ;;  %v10847_v20 = vld [vmem:[#allocation88_spill] sm:$0xff] }
 0x3cf   :  { %v2127_v48 = vpop.permute.xlu1 %2126  ;;  %v2424_v3 = vsel %vm10542_vm9, %v2423_v1, %v2419_v12  ;;  %vm10841_vm9 = vcmask 851712   ;;  %v2286_v4 = vsel %vm1412_vm13, %v2285_v36, %v2281_v2  ;;  %v10845_v12 = vld [vmem:[#allocation91_spill] sm:$0xff]  ;;  %v2148_v1 = vpop.permute.xlu0 %2147  ;;  %v2453_v6 = vrot.slane %v2142_v39, %v7587_v51  ;;  %v10904_v46 = vld [vmem:[#allocation60_spill] sm:$0xff] }
 0x3d0   :  { %v2428_v38 = vrot.slane %v2127_v48, %v10835_v55  ;;  %v2370_v58 = vsel %vm10841_vm9, %v2369_v10, %v2365_v25  ;;  %v2291_v17 = vsel %vm10841_vm9, %v2290_v32, %v2286_v4  ;;  %v2384_v42 = vrot.slane %v10845_v12, %v10844_v61  ;;  %v10854_v4 = vld [vmem:[#allocation12_spill] sm:$0xff] }
 0x3d1   :  { %v2375_v54 = vsel %vm1426_vm15, %v2374_v40, %v2370_v58  ;;  %v2226_v48 = vrot.slane %v10847_v20, %v10844_v61  ;;  %v2296_v7 = vsel %vm1426_vm15, %v2295_v50, %v2291_v17  ;;  %v10851_v40 = vld [vmem:[#allocation23_spill] sm:$0xff]  ;;  %v10856_v17 = vld [vmem:[#allocation17_spill] sm:$0xff] }
 0x3d2   :  { %v2429_v56 = vsel %vm10543_vm10, %v2428_v38, %v2424_v3  ;;  %vm10842_vm10 = vmmov %vm10841_vm9  ;;  %v2380_v24 = vsel %vm1433_vm1, %v2379_v52, %v2375_v54  ;;  %v2301_v59 = vsel %vm1433_vm1, %v2300_v14, %v2296_v7  ;;  %v10848_v3 = vld [vmem:[#allocation90_spill] sm:$0xff]  ;;  %v10855_v54 = vld [vmem:[#allocation21_spill] sm:$0xff] }
 0x3d3   :  { %v2133_v26 = vpop.permute.xlu1 %2132  ;;  %v2434_v31 = vsel %vm1398_vm11, %v2433_v57, %v2429_v56  ;;  %v2212_v30 = vsel %vm10842_vm10, %v2211_v63, %v2207_v27  ;;  %vm10846_vm10 = vmmov %vm10841_vm9  ;;  %v2385_v38 = vsel %vm1440_vm2, %v2384_v42, %v2380_v24  ;;  %v2305_v19 = vrot.slane %v10848_v3, %v10844_v61  ;;  %v10857_v24 = vld [vmem:[#allocation7_spill] sm:$0xff]  ;;  %v10860_v42 = vld [vmem:[#allocation33_spill] sm:$0xff] }
 0x3d4   :  { %v2438_v0 = vrot.slane %v2133_v26, %v10837_v53  ;;  %v2217_v9 = vsel %vm1426_vm15, %v2216_v49, %v2212_v30  ;;  %v2463_v63 = vrot.slane %v2148_v1, %v10844_v61  ;;  %v10852_v30 = vld [vmem:[#allocation9_spill] sm:$0xff]  ;;  %v10859_v50 = vld [vmem:[#allocation27_spill] sm:$0xff]  ;;  %v10870_v3 = vld [vmem:[#allocation32_spill] sm:$0xff] }
 0x3d5   :  { %v2222_v44 = vsel %vm1433_vm1, %v2221_v33, %v2217_v9  ;;  %v2306_v57 = vsel %vm1440_vm2, %v2305_v19, %v2301_v59  ;;  %v10858_v9 = vld [vmem:[#allocation25_spill] sm:$0xff]  ;;  %v10900_v53 = vld [vmem:[#allocation39_spill] sm:$0xff] }
 0x3d6   :  { %v2439_v35 = vsel %vm1405_vm12, %v2438_v0, %v2434_v31  ;;  %v2227_v56 = vsel %vm1440_vm2, %v2226_v48, %v2222_v44  ;;  %v10849_v0 = vld [vmem:[#allocation14_spill] sm:$0xff]  ;;  %v6403_v48 = vmov 1983009808  }
 0x3d7   :  { %v2139_v22 = vpop.permute.xlu1 %2138  ;;  %v2444_v5 = vsel %vm1412_vm13, %v2443_v60, %v2439_v35  ;;  %v2465_v2 = vsel %vm1679_vm0, %v2385_v38, %v2227_v56  ;;  %v10853_v35 = vld [vmem:[#allocation15_spill] sm:$0xff]  ;;  %v10862_v44 = vld [vmem:[#allocation34_spill] sm:$0xff]  ;;  %v2617_v7 = vunpack.c.l.s4 %v6403_v48  ;;  %v10868_v38 = vld [vmem:[#allocation49_spill] sm:$0xff] }
 0x3d8   :  { %v2448_v29 = vrot.slane %v2139_v22, %v10839_v45  ;;  %v2469_v32 = vsel %vm1684_vm14, %v2465_v2, 0.0  ;;  %v10873_v56 = vld [vmem:[#allocation11_spill] sm:$0xff] }
 0x3da   :  { %v2449_v8 = vsel %vm10846_vm10, %v2448_v29, %v2444_v5 }
 0x3db   :  { %v2145_v10 = vpop.permute.xlu1 %2144  ;;  %v2454_v34 = vsel %vm1426_vm15, %v2453_v6, %v2449_v8  ;;  %v10864_v8 = vld [vmem:[#allocation47_spill] sm:$0xff] }
 0x3dc   :  { %v2458_v11 = vrot.slane %v2145_v10, %v7668_v21  ;;  %v10866_v6 = vld [vmem:[#allocation19_spill] sm:$0xff] }
 0x3dd   :  { %v10897_v21 = vld [vmem:[#allocation51_spill] sm:$0xff] }
 0x3de   :  { %v2459_v43 = vsel %vm1433_vm1, %v2458_v11, %v2454_v34  ;;  %v2618_v11 = vunpack.c.0.s8 %v2617_v7 }
 0x3df   :  { %v2464_v25 = vsel %vm1440_vm2, %v2463_v63, %v2459_v43  ;;  %v10872_v63 = vld [vmem:[#allocation50_spill] sm:$0xff]  ;;  %v10874_v43 = vsub.s32 1, %v10873_v56 }
 0x3e0   :  { %v2466_v26 = vsel %vm1679_vm0, %v2464_v25, %v2306_v57  ;;  %v8644_v57 = vsub.s32 %v2618_v11, %v10873_v56  ;;  %v10875_v25 = vld [vmem:[#allocation29_spill] sm:$0xff] }
 0x3e1   :  { %v2470_v58 = vsel %vm1684_vm14, %v2466_v26, 0.0  ;;  %vm11040_vm14 = vcmask 130048  }
 0x3e2   :  { %v2471_v52 = vadd.f32 %v2470_v58, %v2469_v32  ;;  %v10877_v32 = vld [vmem:[#allocation52_spill] sm:$0xff]  ;;  %vm11041_vm9 = vmmov %vm11040_vm14 }
 0x3e3   :  { %vm11045_vm10 = vmmov %vm11041_vm9 }
 0x3e4   :  { %2472 = vadd.xlane.f32.xlu1 %v2471_v52 }
 0x46d   :  { %v2473_v39 = vpop.xlane.xlu1 %2472 }
 0x46e   :  { %v2478_v27 = vrot.slane %v2473_v39, %v10849_v0  ;;  %v2482_v2 = vrot.slane %v2473_v39, %v10874_v43  ;;  %v10884_v43 = vld [vmem:[#allocation56_spill] sm:$0xff] }
 0x470   :  { %6308 = vrcp.f32 %v2478_v27 }
 0x471   :  { %6310 = vrcp.f32 %v2482_v2 }
 0x47d   :  { %v8559_v36 = vpop.eup %6308 }
 0x47e   :  { %10850 = vst [vmem:[#allocation89_spill] sm:$0xff] %v8559_v36  ;;  %v8563_v31 = vmul.f32 %v8559_v36, %v10851_v40  ;;  %v8567_v33 = vmul.f32 %v8559_v36, %v10852_v30  ;;  %v8573_v49 = vmul.f32 %v8559_v36, %v10853_v35  ;;  %v8577_v60 = vmul.f32 %v8559_v36, %v10854_v4  ;;  %v10878_v30 = vld [vmem:[#allocation35_spill] sm:$0xff]  ;;  %v10880_v4 = vld [vmem:[#allocation54_spill] sm:$0xff] }
 0x47f   :  { %v8583_v22 = vmul.f32 %v8559_v36, %v10855_v54  ;;  %v8587_v14 = vmul.f32 %v8559_v36, %v10856_v17  ;;  %v8593_v29 = vmul.f32 %v8559_v36, %v10857_v24  ;;  %v8597_v13 = vmul.f32 %v8559_v36, %v10858_v9  ;;  %v10893_v24 = vld [vmem:[#allocation37_spill] sm:$0xff] }
 0x480   :  { %5316 = vperm.xlu0 %6050, %v8563_v31   ;;  %5312 = vperm.xlu1 %6051, %v8567_v33   ;;  %v8603_v12 = vmul.f32 %v8559_v36, %v10859_v50  ;;  %v8607_v5 = vmul.f32 %v8559_v36, %v10860_v42  ;;  %v8613_v1 = vmul.f32 %v8559_v36, %v10862_v44  ;;  %v10891_v44 = vld [vmem:[#allocation36_spill] sm:$0xff] }
 0x481   :  { %v8617_v20 = vmul.f32 %v8559_v36, %v10864_v8  ;;  %v8623_v10 = vmul.f32 %v8559_v36, %v10866_v6  ;;  %v8627_v59 = vmul.f32 %v8559_v36, %v10868_v38  ;;  %v8633_v19 = vmul.f32 %v8559_v36, %v10870_v3  ;;  %v8800_v6 = vpop.eup %6310 }
 0x482   :  { %10861 = vst [vmem:[#allocation91_spill] sm:$0xff] %v8607_v5  ;;  %10863 = vst [vmem:[#allocation88_spill] sm:$0xff] %v8613_v1  ;;  %v8637_v34 = vmul.f32 %v8559_v36, %v10872_v63  ;;  %v8648_v26 = vmul.f32 %v8559_v36, %v10875_v25  ;;  %v8652_v58 = vmul.f32 %v8559_v36, %v10877_v32  ;;  %v10882_v63 = vld [vmem:[#allocation48_spill] sm:$0xff] }
 0x483   :  { %10865 = vst [vmem:[#allocation90_spill] sm:$0xff] %v8617_v20  ;;  %10867 = vst [vmem:[#allocation14_spill] sm:$0xff] %v8623_v10  ;;  %v8660_v39 = vrot.slane %v8563_v31, %v8644_v57  ;;  %v8666_v27 = vrot.slane %v8567_v33, %v8644_v57  ;;  %v8672_v35 = vmul.f32 %v8559_v36, %v10878_v30 }
 0x484   :  { %5324 = vperm.xlu0 %6050, %v8573_v49   ;;  %5320 = vperm.xlu1 %6051, %v8577_v60   ;;  %10869 = vst [vmem:[#allocation23_spill] sm:$0xff] %v8627_v59  ;;  %10871 = vst [vmem:[#allocation9_spill] sm:$0xff] %v8633_v19  ;;  %v8676_v54 = vmul.f32 %v8559_v36, %v10880_v4  ;;  %v8680_v17 = vrot.slane %v8573_v49, %v8644_v57 }
 0x485   :  { %10876 = vst [vmem:[#allocation15_spill] sm:$0xff] %v8648_v26  ;;  %10879 = vst [vmem:[#allocation12_spill] sm:$0xff] %v8672_v35  ;;  %v8686_v9 = vrot.slane %v8577_v60, %v8644_v57  ;;  %v8692_v42 = vrot.slane %v8583_v22, %v8644_v57  ;;  %v8698_v8 = vrot.slane %v8587_v14, %v8644_v57 }
 0x486   :  { %v8706_v7 = vrot.slane %v8593_v29, %v8644_v57  ;;  %v8712_v38 = vrot.slane %v8597_v13, %v8644_v57  ;;  %v8718_v3 = vrot.slane %v8603_v12, %v8644_v57  ;;  %v8722_v56 = vmul.f32 %v8559_v36, %v10882_v63  ;;  %10896 = vst [vmem:[#allocation50_spill] sm:$0xff] %v8800_v6 }
 0x487   :  { %v8726_v2 = vmul.f32 %v8559_v36, %v10884_v43  ;;  %v8732_v32 = vrot.slane %v8607_v5, %v8644_v57  ;;  %v8738_v4 = vrot.slane %v8613_v1, %v8644_v57  ;;  %v8744_v43 = vrot.slane %v8617_v20, %v8644_v57 }
 0x488   :  { %5332 = vperm.xlu0 %6050, %v8583_v22   ;;  %5328 = vperm.xlu1 %6051, %v8587_v14   ;;  %10881 = vst [vmem:[#allocation21_spill] sm:$0xff] %v8706_v7  ;;  %10883 = vst [vmem:[#allocation17_spill] sm:$0xff] %v8722_v56  ;;  %v8752_v30 = vrot.slane %v8623_v10, %v8644_v57  ;;  %v8758_v63 = vrot.slane %v8627_v59, %v8644_v57 }
 0x489   :  { %10885 = vst [vmem:[#allocation7_spill] sm:$0xff] %v8732_v32  ;;  %10886 = vst [vmem:[#allocation25_spill] sm:$0xff] %v8738_v4  ;;  %v8764_v25 = vrot.slane %v8633_v19, %v8644_v57  ;;  %v8770_v40 = vmul.f32 %v8559_v36, %v10891_v44  ;;  %v8774_v48 = vmul.f32 %v8559_v36, %v10893_v24  ;;  %v10952_v4 = vld [vmem:[#allocation71_spill] sm:$0xff]  ;;  %v10968_v32 = vld [vmem:[#allocation85_spill] sm:$0xff] }
 0x48a   :  { %10887 = vst [vmem:[#allocation27_spill] sm:$0xff] %v8744_v43  ;;  %10888 = vst [vmem:[#allocation33_spill] sm:$0xff] %v8752_v30  ;;  %v8778_v52 = vrot.slane %v8637_v34, %v8644_v57  ;;  %v8784_v0 = vrot.slane %v8648_v26, %v8644_v57  ;;  %v8790_v44 = vrot.slane %v8652_v58, %v8644_v57  ;;  %v10964_v43 = vld [vmem:[#allocation84_spill] sm:$0xff] }
 0x48b   :  { %10889 = vst [vmem:[#allocation34_spill] sm:$0xff] %v8758_v63  ;;  %10890 = vst [vmem:[#allocation47_spill] sm:$0xff] %v8764_v25  ;;  %v8796_v11 = vrot.slane %v8672_v35, %v8644_v57  ;;  %v8806_v61 = vrot.slane %v8676_v54, %v8644_v57  ;;  %v8812_v51 = vmul.f32 %v8559_v36, %v10897_v21  ;;  %v10905_v21 = vld [vmem:[#allocation58_spill] sm:$0xff]  ;;  %v10943_v63 = vld [vmem:[#allocation69_spill] sm:$0xff] }
 0x48c   :  { %5340 = vperm.xlu0 %6050, %v8593_v29   ;;  %5336 = vperm.xlu1 %6051, %v8597_v13   ;;  %10892 = vst [vmem:[#allocation19_spill] sm:$0xff] %v8770_v40  ;;  %10894 = vst [vmem:[#allocation49_spill] sm:$0xff] %v8784_v0  ;;  %v8816_v45 = vrot.slane %v8722_v56, %v8644_v57  ;;  %v8822_v50 = vmul.f32 %v8559_v36, %v10900_v53  ;;  %v10908_v53 = vld [vmem:[#allocation64_spill] sm:$0xff] }
 0x48d   :  { %10895 = vst [vmem:[#allocation32_spill] sm:$0xff] %v8796_v11  ;;  %10898 = vst [vmem:[#allocation11_spill] sm:$0xff] %v8812_v51  ;;  %v8826_v55 = vmul.f32 %v8559_v36, %v10901_v28  ;;  %v8830_v24 = vrot.slane %v8726_v2, %v8644_v57  ;;  %v8836_v41 = vrot.slane %v8770_v40, %v8644_v57  ;;  %v10924_v11 = vld [vmem:[#allocation42_spill] sm:$0xff] }
 0x48e   :  { %10899 = vst [vmem:[#allocation29_spill] sm:$0xff] %v8816_v45  ;;  %v8840_v62 = vmul.f32 %v8559_v36, %v10904_v46  ;;  %v8846_v28 = vrot.slane %v8774_v48, %v8644_v57  ;;  %v8852_v18 = vmul.f32 %v8800_v6, %v10905_v21  ;;  %v8858_v46 = vrot.slane %v8812_v51, %v8644_v57 }
 0x48f   :  { %10902 = vst [vmem:[#allocation52_spill] sm:$0xff] %v8826_v55  ;;  %10903 = vst [vmem:[#allocation35_spill] sm:$0xff] %v8836_v41  ;;  %v8862_v37 = vmul.f32 %v8800_v6, %v10908_v53  ;;  %v8866_v47 = vmul.f32 %v8800_v6, %v10910_v23  ;;  %v8872_v21 = vrot.slane %v8822_v50, %v8644_v57  ;;  %v10915_v41 = vld [vmem:[#allocation61_spill] sm:$0xff]  ;;  %v10918_v23 = vld [vmem:[#allocation68_spill] sm:$0xff] }
 0x490   :  { %5348 = vperm.xlu0 %6050, %v8603_v12   ;;  %5344 = vperm.xlu1 %6051, %v8607_v5   ;;  %10906 = vst [vmem:[#allocation54_spill] sm:$0xff] %v8852_v18  ;;  %10907 = vst [vmem:[#allocation48_spill] sm:$0xff] %v8858_v46  ;;  %v8882_v53 = vrot.slane %v8826_v55, %v8644_v57  ;;  %v8888_v16 = vrot.slane %v8840_v62, %v8644_v57 }
 0x491   :  { %10909 = vst [vmem:[#allocation56_spill] sm:$0xff] %v8862_v37  ;;  %10911 = vst [vmem:[#allocation36_spill] sm:$0xff] %v8866_v47  ;;  %v8900_v15 = vrot.slane %v8852_v18, %v8644_v57  ;;  %v8926_v45 = vmul.f32 %v8800_v6, %v10924_v11 }
 0x492   :  { %10914 = vst [vmem:[#allocation51_spill] sm:$0xff] %v8882_v53  ;;  %v8904_v53 = vmul.f32 %v8800_v6, %v10918_v23  ;;  %v10930_v23 = vld [vmem:[#allocation45_spill] sm:$0xff] }
 0x493   :  { %10917 = vst [vmem:[#allocation53_spill] sm:$0xff] %v8900_v15  ;;  %v8920_v15 = vrot.slane %v8866_v47, %v8644_v57 }
 0x494   :  { %5356 = vperm.xlu0 %6050, %v8613_v1   ;;  %5352 = vperm.xlu1 %6051, %v8617_v20   ;;  %10919 = vst [vmem:[#allocation60_spill] sm:$0xff] %v8904_v53  ;;  %v8952_v11 = vrot.slane %v8904_v53, %v8644_v57  ;;  %v10966_v1 = vld [vmem:[#allocation75_spill] sm:$0xff] }
 0x495   :  { %10923 = vst [vmem:[#allocation59_spill] sm:$0xff] %v8920_v15 }
 0x498   :  { %5364 = vperm.xlu0 %6050, %v8623_v10   ;;  %5360 = vperm.xlu1 %6051, %v8627_v59   ;;  %v10940_v10 = vld [vmem:[#allocation74_spill] sm:$0xff] }
 0x499   :  { %v10948_v59 = vld [vmem:[#allocation70_spill] sm:$0xff] }
 0x49c   :  { %5372 = vperm.xlu0 %6050, %v8633_v19   ;;  %5368 = vperm.xlu1 %6051, %v8637_v34  }
 0x4a0   :  { %5380 = vperm.xlu0 %6050, %v8648_v26   ;;  %5376 = vperm.xlu1 %6051, %v8652_v58   ;;  %v8944_v26 = vmul.f32 %v8800_v6, %v10930_v23 }
 0x4a2   :  { %10931 = vst [vmem:[#allocation42_spill] sm:$0xff] %v8944_v26 }
 0x4a4   :  { %5388 = vperm.xlu0 %6050, %v8672_v35   ;;  %5384 = vperm.xlu1 %6051, %v8676_v54   ;;  %v10926_v35 = vld [vmem:[#allocation63_spill] sm:$0xff] }
 0x4a5   :  { %v8930_v0 = vmul.f32 %v8800_v6, %v10926_v35  ;;  %10932 = vst [vmem:[#allocation63_spill] sm:$0xff] %v8952_v11  ;;  %v10938_v35 = vld [vmem:[#allocation67_spill] sm:$0xff]  ;;  %v8992_v11 = vrot.slane %v8944_v26, %v8644_v57 }
 0x4a6   :  { %v8970_v30 = vmul.f32 %v8800_v6, %v10938_v35  ;;  %v10946_v35 = vld [vmem:[#allocation76_spill] sm:$0xff] }
 0x4a7   :  { %10927 = vst [vmem:[#allocation61_spill] sm:$0xff] %v8930_v0  ;;  %10942 = vst [vmem:[#allocation92_spill] sm:$0xff] %v8992_v11 }
 0x4a8   :  { %5396 = vperm.xlu0 %6050, %v8722_v56   ;;  %5392 = vperm.xlu1 %6051, %v8726_v2   ;;  %v10921_v56 = vld [vmem:[#allocation44_spill] sm:$0xff] }
 0x4ac   :  { %5404 = vperm.xlu0 %6050, %v8770_v40   ;;  %5400 = vperm.xlu1 %6051, %v8774_v48   ;;  %v8892_v40 = vmul.f32 %v8800_v6, %v10915_v41  ;;  %v8910_v41 = vrot.slane %v8862_v37, %v8644_v57 }
 0x4ae   :  { %10916 = vst [vmem:[#allocation39_spill] sm:$0xff] %v8892_v40  ;;  %10920 = vst [vmem:[#allocation58_spill] sm:$0xff] %v8910_v41  ;;  %v8940_v15 = vrot.slane %v8892_v40, %v8644_v57 }
 0x4b0   :  { %5412 = vperm.xlu0 %6050, %v8812_v51   ;;  %5408 = vperm.xlu1 %6051, %v8822_v50   ;;  %v10912_v51 = vld [vmem:[#allocation66_spill] sm:$0xff]  ;;  %10929 = vst [vmem:[#allocation44_spill] sm:$0xff] %v8940_v15 }
 0x4b1   :  { %v8878_v46 = vmul.f32 %v8800_v6, %v10912_v51  ;;  %v8916_v51 = vmul.f32 %v8800_v6, %v10921_v56  ;;  %10925 = vst [vmem:[#allocation66_spill] sm:$0xff] %v8926_v45  ;;  %v10933_v56 = vld [vmem:[#allocation65_spill] sm:$0xff] }
 0x4b2   :  { %v8956_v25 = vmul.f32 %v8800_v6, %v10933_v56  ;;  %v8976_v56 = vrot.slane %v8926_v45, %v8644_v57 }
 0x4b3   :  { %10913 = vst [vmem:[#allocation37_spill] sm:$0xff] %v8878_v46  ;;  %10922 = vst [vmem:[#allocation64_spill] sm:$0xff] %v8916_v51  ;;  %v8962_v23 = vrot.slane %v8916_v51, %v8644_v57 }
 0x4b4   :  { %5420 = vperm.xlu0 %6050, %v8826_v55   ;;  %5416 = vperm.xlu1 %6051, %v8840_v62   ;;  %v8934_v55 = vrot.slane %v8878_v46, %v8644_v57  ;;  %10934 = vst [vmem:[#allocation45_spill] sm:$0xff] %v8956_v25  ;;  %10939 = vst [vmem:[#allocation67_spill] sm:$0xff] %v8976_v56  ;;  %v8996_v56 = vmul.f32 %v8800_v6, %v10943_v63 }
 0x4b5   :  { %10935 = vst [vmem:[#allocation65_spill] sm:$0xff] %v8962_v23  ;;  %v8982_v23 = vmul.f32 %v8800_v6, %v10940_v10  ;;  %v9004_v15 = vrot.slane %v8956_v25, %v8644_v57  ;;  %v9020_v10 = vmul.f32 %v8800_v6, %v10948_v59  ;;  %v10959_v59 = vld [vmem:[#allocation81_spill] sm:$0xff] }
 0x4b6   :  { %10928 = vst [vmem:[#allocation68_spill] sm:$0xff] %v8934_v55  ;;  %10944 = vst [vmem:[#allocation69_spill] sm:$0xff] %v8996_v56  ;;  %v10951_v55 = vld [vmem:[#allocation78_spill] sm:$0xff]  ;;  %v9060_v41 = vmul.f32 %v8800_v6, %v10959_v59 }
 0x4b7   :  { %10945 = vst [vmem:[#allocation93_spill] sm:$0xff] %v9004_v15  ;;  %10949 = vst [vmem:[#allocation70_spill] sm:$0xff] %v9020_v10  ;;  %v9024_v15 = vrot.slane %v8970_v30, %v8644_v57  ;;  %v9030_v11 = vmul.f32 %v8800_v6, %v10951_v55  ;;  %v10962_v55 = vld [vmem:[#allocation83_spill] sm:$0xff] }
 0x4b8   :  { %5444 = vperm.xlu0 %6050, %v8852_v18   ;;  %5440 = vperm.xlu1 %6051, %v8862_v37   ;;  %v10936_v18 = vld [vmem:[#allocation72_spill] sm:$0xff] }
 0x4b9   :  { %v8966_v19 = vmul.f32 %v8800_v6, %v10936_v18  ;;  %v8986_v18 = vrot.slane %v8930_v0, %v8644_v57  ;;  %10950 = vst [vmem:[#allocation94_spill] sm:$0xff] %v9024_v15  ;;  %v9044_v15 = vrot.slane %v8996_v56, %v8644_v57  ;;  %v9080_v59 = vrot.slane %v9030_v11, %v8644_v57 }
 0x4bb   :  { %10937 = vst [vmem:[#allocation72_spill] sm:$0xff] %v8966_v19  ;;  %10941 = vst [vmem:[#allocation74_spill] sm:$0xff] %v8986_v18  ;;  %v9008_v18 = vmul.f32 %v8800_v6, %v10946_v35  ;;  %v9014_v63 = vrot.slane %v8966_v19, %v8644_v57  ;;  %v10956_v35 = vld [vmem:[#allocation46_spill] sm:$0xff] }
 0x4bc   :  { %5452 = vperm.xlu0 %6050, %v8866_v47   ;;  %5448 = vperm.xlu1 %6051, %v8878_v46   ;;  %v9038_v47 = vrot.slane %v8982_v23, %v8644_v57  ;;  %10955 = vst [vmem:[#allocation95_spill] sm:$0xff] %v9044_v15  ;;  %v9048_v46 = vmul.f32 %v8800_v6, %v10956_v35  ;;  %10963 = vst [vmem:[#allocation83_spill] sm:$0xff] %v9080_v59 }
 0x4bd   :  { %10947 = vst [vmem:[#allocation76_spill] sm:$0xff] %v9014_v63  ;;  %v9034_v63 = vmul.f32 %v8800_v6, %v10952_v4  ;;  %v10957_v4 = vld [vmem:[#allocation73_spill] sm:$0xff]  ;;  %v9064_v15 = vrot.slane %v9008_v18, %v8644_v57  ;;  %v9086_v35 = vmul.f32 %v8800_v6, %v10964_v43  ;;  %v9100_v59 = vmul.f32 %v8800_v6, %v10968_v32 }
 0x4be   :  { %10954 = vst [vmem:[#allocation71_spill] sm:$0xff] %v9038_v47  ;;  %v9056_v47 = vmul.f32 %v8800_v6, %v10957_v4  ;;  %v9096_v4 = vmul.f32 %v8800_v6, %v10966_v1  ;;  %v9106_v43 = vrot.slane %v9048_v46, %v8644_v57  ;;  %v9114_v1 = vrot.slane %v9060_v41, %v8644_v57 }
 0x4bf   :  { %10953 = vst [vmem:[#allocation78_spill] sm:$0xff] %v9034_v63  ;;  %10960 = vst [vmem:[#allocation73_spill] sm:$0xff] %v9064_v15  ;;  %v9142_v20 = vrot.slane %v9086_v35, %v8644_v57 }
 0x4c0   :  { %5460 = vperm.xlu0 %6050, %v8892_v40   ;;  %5456 = vperm.xlu1 %6051, %v8904_v53   ;;  %10958 = vst [vmem:[#allocation46_spill] sm:$0xff] %v9056_v47  ;;  %v9070_v40 = vrot.slane %v9020_v10, %v8644_v57  ;;  %v9074_v53 = vmul.f32 %v8800_v6, %v10962_v55  ;;  %10967 = vst [vmem:[#allocation75_spill] sm:$0xff] %v9096_v4  ;;  %v10976_v55 = vld [vmem:[#allocation77_spill] sm:$0xff] }
 0x4c1   :  { %10969 = vst [vmem:[#allocation85_spill] sm:$0xff] %v9100_v59  ;;  %10970 = vst [vmem:[#allocation96_spill] sm:$0xff] %v9106_v43  ;;  %v10974_v43 = vcombine.high %v8603_v12, %v8603_v12  ;;  %v9132_v37 = vmul.f32 %v8800_v6, %v10976_v55  ;;  %v10983_v55 = vcombine.high %v8567_v33, %v8567_v33 }
 0x4c2   :  { %10961 = vst [vmem:[#allocation81_spill] sm:$0xff] %v9070_v40  ;;  %v9090_v40 = vrot.slane %v9034_v63, %v8644_v57  ;;  %10971 = vst [vmem:[#allocation97_spill] sm:$0xff] %v9114_v1  ;;  %v9128_v15 = vrot.slane %v9074_v53, %v8644_v57  ;;  %v10978_v1 = vld [vmem:[#allocation79_spill] sm:$0xff]  ;;  %v10985_v12 = vcombine.high %v8637_v34, %v8637_v34 }
 0x4c3   :  { %10977 = vst [vmem:[#allocation77_spill] sm:$0xff] %v9132_v37  ;;  %10980 = vst [vmem:[#allocation99_spill] sm:$0xff] %v9142_v20  ;;  %v2629_v32 = vrot.slane %v10983_v55, %v8644_v57  ;;  %v2630_v33 = vcombine.high %v8666_v27, %v8666_v27 }
 0x4c4   :  { %10965 = vst [vmem:[#allocation84_spill] sm:$0xff] %v9090_v40  ;;  %5468 = vperm.xlu0 %6050, %v8916_v51   ;;  %5464 = vperm.xlu1 %6051, %v8926_v45   ;;  %v10972_v40 = vld [vmem:[#allocation86_spill] sm:$0xff]  ;;  %v2782_v45 = vrot.slane %v10974_v43, %v8644_v57  ;;  %10975 = vst [vmem:[#allocation98_spill] sm:$0xff] %v9128_v15  ;;  %v10981_v43 = vld [vmem:[#allocation43_spill] sm:$0xff]  ;;  %v2867_v20 = vrot.slane %v10985_v12, %v8644_v57 }
 0x4c5   :  { %v9120_v51 = vmul.f32 %v8800_v6, %v10972_v40  ;;  %v9138_v40 = vmul.f32 %v8800_v6, %v10978_v1  ;;  %v9148_v15 = vmul.f32 %v8559_v36, %v10981_v43  ;;  %v9158_v1 = vrot.slane %v9100_v59, %v8644_v57  ;;  %v10990_v59 = vld [vmem:[#allocation80_spill] sm:$0xff]  ;;  %v10992_v12 = vld [vmem:[#allocation87_spill] sm:$0xff] }
 0x4c6   :  { %v10986_v43 = vcombine.high %v8563_v31, %v8563_v31  ;;  %v9180_v34 = vmul.f32 %v8800_v6, %v10990_v59  ;;  %v9184_v31 = vmul.f32 %v8800_v6, %v10992_v12  ;;  %v2631_v5 = vcombine.high %v2629_v32, %v2629_v32 }
 0x4c7   :  { %10973 = vst [vmem:[#allocation86_spill] sm:$0xff] %v9120_v51  ;;  %10979 = vst [vmem:[#allocation79_spill] sm:$0xff] %v9138_v40  ;;  %v9172_v55 = vrot.slane %v9120_v51, %v8644_v57  ;;  %v2868_v59 = vcombine.high %v8778_v52, %v8778_v52  ;;  %v9202_v12 = vrot.slane %v9148_v15, %v8644_v57 }
 0x4c8   :  { %10982 = vst [vmem:[#allocation43_spill] sm:$0xff] %v9148_v15  ;;  %5476 = vperm.xlu0 %6050, %v8930_v0   ;;  %5472 = vperm.xlu1 %6051, %v8944_v26   ;;  %10984 = vst [vmem:[#allocation100_spill] sm:$0xff] %v9158_v1  ;;  %v2646_v40 = vrot.slane %v10986_v43, %v8644_v57  ;;  %v10988_v0 = vld [vmem:[#allocation55_spill] sm:$0xff]  ;;  %v2784_v26 = vcombine.high %v2782_v45, %v2782_v45 }
 0x4c9   :  { %10987 = vst [vmem:[#allocation101_spill] sm:$0xff] %v9172_v55  ;;  %v9176_v1 = vmul.f32 %v8559_v36, %v10988_v0  ;;  %10991 = vst [vmem:[#allocation80_spill] sm:$0xff] %v9180_v34  ;;  %v2783_v43 = vcombine.high %v8718_v3, %v8718_v3  ;;  %v10993_v0 = vld [vmem:[#allocation62_spill] sm:$0xff]  ;;  %v2869_v6 = vcombine.high %v2867_v20, %v2867_v20 }
 0x4ca   :  { %v9194_v51 = vmul.f32 %v8559_v36, %v10993_v0  ;;  %10994 = vst [vmem:[#allocation87_spill] sm:$0xff] %v9202_v12  ;;  %v2648_v34 = vcombine.high %v2646_v40, %v2646_v40  ;;  %v3857_v36 = vcombine.low %v2782_v45, %v2784_v26  ;;  %v3703_v15 = vcombine.low %v8666_v27, %v2630_v33 }
 0x4cb   :  { %10989 = vst [vmem:[#allocation55_spill] sm:$0xff] %v9176_v1  ;;  %v9208_v0 = vrot.slane %v9176_v1, %v8644_v57  ;;  %v3856_v12 = vcombine.low %v8718_v3, %v2783_v43  ;;  %v2647_v55 = vcombine.high %v8660_v39, %v8660_v39  ;;  %v9222_v1 = vrot.slane %v9184_v31, %v8644_v57 }
 0x4cc   :  { %5484 = vperm.xlu0 %6050, %v8956_v25   ;;  %5480 = vperm.xlu1 %6051, %v8966_v19   ;;  %v10995_v25 = vcombine.high %v8652_v58, %v8652_v58  ;;  %v3704_v45 = vcombine.low %v2629_v32, %v2631_v5  ;;  %v3941_v26 = vcombine.low %v8778_v52, %v2868_v59 }
 0x4cd   :  { %v10996_v58 = vcombine.high %v8577_v60, %v8577_v60  ;;  %v3942_v3 = vcombine.low %v2867_v20, %v2869_v6  ;;  %v3721_v33 = vcombine.low %v2646_v40, %v2648_v34  ;;  %v9235_v43 = vrot.slane %v9194_v51, %v8644_v57 }
 0x4ce   :  { %v2901_v7 = vrot.slane %v10995_v25, %v8644_v57  ;;  %v3871_v5 = vrot.slane %v3857_v36, %v8644_v57  ;;  %v10997_v60 = vcombine.high %v8676_v54, %v8676_v54  ;;  %v3864_v59 = vrot.slane %v3856_v12, %v8644_v57 }
 0x4cf   :  { %v2663_v25 = vrot.slane %v10996_v58, %v8644_v57  ;;  %v3711_v58 = vrot.slane %v3703_v15, %v8644_v57  ;;  %v3720_v19 = vcombine.low %v8660_v39, %v2647_v55  ;;  %v2902_v20 = vcombine.high %v8790_v44, %v8790_v44 }
 0x4d0   :  { %5492 = vperm.xlu0 %6050, %v8970_v30   ;;  %5488 = vperm.xlu1 %6051, %v8982_v23   ;;  %v2903_v52 = vcombine.high %v2901_v7, %v2901_v7  ;;  %v2935_v32 = vrot.slane %v10997_v60, %v8644_v57  ;;  %v3718_v6 = vrot.slane %v3704_v45, %v8644_v57 }
 0x4d1   :  { %v3949_v40 = vrot.slane %v3941_v26, %v8644_v57  ;;  %v2664_v36 = vcombine.high %v8686_v9, %v8686_v9  ;;  %v2665_v34 = vcombine.high %v2663_v25, %v2663_v25  ;;  %v3956_v54 = vrot.slane %v3942_v3, %v8644_v57 }
 0x4d2   :  { %v3735_v15 = vrot.slane %v3721_v33, %v8644_v57  ;;  %v10998_v39 = vcombine.high %v8573_v49, %v8573_v49  ;;  %v9259_v12 = vcombine.low %v3864_v59, %v3871_v5  ;;  %v3976_v45 = vcombine.low %v2901_v7, %v2903_v52 }
 0x4d3   :  { %v2937_v26 = vcombine.high %v2935_v32, %v2935_v32  ;;  %v10999_v60 = vcombine.high %v8726_v2, %v8726_v2  ;;  %v3975_v3 = vcombine.low %v8790_v44, %v2902_v20  ;;  %v2936_v33 = vcombine.high %v8806_v61, %v8806_v61 }
 0x4d4   :  { %5500 = vperm.xlu0 %6050, %v8996_v56   ;;  %5496 = vperm.xlu1 %6051, %v9008_v18   ;;  %v2680_v55 = vrot.slane %v10998_v39, %v8644_v57  ;;  %v3728_v56 = vrot.slane %v3720_v19, %v8644_v57  ;;  %v11000_v49 = vcombine.high %v8587_v14, %v8587_v14 }
 0x4d5   :  { %v2969_v27 = vrot.slane %v10999_v60, %v8644_v57  ;;  %v9273_v59 = vcombine.low %v3711_v58, %v3718_v6  ;;  %v3737_v7 = vcombine.low %v8686_v9, %v2664_v36  ;;  %v3738_v52 = vcombine.low %v2663_v25, %v2665_v34 }
 0x4d6   :  { %v2697_v5 = vrot.slane %v11000_v49, %v8644_v57  ;;  %v2681_v2 = vcombine.high %v8680_v17, %v8680_v17  ;;  %v9280_v19 = vcombine.low %v3949_v40, %v3956_v54  ;;  %v9282_v44 = vcombine.low %v3728_v56, %v3735_v15 }
 0x4d7   :  { %v2682_v20 = vcombine.high %v2680_v55, %v2680_v55  ;;  %v3990_v14 = vrot.slane %v3976_v45, %v8644_v57  ;;  %v4010_v39 = vcombine.low %v2935_v32, %v2937_v26  ;;  %v2971_v58 = vcombine.high %v2969_v27, %v2969_v27 }
 0x4d8   :  { %5508 = vperm.xlu0 %6050, %v9020_v10   ;;  %5504 = vperm.xlu1 %6051, %v9030_v11   ;;  %v11001_v9 = vcombine.high %v8774_v48, %v8774_v48  ;;  %v3983_v6 = vrot.slane %v3975_v3, %v8644_v57  ;;  %v4009_v36 = vcombine.low %v8806_v61, %v2936_v33 }
 0x4d9   :  { %v2970_v40 = vcombine.high %v8830_v24, %v8830_v24  ;;  %v2699_v34 = vcombine.high %v2697_v5, %v2697_v5  ;;  %v3745_v56 = vrot.slane %v3737_v7, %v8644_v57  ;;  %v3752_v54 = vrot.slane %v3738_v52, %v8644_v57 }
 0x4da   :  { %v3003_v25 = vrot.slane %v11001_v9, %v8644_v57  ;;  %v3754_v32 = vcombine.low %v8680_v17, %v2681_v2  ;;  %v11002_v15 = vcombine.high %v8583_v22, %v8583_v22  ;;  %v3755_v61 = vcombine.low %v2680_v55, %v2682_v20 }
 0x4db   :  { %v2698_v45 = vcombine.high %v8698_v8, %v8698_v8  ;;  %v11003_v26 = vcombine.high %v8822_v50, %v8822_v50  ;;  %v9308_v3 = vcombine.low %v3983_v6, %v3990_v14  ;;  %v4024_v17 = vrot.slane %v4010_v39, %v8644_v57 }
 0x4dc   :  { %v2714_v48 = vrot.slane %v11002_v15, %v8644_v57  ;;  %5516 = vperm.xlu0 %6050, %v9034_v63   ;;  %5512 = vperm.xlu1 %6051, %v9048_v46   ;;  %v4044_v33 = vcombine.low %v2969_v27, %v2971_v58  ;;  %v3005_v22 = vcombine.high %v3003_v25, %v3003_v25  ;;  %v11025_v63 = vld [vmem:[#allocation58_spill] sm:$0xff] }
 0x4dd   :  { %v3037_v60 = vrot.slane %v11003_v26, %v8644_v57  ;;  %v4017_v49 = vrot.slane %v4009_v36, %v8644_v57  ;;  %v4043_v7 = vcombine.low %v8830_v24, %v2970_v40  ;;  %v3772_v52 = vcombine.low %v2697_v5, %v2699_v34 }
 0x4de   :  { %v3004_v55 = vcombine.high %v8846_v28, %v8846_v28  ;;  %v9315_v2 = vcombine.low %v3745_v56, %v3752_v54  ;;  %v3762_v20 = vrot.slane %v3754_v32, %v8644_v57  ;;  %v2716_v50 = vcombine.high %v2714_v48, %v2714_v48 }
 0x4df   :  { %v11004_v14 = vcombine.high %v8597_v13, %v8597_v13  ;;  %v3769_v24 = vrot.slane %v3755_v61, %v8644_v57  ;;  %v3771_v27 = vcombine.low %v8698_v8, %v2698_v45  ;;  %v3039_v5 = vcombine.high %v3037_v60, %v3037_v60 }
 0x4e0   :  { %5524 = vperm.xlu0 %6050, %v9056_v47   ;;  %5520 = vperm.xlu1 %6051, %v9060_v41   ;;  %v9326_v58 = vcombine.low %v4017_v49, %v4024_v17  ;;  %v4058_v9 = vrot.slane %v4044_v33, %v8644_v57  ;;  %v4078_v6 = vcombine.low %v3003_v25, %v3005_v22 }
 0x4e1   :  { %v2731_v39 = vrot.slane %v11004_v14, %v8644_v57  ;;  %v2715_v36 = vcombine.high %v8692_v42, %v8692_v42  ;;  %v4051_v13 = vrot.slane %v4043_v7, %v8644_v57  ;;  %v3786_v40 = vrot.slane %v3772_v52, %v8644_v57  ;;  %v11007_v14 = vld [vmem:[#allocation43_spill] sm:$0xff] }
 0x4e2   :  { %v4077_v34 = vcombine.low %v8846_v28, %v3004_v55  ;;  %v3038_v56 = vcombine.high %v8872_v21, %v8872_v21  ;;  %v3789_v54 = vcombine.low %v2714_v48, %v2716_v50  ;;  %v11005_v32 = vcombine.high %v8840_v62, %v8840_v62 }
 0x4e3   :  { %v2733_v8 = vcombine.high %v2731_v39, %v2731_v39  ;;  %v11006_v25 = vcombine.high %v8593_v29, %v8593_v29  ;;  %v3779_v28 = vrot.slane %v3771_v27, %v8644_v57  ;;  %v4112_v45 = vcombine.low %v3037_v60, %v3039_v5 }
 0x4e4   :  { %v3071_v15 = vrot.slane %v11005_v32, %v8644_v57  ;;  %5532 = vperm.xlu0 %6050, %v9096_v4   ;;  %5528 = vperm.xlu1 %6051, %v9074_v53   ;;  %v2732_v48 = vcombine.high %v8712_v38, %v8712_v38  ;;  %v9349_v26 = vcombine.low %v3762_v20, %v3769_v24  ;;  %v11026_v4 = vld [vmem:[#allocation37_spill] sm:$0xff] }
 0x4e5   :  { %v2748_v61 = vrot.slane %v11006_v25, %v8644_v57  ;;  %v9351_v17 = vcombine.low %v4051_v13, %v4058_v9  ;;  %v4092_v62 = vrot.slane %v4078_v6, %v8644_v57  ;;  %v3788_v33 = vcombine.low %v8692_v42, %v2715_v36  ;;  %v11010_v6 = vld [vmem:[#allocation91_spill] sm:$0xff] }
 0x4e6   :  { %v9355_v29 = vcombine.low %v3779_v28, %v3786_v40  ;;  %v4085_v22 = vrot.slane %v4077_v34, %v8644_v57  ;;  %v4111_v49 = vcombine.low %v8872_v21, %v3038_v56  ;;  %v3072_v60 = vcombine.high %v8888_v16, %v8888_v16 }
 0x4e7   :  { %v3803_v7 = vrot.slane %v3789_v54, %v8644_v57  ;;  %v3806_v52 = vcombine.low %v2731_v39, %v2733_v8  ;;  %v3073_v55 = vcombine.high %v3071_v15, %v3071_v15  ;;  %v2750_v20 = vcombine.high %v2748_v61, %v2748_v61  ;;  %v11009_v39 = vld [vmem:[#allocation21_spill] sm:$0xff]  ;;  %v11013_v54 = vld [vmem:[#allocation90_spill] sm:$0xff] }
 0x4e8   :  { %5540 = vperm.xlu0 %6050, %v9132_v37   ;;  %5536 = vperm.xlu1 %6051, %v9086_v35   ;;  %v4126_v42 = vrot.slane %v4112_v45, %v8644_v57  ;;  %v3805_v50 = vcombine.low %v8712_v38, %v2732_v48  ;;  %v11008_v21 = vcombine.high %v11007_v14, %v11007_v14 }
 0x4e9   :  { %v9370_v27 = vcombine.low %v4085_v22, %v4092_v62  ;;  %v3796_v5 = vrot.slane %v3788_v33, %v8644_v57  ;;  %v2749_v9 = vcombine.high %v11009_v39, %v11009_v39  ;;  %v11011_v36 = vcombine.high %v11010_v6, %v11010_v6  ;;  %v11015_v62 = vld [vmem:[#allocation79_spill] sm:$0xff]  ;;  %v11016_v33 = vld [vmem:[#allocation85_spill] sm:$0xff] }
 0x4ea   :  { %v3105_v24 = vrot.slane %v11008_v21, %v8644_v57  ;;  %v4119_v40 = vrot.slane %v4111_v49, %v8644_v57  ;;  %v4145_v38 = vcombine.low %v8888_v16, %v3072_v60  ;;  %v11012_v34 = vcombine.high %v9194_v51, %v9194_v51  ;;  %v11017_v21 = vld [vmem:[#allocation87_spill] sm:$0xff] }
 0x4eb   :  { %v2765_v13 = vrot.slane %v11011_v36, %v8644_v57  ;;  %v11014_v8 = vcombine.high %v11013_v54, %v11013_v54  ;;  %v9389_v25 = vcombine.low %v3796_v5, %v3803_v7  ;;  %v3820_v28 = vrot.slane %v3806_v52, %v8644_v57  ;;  %v11018_v5 = vld [vmem:[#allocation56_spill] sm:$0xff] }
 0x4ec   :  { %v3139_v56 = vrot.slane %v11012_v34, %v8644_v57  ;;  %v4146_v45 = vcombine.low %v3071_v15, %v3073_v55  ;;  %v3823_v48 = vcombine.low %v2748_v61, %v2750_v20  ;;  %5548 = vperm.xlu0 %6050, %v11015_v62   ;;  %5544 = vperm.xlu1 %6051, %v11016_v33   ;;  %v11020_v55 = vld [vmem:[#allocation7_spill] sm:$0xff] }
 0x4ed   :  { %v2799_v32 = vrot.slane %v11014_v8, %v8644_v57  ;;  %v9394_v16 = vcombine.low %v4119_v40, %v4126_v42  ;;  %v3813_v22 = vrot.slane %v3805_v50, %v8644_v57  ;;  %v3107_v49 = vcombine.high %v3105_v24, %v3105_v24  ;;  %v11021_v40 = vld [vmem:[#allocation88_spill] sm:$0xff]  ;;  %v11023_v8 = vld [vmem:[#allocation86_spill] sm:$0xff] }
 0x4ee   :  { %v3822_v60 = vcombine.low %v11009_v39, %v2749_v9  ;;  %v3106_v6 = vcombine.high %v11017_v21, %v11017_v21  ;;  %v2767_v7 = vcombine.high %v2765_v13, %v2765_v13  ;;  %v11019_v15 = vcombine.high %v11018_v5, %v11018_v5 }
 0x4ef   :  { %v4153_v52 = vrot.slane %v4145_v38, %v8644_v57  ;;  %v2766_v20 = vcombine.high %v11020_v55, %v11020_v55  ;;  %v3141_v42 = vcombine.high %v3139_v56, %v3139_v56  ;;  %v2801_v36 = vcombine.high %v2799_v32, %v2799_v32 }
 0x4f0   :  { %v3173_v61 = vrot.slane %v11019_v15, %v8644_v57  ;;  %v9407_v50 = vcombine.low %v3813_v22, %v3820_v28  ;;  %v4160_v39 = vrot.slane %v4146_v45, %v8644_v57  ;;  %v3837_v9 = vrot.slane %v3823_v48, %v8644_v57  ;;  %5552 = vperm.xlu0 %6050, %v11023_v8   ;;  %v11024_v15 = vld [vmem:[#allocation27_spill] sm:$0xff] }
 0x4f1   :  { %v11022_v34 = vcombine.high %v11021_v40, %v11021_v40  ;;  %5424 = vperm.xlu1 %6051, %v11007_v14   ;;  %v4180_v38 = vcombine.low %v3105_v24, %v3107_v49  ;;  %v3140_v5 = vcombine.high %v9235_v43, %v9235_v43  ;;  %v2800_v28 = vcombine.high %v11024_v15, %v11024_v15 }
 0x4f2   :  { %v3830_v45 = vrot.slane %v3822_v60, %v8644_v57  ;;  %v4179_v48 = vcombine.low %v11017_v21, %v3106_v6  ;;  %v3840_v22 = vcombine.low %v2765_v13, %v2767_v7  ;;  %v3175_v62 = vcombine.high %v3173_v61, %v3173_v61  ;;  %v11028_v21 = vld [vmem:[#allocation80_spill] sm:$0xff]  ;;  %v11029_v13 = vld [vmem:[#allocation55_spill] sm:$0xff] }
 0x4f3   :  { %v2816_v54 = vrot.slane %v11022_v34, %v8644_v57  ;;  %v3839_v40 = vcombine.low %v11020_v55, %v2766_v20  ;;  %v4214_v34 = vcombine.low %v3139_v56, %v3141_v42  ;;  %v3874_v37 = vcombine.low %v2799_v32, %v2801_v36  ;;  %v11030_v20 = vld [vmem:[#allocation25_spill] sm:$0xff] }
 0x4f4   :  { %v3174_v14 = vcombine.high %v11025_v63, %v11025_v63  ;;  %v9426_v24 = vcombine.low %v4153_v52, %v4160_v39  ;;  %v9428_v49 = vcombine.low %v3830_v45, %v3837_v9  ;;  %v11027_v60 = vcombine.high %v11026_v4, %v11026_v4  ;;  %5556 = vperm.xlu0 %6050, %v11028_v21  }
 0x4f5   :  { %v2818_v10 = vcombine.high %v2816_v54, %v2816_v54  ;;  %5428 = vperm.xlu1 %6051, %v11029_v13   ;;  %v4194_v56 = vrot.slane %v4180_v38, %v8644_v57  ;;  %v4213_v32 = vcombine.low %v9235_v43, %v3140_v5  ;;  %v3873_v6 = vcombine.low %v11024_v15, %v2800_v28  ;;  %v11031_v43 = vld [vmem:[#allocation68_spill] sm:$0xff]  ;;  %v11032_v28 = vld [vmem:[#allocation23_spill] sm:$0xff] }
 0x4f6   :  { %v3207_v47 = vrot.slane %v11027_v60, %v8644_v57  ;;  %v4187_v7 = vrot.slane %v4179_v48, %v8644_v57  ;;  %v3854_v52 = vrot.slane %v3840_v22, %v8644_v57  ;;  %v4248_v55 = vcombine.low %v3173_v61, %v3175_v62  ;;  %v11034_v22 = vld [vmem:[#allocation60_spill] sm:$0xff] }
 0x4f7   :  { %v2817_v42 = vcombine.high %v11030_v20, %v11030_v20  ;;  %v3847_v4 = vrot.slane %v3839_v40, %v8644_v57  ;;  %v4228_v36 = vrot.slane %v4214_v34, %v8644_v57  ;;  %v3888_v39 = vrot.slane %v3874_v37, %v8644_v57 }
 0x4f8   :  { %v4247_v9 = vcombine.low %v11025_v63, %v3174_v14  ;;  %v3891_v38 = vcombine.low %v2816_v54, %v2818_v10  ;;  %v3208_v5 = vcombine.high %v11031_v43, %v11031_v43  ;;  %v3209_v15 = vcombine.high %v3207_v47, %v3207_v47  ;;  %5560 = vperm.xlu0 %6050, %v9184_v31  }
 0x4f9   :  { %v11033_v62 = vcombine.high %v11032_v28, %v11032_v28  ;;  %5432 = vperm.xlu1 %6051, %v9194_v51   ;;  %v9455_v45 = vcombine.low %v4187_v7, %v4194_v56  ;;  %v4221_v37 = vrot.slane %v4213_v32, %v8644_v57  ;;  %v3881_v63 = vrot.slane %v3873_v6, %v8644_v57  ;;  %v11036_v56 = vld [vmem:[#allocation34_spill] sm:$0xff]  ;;  %v11039_v28 = vld [vmem:[#allocation63_spill] sm:$0xff] }
 0x4fa   :  { %v9459_v10 = vcombine.low %v3847_v4, %v3854_v52  ;;  %v4262_v54 = vrot.slane %v4248_v55, %v8644_v57  ;;  %v3890_v48 = vcombine.low %v11030_v20, %v2817_v42  ;;  %v11035_v40 = vcombine.high %v11034_v22, %v11034_v22  ;;  %v6312_v4 = vld [vmem:[%s10407_s0 + $0x8] sm:$0xff] }
 0x4fb   :  { %v2833_v61 = vrot.slane %v11033_v62, %v8644_v57  ;;  %v9467_v14 = vcombine.low %v4221_v37, %v4228_v36  ;;  %v9469_v51 = vcombine.low %v3881_v63, %v3888_v39  ;;  %v4255_v60 = vrot.slane %v4247_v9, %v8644_v57  ;;  %v5317_v6 = vpop.permute.xlu0 %5316  ;;  %v5313_v7 = vpop.permute.xlu1 %5312  ;;  %v6313_v39 = vld [vmem:[%s10407_s0] sm:$0xff] }
 0x4fc   :  { %v3241_v34 = vrot.slane %v11035_v40, %v8644_v57  ;;  %v2834_v32 = vcombine.high %v11036_v56, %v11036_v56  ;;  %v3905_v52 = vrot.slane %v3891_v38, %v8644_v57  ;;  %v4281_v55 = vcombine.low %v11031_v43, %v3208_v5  ;;  %4792 = vperm.xlu0 %6050, %v9273_v59   ;;  %v11037_v38 = vld [vmem:[#allocation14_spill] sm:$0xff] }
 0x4fd   :  { %v4282_v20 = vcombine.low %v3207_v47, %v3209_v15  ;;  %v2835_v42 = vcombine.high %v2833_v61, %v2833_v61  ;;  %v5568_v36 = vmul.f32 %v6312_v4, %v5317_v6  ;;  %v5567_v9 = vmul.f32 %v6313_v39, %v5313_v7  ;;  %4819 = vperm.xlu1 %6051, %v9259_v12   ;;  %v11042_v59 = vld [vmem:[#allocation66_spill] sm:$0xff] }
 0x4fe   :  { %v11038_v43 = vcombine.high %v11037_v38, %v11037_v38  ;;  %v9488_v5 = vcombine.low %v4255_v60, %v4262_v54  ;;  %v3898_v15 = vrot.slane %v3890_v48, %v8644_v57  ;;  %v3242_v62 = vcombine.high %v11039_v28, %v11039_v28 }
 0x4ff   :  { %v3243_v37 = vcombine.high %v3241_v34, %v3241_v34  ;;  %v5632_v63 = vsel %vm11040_vm14, %v5568_v36, 0.0  ;;  %v5631_v22 = vsel %vm11041_vm9, %v5567_v9, 0.0  ;;  %v3907_v12 = vcombine.low %v11036_v56, %v2834_v32  ;;  %v5325_v7 = vpop.permute.xlu0 %5324  ;;  %v5321_v54 = vpop.permute.xlu1 %5320  ;;  %v6314_v36 = vld [vmem:[%s10407_s0 + $0x18] sm:$0xff]  ;;  %v6315_v56 = vld [vmem:[%s10407_s0 + $0x10] sm:$0xff]  ;;  %vm11049_vm14 = vmmov %vm11041_vm9 }
 0x500   :  { %v2850_v47 = vrot.slane %v11038_v43, %v8644_v57  ;;  %v11043_v40 = vcombine.high %v11042_v59, %v11042_v59  ;;  %v9500_v60 = vcombine.low %v3898_v15, %v3905_v52  ;;  %v4289_v48 = vrot.slane %v4281_v55, %v8644_v57  ;;  %4795 = vperm.xlu0 %6050, %v9282_v44   ;;  %v11046_v15 = vld [vmem:[#allocation67_spill] sm:$0xff] }
 0x501   :  { %v4296_v4 = vrot.slane %v4282_v20, %v8644_v57  ;;  %v3908_v39 = vcombine.low %v2833_v61, %v2835_v42  ;;  %v5570_v9 = vmul.f32 %v6314_v36, %v5325_v7  ;;  %v5569_v32 = vmul.f32 %v6315_v56, %v5321_v54  ;;  %4834 = vperm.xlu1 %6051, %v9280_v19   ;;  %v11044_v61 = vld [vmem:[#allocation33_spill] sm:$0xff] }
 0x502   :  { %v3275_v6 = vrot.slane %v11043_v40, %v8644_v57  ;;  %v2852_v52 = vcombine.high %v2850_v47, %v2850_v47  ;;  %v5633_v38 = vadd.f32 %v5632_v63, %v5631_v22  ;;  %v4315_v55 = vcombine.low %v11039_v28, %v3242_v62  ;;  %v11047_v7 = vld [vmem:[#allocation9_spill] sm:$0xff] }
 0x503   :  { %v4316_v20 = vcombine.low %v3241_v34, %v3243_v37  ;;  %v2851_v42 = vcombine.high %v11044_v61, %v11044_v61  ;;  %v5634_v43 = vsel %vm11045_vm10, %v5569_v32, 0.0  ;;  %v3276_v59 = vcombine.high %v11046_v15, %v11046_v15  ;;  %v5333_v36 = vpop.permute.xlu0 %5332  ;;  %v5329_v63 = vpop.permute.xlu1 %5328  ;;  %v6316_v37 = vld [vmem:[%s10407_s0 + $0x28] sm:$0xff]  ;;  %v6317_v32 = vld [vmem:[%s10407_s0 + $0x20] sm:$0xff]  ;;  %vm11053_vm10 = vmmov %vm11041_vm9 }
 0x504   :  { %v3277_v40 = vcombine.high %v3275_v6, %v3275_v6  ;;  %v11048_v19 = vcombine.high %v11047_v7, %v11047_v7  ;;  %v5635_v44 = vadd.f32 %v5634_v43, %v5633_v38  ;;  %v9522_v22 = vcombine.low %v4289_v48, %v4296_v4  ;;  %4798 = vperm.xlu0 %6050, %v9315_v2   ;;  %v11050_v2 = vld [vmem:[#allocation47_spill] sm:$0xff] }
 0x505   :  { %v3915_v34 = vrot.slane %v3907_v12, %v8644_v57  ;;  %v3922_v28 = vrot.slane %v3908_v39, %v8644_v57  ;;  %v5636_v62 = vsel %vm11049_vm14, %v5570_v9, 0.0  ;;  %v5572_v56 = vmul.f32 %v6316_v37, %v5333_v36  ;;  %4840 = vperm.xlu1 %6051, %v9308_v3   ;;  %vm11056_vm14 = vmmov %vm11041_vm9 }
 0x506   :  { %v2884_v54 = vrot.slane %v11048_v19, %v8644_v57  ;;  %v5571_v38 = vmul.f32 %v6317_v32, %v5329_v63  ;;  %v3925_v48 = vcombine.low %v2850_v47, %v2852_v52  ;;  %v5637_v12 = vadd.f32 %v5636_v62, %v5635_v44  ;;  %v11051_v52 = vld [vmem:[#allocation42_spill] sm:$0xff]  ;;  %v11054_v62 = vld [vmem:[#allocation15_spill] sm:$0xff] }
 0x507   :  { %v4323_v4 = vrot.slane %v4315_v55, %v8644_v57  ;;  %v4330_v39 = vrot.slane %v4316_v20, %v8644_v57  ;;  %v3924_v9 = vcombine.low %v11044_v61, %v2851_v42  ;;  %v4349_v7 = vcombine.low %v11046_v15, %v3276_v59  ;;  %v5341_v63 = vpop.permute.xlu0 %5340  ;;  %v5337_v32 = vpop.permute.xlu1 %5336  ;;  %v6319_v15 = vld [vmem:[%s10407_s0 + $0x30] sm:$0xff] }
 0x508   :  { %v5638_v43 = vsel %vm11041_vm9, %v5571_v38, 0.0  ;;  %v4350_v19 = vcombine.low %v3275_v6, %v3277_v40  ;;  %v2886_v36 = vcombine.high %v2884_v54, %v2884_v54  ;;  %v9540_v3 = vcombine.low %v3915_v34, %v3922_v28  ;;  %v6318_v6 = vld [vmem:[%s10407_s0 + $0x38] sm:$0xff]  ;;  %4801 = vperm.xlu0 %6050, %v9349_v26  }
 0x509   :  { %v5639_v37 = vadd.f32 %v5638_v43, %v5637_v12  ;;  %v2885_v47 = vcombine.high %v11050_v2, %v11050_v2  ;;  %v11052_v55 = vcombine.high %v11051_v52, %v11051_v52  ;;  %v5640_v61 = vsel %vm11053_vm10, %v5572_v56, 0.0  ;;  %4846 = vperm.xlu1 %6051, %v9326_v58   ;;  %vm11061_vm10 = vmmov %vm11041_vm9 }
 0x50a   :  { %v5574_v42 = vmul.f32 %v6318_v6, %v5341_v63  ;;  %v5573_v59 = vmul.f32 %v6319_v15, %v5337_v32  ;;  %v3939_v40 = vrot.slane %v3925_v48, %v8644_v57  ;;  %v9558_v34 = vcombine.low %v4323_v4, %v4330_v39  ;;  %v11057_v39 = vld [vmem:[#allocation92_spill] sm:$0xff] }
 0x50b   :  { %v3309_v20 = vrot.slane %v11052_v55, %v8644_v57  ;;  %v5641_v44 = vadd.f32 %v5640_v61, %v5639_v37  ;;  %v3932_v28 = vrot.slane %v3924_v9, %v8644_v57  ;;  %v11055_v56 = vcombine.high %v11054_v62, %v11054_v62  ;;  %v5349_v32 = vpop.permute.xlu0 %5348  ;;  %v5345_v48 = vpop.permute.xlu1 %5344  ;;  %v6320_v55 = vld [vmem:[%s10407_s0 + $0x48] sm:$0xff] }
 0x50c   :  { %v5642_v12 = vsel %vm11056_vm14, %v5573_v59, 0.0  ;;  %v4357_v43 = vrot.slane %v4349_v7, %v8644_v57  ;;  %v4364_v58 = vrot.slane %v4350_v19, %v8644_v57  ;;  %v3959_v63 = vcombine.low %v2884_v54, %v2886_v36  ;;  %v6321_v54 = vld [vmem:[%s10407_s0 + $0x40] sm:$0xff]  ;;  %4804 = vperm.xlu0 %6050, %v9355_v29   ;;  %v11062_v29 = vld [vmem:[#allocation12_spill] sm:$0xff]  ;;  %vm11064_vm14 = vmmov %vm11041_vm9 }
 0x50d   :  { %v2918_v38 = vrot.slane %v11055_v56, %v8644_v57  ;;  %v5643_v26 = vadd.f32 %v5642_v12, %v5641_v44  ;;  %v3958_v4 = vcombine.low %v11050_v2, %v2885_v47  ;;  %v3310_v9 = vcombine.high %v11057_v39, %v11057_v39  ;;  %4852 = vperm.xlu1 %6051, %v9351_v17   ;;  %v11058_v2 = vld [vmem:[#allocation49_spill] sm:$0xff] }
 0x50e   :  { %v3311_v37 = vcombine.high %v3309_v20, %v3309_v20  ;;  %v5644_v52 = vsel %vm11041_vm9, %v5574_v42, 0.0  ;;  %v5576_v61 = vmul.f32 %v6320_v55, %v5349_v32  ;;  %v5575_v7 = vmul.f32 %v6321_v54, %v5345_v48  ;;  %v11059_v42 = vld [vmem:[#allocation72_spill] sm:$0xff] }
 0x50f   :  { %v9580_v19 = vcombine.low %v3932_v28, %v3939_v40  ;;  %v5645_v36 = vadd.f32 %v5644_v52, %v5643_v26  ;;  %v2919_v47 = vcombine.high %v11058_v2, %v11058_v2  ;;  %v2920_v6 = vcombine.high %v2918_v38, %v2918_v38  ;;  %v5357_v12 = vpop.permute.xlu0 %5356  ;;  %v5353_v26 = vpop.permute.xlu1 %5352 }
 0x510   :  { %v11060_v15 = vcombine.high %v11059_v42, %v11059_v42  ;;  %v5646_v44 = vsel %vm11061_vm10, %v5575_v7, 0.0  ;;  %v9589_v62 = vcombine.low %v4357_v43, %v4364_v58  ;;  %v3973_v17 = vrot.slane %v3959_v63, %v8644_v57  ;;  %v6322_v43 = vld [vmem:[%s10407_s0 + $0x58] sm:$0xff]  ;;  %v6323_v63 = vld [vmem:[%s10407_s0 + $0x50] sm:$0xff]  ;;  %4807 = vperm.xlu0 %6050, %v9389_v25   ;;  %vm11068_vm10 = vmmov %vm11041_vm9 }
 0x511   :  { %v11063_v40 = vcombine.high %v11062_v29, %v11062_v29  ;;  %v5647_v56 = vadd.f32 %v5646_v44, %v5645_v36  ;;  %v3966_v32 = vrot.slane %v3958_v4, %v8644_v57  ;;  %v4383_v48 = vcombine.low %v11057_v39, %v3310_v9  ;;  %4858 = vperm.xlu1 %6051, %v9370_v27   ;;  %v11065_v4 = vld [vmem:[#allocation76_spill] sm:$0xff] }
 0x512   :  { %v3343_v59 = vrot.slane %v11060_v15, %v8644_v57  ;;  %v4384_v52 = vcombine.low %v3309_v20, %v3311_v37  ;;  %v5648_v55 = vsel %vm11064_vm14, %v5576_v61, 0.0  ;;  %v5578_v58 = vmul.f32 %v6322_v43, %v5357_v12  ;;  %v11066_v42 = vld [vmem:[#allocation32_spill] sm:$0xff]  ;;  %vm11071_vm14 = vmmov %vm11041_vm9 }
 0x513   :  { %v2952_v28 = vrot.slane %v11063_v40, %v8644_v57  ;;  %v5577_v54 = vmul.f32 %v6323_v63, %v5353_v26  ;;  %v3344_v39 = vcombine.high %v11065_v4, %v11065_v4  ;;  %v5649_v20 = vadd.f32 %v5648_v55, %v5647_v56  ;;  %v5365_v27 = vpop.permute.xlu0 %5364  ;;  %v5361_v40 = vpop.permute.xlu1 %5360  ;;  %v6325_v56 = vld [vmem:[%s10407_s0 + $0x60] sm:$0xff] }
 0x514   :  { %v3992_v9 = vcombine.low %v11058_v2, %v2919_v47  ;;  %v3993_v37 = vcombine.low %v2918_v38, %v2920_v6  ;;  %v3345_v61 = vcombine.high %v3343_v59, %v3343_v59  ;;  %v9611_v36 = vcombine.low %v3966_v32, %v3973_v17  ;;  %v6324_v6 = vld [vmem:[%s10407_s0 + $0x68] sm:$0xff]  ;;  %4810 = vperm.xlu0 %6050, %v9407_v50   ;;  %v11069_v55 = vld [vmem:[#allocation17_spill] sm:$0xff] }
 0x515   :  { %v5650_v7 = vsel %vm11041_vm9, %v5577_v54, 0.0  ;;  %v2953_v15 = vcombine.high %v11066_v42, %v11066_v42  ;;  %v2954_v44 = vcombine.high %v2952_v28, %v2952_v28  ;;  %v4391_v25 = vrot.slane %v4383_v48, %v8644_v57  ;;  %4864 = vperm.xlu1 %6051, %v9394_v16  }
 0x516   :  { %v5651_v29 = vadd.f32 %v5650_v7, %v5649_v20  ;;  %v4398_v12 = vrot.slane %v4384_v52, %v8644_v57  ;;  %v11067_v38 = vcombine.high %v8982_v23, %v8982_v23  ;;  %v5652_v47 = vsel %vm11068_vm10, %v5578_v58, 0.0  ;;  %vm11073_vm10 = vmmov %vm11041_vm9 }
 0x517   :  { %v5580_v17 = vmul.f32 %v6324_v6, %v5365_v27  ;;  %v5579_v26 = vmul.f32 %v6325_v56, %v5361_v40  ;;  %v4417_v32 = vcombine.low %v11065_v4, %v3344_v39  ;;  %v4007_v48 = vrot.slane %v3993_v37, %v8644_v57  ;;  %v5373_v50 = vpop.permute.xlu0 %5372  ;;  %v5369_v27 = vpop.permute.xlu1 %5368  ;;  %v11072_v39 = vld [vmem:[#allocation71_spill] sm:$0xff] }
 0x518   :  { %v3377_v2 = vrot.slane %v11067_v38, %v8644_v57  ;;  %v5653_v23 = vadd.f32 %v5652_v47, %v5651_v29  ;;  %v4418_v52 = vcombine.low %v3343_v59, %v3345_v61  ;;  %v11070_v43 = vcombine.high %v11069_v55, %v11069_v55  ;;  %v6326_v29 = vld [vmem:[%s10407_s0 + $0x78] sm:$0xff]  ;;  %4813 = vperm.xlu0 %6050, %v9428_v49  }
 0x519   :  { %v5654_v63 = vsel %vm11071_vm14, %v5579_v26, 0.0  ;;  %v4000_v54 = vrot.slane %v3992_v9, %v8644_v57  ;;  %v4026_v20 = vcombine.low %v11066_v42, %v2953_v15  ;;  %v4027_v16 = vcombine.low %v2952_v28, %v2954_v44  ;;  %v6327_v28 = vld [vmem:[%s10407_s0 + $0x70] sm:$0xff]  ;;  %4870 = vperm.xlu1 %6051, %v9426_v24   ;;  %vm11076_vm14 = vmmov %vm11041_vm9 }
 0x51a   :  { %v2986_v58 = vrot.slane %v11070_v43, %v8644_v57  ;;  %v5655_v7 = vadd.f32 %v5654_v63, %v5653_v23  ;;  %v9639_v4 = vcombine.low %v4391_v25, %v4398_v12  ;;  %v3378_v59 = vcombine.high %v11072_v39, %v11072_v39  ;;  %v6328_v43 = vld [vmem:[%s10407_s0 + $0x88] sm:$0xff] }
 0x51b   :  { %v3379_v37 = vcombine.high %v3377_v2, %v3377_v2  ;;  %v5656_v61 = vsel %vm11041_vm9, %v5580_v17, 0.0  ;;  %v5582_v40 = vmul.f32 %v6326_v29, %v5373_v50  ;;  %v5581_v9 = vmul.f32 %v6327_v28, %v5369_v27  ;;  %v11074_v17 = vld [vmem:[#allocation29_spill] sm:$0xff]  ;;  %v5381_v26 = vpop.permute.xlu0 %5380  ;;  %v5377_v49 = vpop.permute.xlu1 %5376  ;;  %v11078_v27 = vld [vmem:[#allocation19_spill] sm:$0xff] }
 0x51c   :  { %v4425_v42 = vrot.slane %v4417_v32, %v8644_v57  ;;  %v5657_v15 = vadd.f32 %v5656_v61, %v5655_v7  ;;  %v9653_v44 = vcombine.low %v4000_v54, %v4007_v48  ;;  %v4432_v25 = vrot.slane %v4418_v52, %v8644_v57  ;;  %v6329_v54 = vld [vmem:[%s10407_s0 + $0x80] sm:$0xff]  ;;  %4816 = vperm.xlu0 %6050, %v9459_v10  }
 0x51d   :  { %v2988_v12 = vcombine.high %v2986_v58, %v2986_v58  ;;  %v5658_v38 = vsel %vm11073_vm10, %v5581_v9, 0.0  ;;  %v4034_v47 = vrot.slane %v4026_v20, %v8644_v57  ;;  %v4041_v6 = vrot.slane %v4027_v16, %v8644_v57  ;;  %4876 = vperm.xlu1 %6051, %v9455_v45   ;;  %vm11081_vm10 = vmmov %vm11041_vm9 }
 0x51e   :  { %v2987_v56 = vcombine.high %v11074_v17, %v11074_v17  ;;  %v5659_v24 = vadd.f32 %v5658_v38, %v5657_v15  ;;  %v4451_v32 = vcombine.low %v11072_v39, %v3378_v59  ;;  %v4452_v23 = vcombine.low %v3377_v2, %v3379_v37  ;;  %v11077_v2 = vld [vmem:[#allocation73_spill] sm:$0xff] }
 0x51f   :  { %v11075_v48 = vcombine.high %v9008_v18, %v9008_v18  ;;  %v5660_v55 = vsel %vm11076_vm14, %v5582_v40, 0.0  ;;  %v5584_v63 = vmul.f32 %v6328_v43, %v5381_v26  ;;  %v5583_v20 = vmul.f32 %v6329_v54, %v5377_v49  ;;  %v5389_v28 = vpop.permute.xlu0 %5388  ;;  %v5385_v9 = vpop.permute.xlu1 %5384  ;;  %vm11083_vm14 = vmmov %vm11041_vm9 }
 0x520   :  { %v3412_v18 = vcombine.high %v11077_v2, %v11077_v2  ;;  %v5661_v16 = vadd.f32 %v5660_v55, %v5659_v24  ;;  %v9677_v7 = vcombine.low %v4425_v42, %v4432_v25  ;;  %v4061_v50 = vcombine.low %v2986_v58, %v2988_v12  ;;  %v6330_v12 = vld [vmem:[%s10407_s0 + $0x98] sm:$0xff]  ;;  %4822 = vperm.xlu0 %6050, %v9469_v51   ;;  %v11082_v24 = vld [vmem:[#allocation35_spill] sm:$0xff] }
 0x521   :  { %v3411_v52 = vrot.slane %v11075_v48, %v8644_v57  ;;  %v11079_v39 = vcombine.high %v11078_v27, %v11078_v27  ;;  %v5662_v37 = vsel %vm11041_vm9, %v5583_v20, 0.0  ;;  %v9684_v61 = vcombine.low %v4034_v47, %v4041_v6  ;;  %4882 = vperm.xlu1 %6051, %v9467_v14   ;;  %v11085_v14 = vld [vmem:[#allocation11_spill] sm:$0xff] }
 0x522   :  { %v4060_v45 = vcombine.low %v11074_v17, %v2987_v56  ;;  %v11080_v10 = vcombine.high %v9030_v11, %v9030_v11  ;;  %v5663_v40 = vadd.f32 %v5662_v37, %v5661_v16  ;;  %v4459_v58 = vrot.slane %v4451_v32, %v8644_v57  ;;  %v6331_v11 = vld [vmem:[%s10407_s0 + $0x90] sm:$0xff]  ;;  %v6332_v27 = vld [vmem:[%s10407_s0 + $0xa8] sm:$0xff]  ;;  %v6333_v37 = vld [vmem:[%s10407_s0 + $0xa0] sm:$0xff] }
 0x523   :  { %v3020_v59 = vrot.slane %v11079_v39, %v8644_v57  ;;  %v4466_v42 = vrot.slane %v4452_v23, %v8644_v57  ;;  %v3413_v15 = vcombine.high %v3411_v52, %v3411_v52  ;;  %v5664_v25 = vsel %vm11081_vm10, %v5584_v63, 0.0  ;;  %v11084_v23 = vld [vmem:[#allocation83_spill] sm:$0xff]  ;;  %v5397_v54 = vpop.permute.xlu0 %5396  ;;  %v5393_v20 = vpop.permute.xlu1 %5392  ;;  %vm11087_vm10 = vmmov %vm11041_vm9 }
 0x524   :  { %v3445_v29 = vrot.slane %v11080_v10, %v8644_v57  ;;  %v5586_v38 = vmul.f32 %v6330_v12, %v5389_v28  ;;  %v5585_v47 = vmul.f32 %v6331_v11, %v5385_v9  ;;  %v9703_v6 = vcombine.low %v11077_v2, %v3412_v18  ;;  %4825 = vperm.xlu0 %6050, %v9500_v60   ;;  %v11088_v11 = vld [vmem:[#allocation48_spill] sm:$0xff] }
 0x525   :  { %v5665_v17 = vadd.f32 %v5664_v25, %v5663_v40  ;;  %v4075_v56 = vrot.slane %v4061_v50, %v8644_v57  ;;  %v3021_v26 = vcombine.high %v11082_v24, %v11082_v24  ;;  %v3022_v49 = vcombine.high %v3020_v59, %v3020_v59  ;;  %4888 = vperm.xlu1 %6051, %v9488_v5  }
 0x526   :  { %v5666_v32 = vsel %vm11083_vm14, %v5585_v47, 0.0  ;;  %v3446_v48 = vcombine.high %v11084_v23, %v11084_v23  ;;  %v3447_v55 = vcombine.high %v3445_v29, %v3445_v29  ;;  %v11086_v51 = vcombine.high %v11085_v14, %v11085_v14  ;;  %vm11092_vm14 = vmmov %vm11041_vm9 }
 0x527   :  { %v5667_v63 = vadd.f32 %v5666_v32, %v5665_v17  ;;  %v9715_v2 = vcombine.low %v4459_v58, %v4466_v42  ;;  %v4068_v18 = vrot.slane %v4060_v45, %v8644_v57  ;;  %v4486_v16 = vcombine.low %v3411_v52, %v3413_v15  ;;  %v5401_v5 = vpop.permute.xlu1 %5400  ;;  %v11090_v17 = vld [vmem:[#allocation52_spill] sm:$0xff] }
 0x528   :  { %v3054_v43 = vrot.slane %v11086_v51, %v8644_v57  ;;  %v5668_v50 = vsel %vm11041_vm9, %v5586_v38, 0.0  ;;  %v5588_v39 = vmul.f32 %v6332_v27, %v5397_v54  ;;  %v5587_v10 = vmul.f32 %v6333_v37, %v5393_v20  ;;  %v5405_v38 = vpop.permute.xlu0 %5404  ;;  %4828 = vperm.xlu0 %6050, %v9540_v3  }
 0x529   :  { %v4493_v45 = vrot.slane %v9703_v6, %v8644_v57  ;;  %v5669_v52 = vadd.f32 %v5668_v50, %v5667_v63  ;;  %v9729_v40 = vcombine.low %v4068_v18, %v4075_v56  ;;  %v4094_v28 = vcombine.low %v11082_v24, %v3021_v26  ;;  %4894 = vperm.xlu1 %6051, %v9522_v22  }
 0x52a   :  { %v4095_v9 = vcombine.low %v3020_v59, %v3022_v49  ;;  %v5670_v58 = vsel %vm11087_vm10, %v5587_v10, 0.0  ;;  %v4519_v42 = vcombine.low %v11084_v23, %v3446_v48  ;;  %v4520_v15 = vcombine.low %v3445_v29, %v3447_v55  ;;  %v6334_v29 = vld [vmem:[%s10407_s0 + $0xb8] sm:$0xff]  ;;  %v6335_v49 = vld [vmem:[%s10407_s0 + $0xb0] sm:$0xff]  ;;  %vm11094_vm10 = vmmov %vm11041_vm9 }
 0x52b   :  { %v3056_v25 = vcombine.high %v3054_v43, %v3054_v43  ;;  %v5671_v12 = vadd.f32 %v5670_v58, %v5669_v52  ;;  %v3055_v60 = vcombine.high %v11088_v11, %v11088_v11  ;;  %v11089_v47 = vcombine.high %v9048_v46, %v9048_v46  ;;  %v11093_v46 = vld [vmem:[#allocation96_spill] sm:$0xff]  ;;  %v5409_v3 = vpop.permute.xlu1 %5408  ;;  %v6336_v10 = vld [vmem:[%s10407_s0 + $0xc8] sm:$0xff] }
 0x52c   :  { %v11091_v59 = vcombine.high %v11090_v17, %v11090_v17  ;;  %v5672_v24 = vsel %vm11092_vm14, %v5588_v39, 0.0  ;;  %v5590_v26 = vmul.f32 %v6334_v29, %v5405_v38  ;;  %v5589_v32 = vmul.f32 %v6335_v49, %v5401_v5  ;;  %v5413_v50 = vpop.permute.xlu0 %5412  ;;  %4831 = vperm.xlu0 %6050, %v9580_v19   ;;  %vm11097_vm14 = vmmov %vm11041_vm9 }
 0x52d   :  { %v3479_v6 = vrot.slane %v11089_v47, %v8644_v57  ;;  %v3480_v23 = vcombine.high %v11093_v46, %v11093_v46  ;;  %v5673_v48 = vadd.f32 %v5672_v24, %v5671_v12  ;;  %v4500_v55 = vrot.slane %v4486_v16, %v8644_v57  ;;  %4900 = vperm.xlu1 %6051, %v9558_v34   ;;  %v11098_v24 = vld [vmem:[#allocation97_spill] sm:$0xff] }
 0x52e   :  { %v3088_v56 = vrot.slane %v11091_v59, %v8644_v57  ;;  %v4102_v14 = vrot.slane %v4094_v28, %v8644_v57  ;;  %v4109_v51 = vrot.slane %v4095_v9, %v8644_v57  ;;  %v5674_v63 = vsel %vm11041_vm9, %v5589_v32, 0.0  ;;  %v6337_v28 = vld [vmem:[%s10407_s0 + $0xc0] sm:$0xff] }
 0x52f   :  { %v4527_v54 = vrot.slane %v4519_v42, %v8644_v57  ;;  %v4534_v20 = vrot.slane %v4520_v15, %v8644_v57  ;;  %v4129_v18 = vcombine.low %v3054_v43, %v3056_v25  ;;  %v5675_v22 = vadd.f32 %v5674_v63, %v5673_v48  ;;  %v11095_v15 = vld [vmem:[#allocation51_spill] sm:$0xff]  ;;  %v11102_v63 = vld [vmem:[#allocation57_spill] sm:$0xff] }
 0x530   :  { %v4128_v27 = vcombine.low %v11088_v11, %v3055_v60  ;;  %v3481_v39 = vcombine.high %v3479_v6, %v3479_v6  ;;  %v3090_v37 = vcombine.high %v3088_v56, %v3088_v56  ;;  %v5676_v16 = vsel %vm11094_vm10, %v5590_v26, 0.0  ;;  %v9786_v47 = vpop.permute.xlu0 %5420  ;;  %v6338_v26 = vld [vmem:[%s10407_s0 + $0xd0] sm:$0xff]  ;;  %4837 = vperm.xlu0 %6050, %v9611_v36   ;;  %vm11100_vm10 = vmmov %vm11041_vm9 }
 0x531   :  { %v5592_v52 = vmul.f32 %v6336_v10, %v5413_v50  ;;  %v5591_v9 = vmul.f32 %v6337_v28, %v5409_v3  ;;  %v4553_v43 = vcombine.low %v11093_v46, %v3480_v23  ;;  %v5677_v58 = vadd.f32 %v5676_v16, %v5675_v22  ;;  %4906 = vperm.xlu1 %6051, %v9589_v62  }
 0x532   :  { %v9772_v42 = vcombine.low %v4493_v45, %v4500_v55  ;;  %v3089_v25 = vcombine.high %v11095_v15, %v11095_v15  ;;  %v11096_v12 = vcombine.high %v9060_v41, %v9060_v41  ;;  %v9781_v11 = vcombine.low %v4102_v14, %v4109_v51  ;;  %v5417_v45 = vpop.permute.xlu1 %5416 }
 0x533   :  { %v5678_v5 = vsel %vm11097_vm14, %v5591_v9, 0.0  ;;  %v9783_v34 = vcombine.low %v4527_v54, %v4534_v20  ;;  %v4143_v19 = vrot.slane %v4129_v18, %v8644_v57  ;;  %v4554_v17 = vcombine.low %v3479_v6, %v3481_v39  ;;  %v11103_v54 = vld [vmem:[#allocation89_spill] sm:$0xff]  ;;  %v6339_v39 = vld [vmem:[%s10407_s0 + $0x108] sm:$0xff]  ;;  %vm11105_vm14 = vmmov %vm11041_vm9 }
 0x534   :  { %v3513_v38 = vrot.slane %v11096_v12, %v8644_v57  ;;  %v5679_v60 = vadd.f32 %v5678_v5, %v5677_v58  ;;  %v4163_v59 = vcombine.low %v3088_v56, %v3090_v37  ;;  %v3514_v29 = vcombine.high %v11098_v24, %v11098_v24  ;;  %v5445_v22 = vpop.permute.xlu0 %5444  ;;  %v6340_v37 = vld [vmem:[%s10407_s0 + $0x100] sm:$0xff]  ;;  %4843 = vperm.xlu0 %6050, %v9653_v44  }
 0x535   :  { %v5680_v41 = vsel %vm11041_vm9, %v5592_v52, 0.0  ;;  %v5593_v49 = vmul.f32 %v6338_v26, %v5417_v45  ;;  %v4136_v32 = vrot.slane %v4128_v27, %v8644_v57  ;;  %v4561_v46 = vrot.slane %v4553_v43, %v8644_v57  ;;  %4912 = vperm.xlu1 %6051, %v9639_v4   ;;  %v11104_v43 = vld [vmem:[#allocation98_spill] sm:$0xff] }
 0x536   :  { %v5681_v6 = vadd.f32 %v5680_v41, %v5679_v60  ;;  %v4162_v56 = vcombine.low %v11095_v15, %v3089_v25  ;;  %v3515_v23 = vcombine.high %v3513_v38, %v3513_v38  ;;  %v11099_v48 = vcombine.high %v11029_v13, %v11029_v13  ;;  %v5441_v50 = vpop.permute.xlu1 %5440 }
 0x537   :  { %v5682_v14 = vsel %vm11100_vm10, %v5593_v49, 0.0  ;;  %v9804_v51 = vcombine.low %v4136_v32, %v4143_v19  ;;  %v11101_v62 = vcombine.high %v9074_v53, %v9074_v53  ;;  %v9812_v20 = vmul.f32 %v11103_v54, %v11102_v63  ;;  %vm11107_vm10 = vmmov %vm11041_vm9  ;;  %v11109_v54 = vld [vmem:[#allocation54_spill] sm:$0xff] }
 0x538   :  { %v3122_v55 = vrot.slane %v11099_v48, %v8644_v57  ;;  %v9814_v18 = vadd.f32 %v5682_v14, %v5681_v6  ;;  %v4568_v13 = vrot.slane %v4554_v17, %v8644_v57  ;;  %v4177_v3 = vrot.slane %v4163_v59, %v8644_v57  ;;  %v5453_v5 = vpop.permute.xlu0 %5452  ;;  %v6341_v59 = vld [vmem:[%s10407_s0 + $0x118] sm:$0xff]  ;;  %4849 = vperm.xlu0 %6050, %v9684_v61   ;;  %v11108_v61 = vld [vmem:[#allocation99_spill] sm:$0xff] }
 0x539   :  { %v3547_v36 = vrot.slane %v11101_v62, %v8644_v57  ;;  %v4587_v27 = vcombine.low %v11098_v24, %v3514_v29  ;;  %v5600_v53 = vmul.f32 %v6339_v39, %v5445_v22  ;;  %v5599_v16 = vmul.f32 %v6340_v37, %v5441_v50  ;;  %v6342_v29 = vld [vmem:[%s10407_s0 + $0x110] sm:$0xff]  ;;  %4918 = vperm.xlu1 %6051, %v9677_v7  }
 0x53a   :  { %v3123_v10 = vcombine.high %v9208_v0, %v9208_v0  ;;  %v4170_v52 = vrot.slane %v4162_v56, %v8644_v57  ;;  %v4588_v28 = vcombine.low %v3513_v38, %v3515_v23  ;;  %v3124_v9 = vcombine.high %v3122_v55, %v3122_v55  ;;  %v5449_v44 = vpop.permute.xlu1 %5448 }
 0x53b   :  { %v3548_v58 = vcombine.high %v11104_v43, %v11104_v43  ;;  %v5701_v15 = vsel %vm11105_vm14, %v5600_v53, 0.0  ;;  %v5700_v25 = vsel %vm11041_vm9, %v5599_v16, 0.0  ;;  %v3549_v12 = vcombine.high %v3547_v36, %v3547_v36  ;;  %vm11111_vm14 = vmmov %vm11041_vm9 }
 0x53c   :  { %v3142_v4 = vcombine.high %v9812_v20, %v9812_v20  ;;  %v9836_v19 = vcombine.low %v4561_v46, %v4568_v13  ;;  %v9838_v60 = vcombine.low %v4170_v52, %v4177_v3  ;;  %v4595_v38 = vrot.slane %v4587_v27, %v8644_v57  ;;  %v5461_v7 = vpop.permute.xlu0 %5460  ;;  %v6344_v3 = vld [vmem:[%s10407_s0 + $0x120] sm:$0xff]  ;;  %4855 = vperm.xlu0 %6050, %v9729_v40  }
 0x53d   :  { %v11106_v45 = vcombine.high %v9086_v35, %v9086_v35  ;;  %v5602_v24 = vmul.f32 %v6341_v59, %v5453_v5  ;;  %v5601_v41 = vmul.f32 %v6342_v29, %v5449_v44  ;;  %v4196_v26 = vcombine.low %v9208_v0, %v3123_v10  ;;  %4924 = vperm.xlu1 %6051, %v9715_v2   ;;  %v6345_v5 = vld [vmem:[%s10407_s0 + $0x138] sm:$0xff] }
 0x53e   :  { %v5702_v49 = vadd.f32 %v5701_v15, %v5700_v25  ;;  %v4602_v35 = vrot.slane %v4588_v28, %v8644_v57  ;;  %v4197_v32 = vcombine.low %v3122_v55, %v3124_v9  ;;  %v4621_v46 = vcombine.low %v11104_v43, %v3548_v58  ;;  %v5457_v62 = vpop.permute.xlu1 %5456 }
 0x53f   :  { %v3581_v17 = vrot.slane %v11106_v45, %v8644_v57  ;;  %v5703_v6 = vsel %vm11107_vm10, %v5601_v41, 0.0  ;;  %v4622_v56 = vcombine.low %v3547_v36, %v3549_v12  ;;  %v3149_v23 = vrot.slane %v9812_v20, %v8644_v57  ;;  %v6343_v36 = vld [vmem:[%s10407_s0 + $0x128] sm:$0xff]  ;;  %vm11112_vm10 = vmmov %vm11041_vm9  ;;  %v11114_v41 = vld [vmem:[#allocation53_spill] sm:$0xff] }
 0x540   :  { %v3156_v48 = vrot.slane %v3142_v4, %v8644_v57  ;;  %v5704_v14 = vadd.f32 %v5703_v6, %v5702_v49  ;;  %v3582_v0 = vcombine.high %v11108_v61, %v11108_v61  ;;  %v11110_v55 = vcombine.high %v11109_v54, %v11109_v54  ;;  %v5469_v15 = vpop.permute.xlu0 %5468  ;;  %4861 = vperm.xlu0 %6050, %v9781_v11   ;;  %v11115_v49 = vld [vmem:[#allocation36_spill] sm:$0xff] }
 0x541   :  { %v3583_v63 = vcombine.high %v3581_v17, %v3581_v17  ;;  %v5705_v50 = vsel %vm11111_vm14, %v5602_v24, 0.0  ;;  %v5604_v13 = vmul.f32 %v6343_v36, %v5461_v7  ;;  %v5603_v27 = vmul.f32 %v6344_v3, %v5457_v62  ;;  %4930 = vperm.xlu1 %6051, %v9772_v42   ;;  %vm11117_vm14 = vmmov %vm11041_vm9  ;;  %v11118_v36 = vld [vmem:[#allocation100_spill] sm:$0xff] }
 0x542   :  { %v3190_v22 = vrot.slane %v11110_v55, %v8644_v57  ;;  %v4204_v39 = vrot.slane %v4196_v26, %v8644_v57  ;;  %v5706_v53 = vadd.f32 %v5705_v50, %v5704_v14  ;;  %v9876_v37 = vcombine.low %v4595_v38, %v4602_v35  ;;  %v5465_v2 = vpop.permute.xlu1 %5464  ;;  %v6346_v38 = vld [vmem:[%s10407_s0 + $0x130] sm:$0xff] }
 0x543   :  { %v4211_v16 = vrot.slane %v4197_v32, %v8644_v57  ;;  %v4629_v10 = vrot.slane %v4621_v46, %v8644_v57  ;;  %v5707_v52 = vsel %vm11041_vm9, %v5603_v27, 0.0  ;;  %v4636_v28 = vrot.slane %v4622_v56, %v8644_v57 }
 0x544   :  { %v3157_v9 = vcombine.high %v3149_v23, %v3149_v23  ;;  %v3158_v43 = vcombine.high %v3156_v48, %v3156_v48  ;;  %v5708_v58 = vadd.f32 %v5707_v52, %v5706_v53  ;;  %v4655_v40 = vcombine.low %v11108_v61, %v3582_v0  ;;  %v5477_v14 = vpop.permute.xlu0 %5476  ;;  %4867 = vperm.xlu0 %6050, %v9804_v51  }
 0x545   :  { %v4656_v25 = vcombine.low %v3581_v17, %v3583_v63  ;;  %v3192_v12 = vcombine.high %v3190_v22, %v3190_v22  ;;  %v5709_v4 = vsel %vm11112_vm10, %v5604_v13, 0.0  ;;  %v5606_v44 = vmul.f32 %v6345_v5, %v5469_v15  ;;  %v6347_v63 = vld [vmem:[%s10407_s0 + $0x148] sm:$0xff]  ;;  %4936 = vperm.xlu1 %6051, %v9783_v34   ;;  %vm11119_vm10 = vmmov %vm11041_vm9 }
 0x546   :  { %v5605_v45 = vmul.f32 %v6346_v38, %v5465_v2  ;;  %v11113_v17 = vcombine.high %v11016_v33, %v11016_v33  ;;  %v5710_v24 = vadd.f32 %v5709_v4, %v5708_v58  ;;  %v4212_v29 = vcombine.low %v4204_v39, %v4211_v16  ;;  %v5473_v33 = vpop.permute.xlu1 %5472  ;;  %v6349_v2 = vld [vmem:[%s10407_s0 + $0x158] sm:$0xff] }
 0x547   :  { %v3191_v26 = vcombine.high %v11114_v41, %v11114_v41  ;;  %v11116_v35 = vcombine.high %v11115_v49, %v11115_v49  ;;  %v9903_v42 = vcombine.low %v4629_v10, %v4636_v28  ;;  %v4230_v11 = vcombine.low %v3149_v23, %v3157_v9  ;;  %v6348_v23 = vld [vmem:[%s10407_s0 + $0x140] sm:$0xff] }
 0x548   :  { %v3615_v59 = vrot.slane %v11113_v17, %v8644_v57  ;;  %v5711_v46 = vsel %vm11117_vm14, %v5605_v45, 0.0  ;;  %v4231_v6 = vcombine.low %v3156_v48, %v3158_v43  ;;  %v4663_v7 = vrot.slane %v4655_v40, %v8644_v57  ;;  %v5485_v10 = vpop.permute.xlu0 %5484  ;;  %v11121_v43 = vld [vmem:[#allocation59_spill] sm:$0xff]  ;;  %vm11122_vm14 = vmmov %vm11041_vm9  ;;  %4873 = vperm.xlu0 %6050, %v9838_v60  }
 0x549   :  { %v3224_v32 = vrot.slane %v11116_v35, %v8644_v57  ;;  %v5712_v56 = vadd.f32 %v5711_v46, %v5710_v24  ;;  %v4670_v62 = vrot.slane %v4656_v25, %v8644_v57  ;;  %v4265_v61 = vcombine.low %v3190_v22, %v3192_v12  ;;  %4942 = vperm.xlu1 %6051, %v9836_v19  }
 0x54a   :  { %v5713_v0 = vsel %vm11041_vm9, %v5606_v44, 0.0  ;;  %v5608_v54 = vmul.f32 %v6347_v63, %v5477_v14  ;;  %v5607_v48 = vmul.f32 %v6348_v23, %v5473_v33  ;;  %v3617_v55 = vcombine.high %v3615_v59, %v3615_v59  ;;  %v5481_v52 = vpop.permute.xlu1 %5480  ;;  %v6352_v33 = vld [vmem:[%s10407_s0 + $0x160] sm:$0xff] }
 0x54b   :  { %v5714_v50 = vadd.f32 %v5713_v0, %v5712_v56  ;;  %v4264_v22 = vcombine.low %v11114_v41, %v3191_v26  ;;  %v3616_v13 = vcombine.high %v11118_v36, %v11118_v36  ;;  %v3226_v3 = vcombine.high %v3224_v32, %v3224_v32  ;;  %v11123_v41 = vld [vmem:[#allocation39_spill] sm:$0xff] }
 0x54c   :  { %v5715_v27 = vsel %vm11119_vm10, %v5607_v48, 0.0  ;;  %v4238_v39 = vrot.slane %v4230_v11, %v8644_v57  ;;  %v4245_v53 = vrot.slane %v4231_v6, %v8644_v57  ;;  %v11120_v34 = vcombine.high %v11023_v8, %v11023_v8  ;;  %v6350_v8 = vld [vmem:[%s10407_s0 + $0x150] sm:$0xff]  ;;  %v5493_v19 = vpop.permute.xlu0 %5492  ;;  %v11125_v11 = vld [vmem:[#allocation101_spill] sm:$0xff]  ;;  %vm11126_vm10 = vmmov %vm11041_vm9  ;;  %4879 = vperm.xlu0 %6050, %v4212_v29  }
 0x54d   :  { %v5716_v51 = vadd.f32 %v5715_v27, %v5714_v50  ;;  %v9926_v28 = vcombine.low %v4663_v7, %v4670_v62  ;;  %v4279_v9 = vrot.slane %v4265_v61, %v8644_v57  ;;  %v3225_v58 = vcombine.high %v11121_v43, %v11121_v43  ;;  %v6351_v56 = vld [vmem:[%s10407_s0 + $0x168] sm:$0xff]  ;;  %4948 = vperm.xlu1 %6051, %v9876_v37  }
 0x54e   :  { %v3649_v16 = vrot.slane %v11120_v34, %v8644_v57  ;;  %v5717_v15 = vsel %vm11122_vm14, %v5608_v54, 0.0  ;;  %v5610_v40 = vmul.f32 %v6349_v2, %v5485_v10  ;;  %v5609_v25 = vmul.f32 %v6350_v8, %v5481_v52  ;;  %v5489_v46 = vpop.permute.xlu1 %5488  ;;  %vm11128_vm14 = vmmov %vm11041_vm9  ;;  %v6354_v10 = vld [vmem:[%s10407_s0 + $0x170] sm:$0xff]  ;;  %v11132_v2 = vld [vmem:[#allocation61_spill] sm:$0xff] }
 0x54f   :  { %v4690_v12 = vcombine.low %v3615_v59, %v3617_v55  ;;  %v5718_v4 = vadd.f32 %v5717_v15, %v5716_v51  ;;  %v4272_v5 = vrot.slane %v4264_v22, %v8644_v57  ;;  %v4689_v44 = vcombine.low %v11118_v36, %v3616_v13  ;;  %v11129_v22 = vld [vmem:[#allocation64_spill] sm:$0xff] }
 0x550   :  { %v4299_v38 = vcombine.low %v3224_v32, %v3226_v3  ;;  %v5719_v45 = vsel %vm11041_vm9, %v5609_v25, 0.0  ;;  %v4246_v17 = vcombine.low %v4238_v39, %v4245_v53  ;;  %v3651_v24 = vcombine.high %v3649_v16, %v3649_v16  ;;  %v5501_v13 = vpop.permute.xlu0 %5500  ;;  %v11131_v53 = vld [vmem:[#allocation44_spill] sm:$0xff] }
 0x551   :  { %v11124_v26 = vcombine.high %v11123_v41, %v11123_v41  ;;  %v5720_v35 = vadd.f32 %v5719_v45, %v5718_v4  ;;  %v4280_v60 = vcombine.low %v4272_v5, %v4279_v9  ;;  %v4298_v59 = vcombine.low %v11121_v43, %v3225_v58  ;;  %4954 = vperm.xlu1 %6051, %v9903_v42  }
 0x552   :  { %v3650_v6 = vcombine.high %v11125_v11, %v11125_v11  ;;  %v5721_v32 = vsel %vm11126_vm10, %v5610_v40, 0.0  ;;  %v5612_v14 = vmul.f32 %v6351_v56, %v5493_v19  ;;  %v5611_v7 = vmul.f32 %v6352_v33, %v5489_v46  ;;  %v5497_v3 = vpop.permute.xlu1 %5496  ;;  %4885 = vperm.xlu0 %6050, %v4246_v17   ;;  %vm11134_vm10 = vmmov %vm11041_vm9  ;;  %v11136_v46 = vld [vmem:[#allocation65_spill] sm:$0xff] }
 0x553   :  { %v3258_v49 = vrot.slane %v11124_v26, %v8644_v57  ;;  %v4704_v62 = vrot.slane %v4690_v12, %v8644_v57  ;;  %v5722_v61 = vadd.f32 %v5721_v32, %v5720_v35  ;;  %v4697_v0 = vrot.slane %v4689_v44, %v8644_v57  ;;  %v6355_v26 = vld [vmem:[%s10407_s0 + $0x188] sm:$0xff]  ;;  %v11137_v56 = vld [vmem:[#allocation45_spill] sm:$0xff] }
 0x554   :  { %v4313_v63 = vrot.slane %v4299_v38, %v8644_v57  ;;  %v11127_v54 = vcombine.high %v9184_v31, %v9184_v31  ;;  %v5723_v48 = vsel %vm11128_vm14, %v5611_v7, 0.0  ;;  %v4724_v55 = vcombine.low %v3649_v16, %v3651_v24  ;;  %v6353_v16 = vld [vmem:[%s10407_s0 + $0x178] sm:$0xff]  ;;  %v5509_v38 = vpop.permute.xlu0 %5508  ;;  %vm11135_vm14 = vmmov %vm11041_vm9 }
 0x555   :  { %v3260_v50 = vcombine.high %v3258_v49, %v3258_v49  ;;  %v11130_v37 = vcombine.high %v11129_v22, %v11129_v22  ;;  %v5724_v36 = vadd.f32 %v5723_v48, %v5722_v61  ;;  %v4306_v27 = vrot.slane %v4298_v59, %v8644_v57  ;;  %4960 = vperm.xlu1 %6051, %v9926_v28   ;;  %v6357_v22 = vld [vmem:[%s10407_s0 + $0x198] sm:$0xff] }
 0x556   :  { %v3683_v23 = vrot.slane %v11127_v54, %v8644_v57  ;;  %v4723_v39 = vcombine.low %v11125_v11, %v3650_v6  ;;  %v3259_v31 = vcombine.high %v11131_v53, %v11131_v53  ;;  %v5725_v34 = vsel %vm11041_vm9, %v5612_v14, 0.0  ;;  %v5505_v45 = vpop.permute.xlu1 %5504  ;;  %4891 = vperm.xlu0 %6050, %v4280_v60  }
 0x557   :  { %v3292_v29 = vrot.slane %v11130_v37, %v8644_v57  ;;  %v5614_v51 = vmul.f32 %v6353_v16, %v5501_v13  ;;  %v5613_v52 = vmul.f32 %v6354_v10, %v5497_v3  ;;  %v4705_v9 = vcombine.low %v4697_v0, %v4704_v62 }
 0x558   :  { %v5726_v43 = vadd.f32 %v5725_v34, %v5724_v36  ;;  %v4314_v58 = vcombine.low %v4306_v27, %v4313_v63  ;;  %v3685_v15 = vcombine.high %v3683_v23, %v3683_v23  ;;  %v11133_v40 = vcombine.high %v11132_v2, %v11132_v2  ;;  %v5517_v28 = vpop.permute.xlu0 %5516 }
 0x559   :  { %v5727_v25 = vsel %vm11134_vm10, %v5613_v52, 0.0  ;;  %v4738_v12 = vrot.slane %v4724_v55, %v8644_v57  ;;  %v4333_v4 = vcombine.low %v3258_v49, %v3260_v50  ;;  %v3294_v5 = vcombine.high %v3292_v29, %v3292_v29  ;;  %v6356_v49 = vld [vmem:[%s10407_s0 + $0x180] sm:$0xff]  ;;  %vm11140_vm10 = vmmov %vm11041_vm9  ;;  %4966 = vperm.xlu1 %6051, %v4705_v9  }
 0x55a   :  { %v3326_v8 = vrot.slane %v11133_v40, %v8644_v57  ;;  %v5728_v44 = vadd.f32 %v5727_v25, %v5726_v43  ;;  %v4731_v42 = vrot.slane %v4723_v39, %v8644_v57  ;;  %v4332_v17 = vcombine.low %v11131_v53, %v3259_v31  ;;  %v5513_v60 = vpop.permute.xlu1 %5512  ;;  %4897 = vperm.xlu0 %6050, %v4314_v58  }
 0x55b   :  { %v3684_v24 = vcombine.high %v9222_v1, %v9222_v1  ;;  %v5729_v41 = vsel %vm11135_vm14, %v5614_v51, 0.0  ;;  %v5616_v35 = vmul.f32 %v6355_v26, %v5509_v38  ;;  %v5615_v19 = vmul.f32 %v6356_v49, %v5505_v45  ;;  %vm11141_vm14 = vmmov %vm11041_vm9 }
 0x55c   :  { %v3293_v59 = vcombine.high %v11136_v46, %v11136_v46  ;;  %v5730_v11 = vadd.f32 %v5729_v41, %v5728_v44  ;;  %v4758_v6 = vcombine.low %v3683_v23, %v3685_v15  ;;  %v3328_v32 = vcombine.high %v3326_v8, %v3326_v8  ;;  %v11139_v23 = vld [vmem:[#allocation74_spill] sm:$0xff]  ;;  %v5525_v52 = vpop.permute.xlu0 %5524  ;;  %v11143_v15 = vld [vmem:[#allocation93_spill] sm:$0xff] }
 0x55d   :  { %v11138_v14 = vcombine.high %v11137_v56, %v11137_v56  ;;  %v5731_v7 = vsel %vm11041_vm9, %v5615_v19, 0.0  ;;  %v4739_v62 = vcombine.low %v4731_v42, %v4738_v12  ;;  %v4347_v61 = vrot.slane %v4333_v4, %v8644_v57  ;;  %v11145_v41 = vld [vmem:[#allocation69_spill] sm:$0xff]  ;;  %v11148_v56 = vld [vmem:[#allocation46_spill] sm:$0xff] }
 0x55e   :  { %v4367_v0 = vcombine.low %v3292_v29, %v3294_v5  ;;  %v5732_v63 = vadd.f32 %v5731_v7, %v5730_v11  ;;  %v4340_v54 = vrot.slane %v4332_v17, %v8644_v57  ;;  %v4757_v48 = vcombine.low %v9222_v1, %v3684_v24  ;;  %v6358_v29 = vld [vmem:[%s10407_s0 + $0x190] sm:$0xff]  ;;  %v5521_v9 = vpop.permute.xlu1 %5520  ;;  %v6361_v7 = vld [vmem:[%s10407_s0 + $0x1b8] sm:$0xff] }
 0x55f   :  { %v3360_v33 = vrot.slane %v11138_v14, %v8644_v57  ;;  %v3327_v55 = vcombine.high %v11139_v23, %v11139_v23  ;;  %v5733_v50 = vsel %vm11140_vm10, %v5616_v35, 0.0  ;;  %v5618_v37 = vmul.f32 %v6357_v22, %v5517_v28  ;;  %4972 = vperm.xlu1 %6051, %v4739_v62   ;;  %vm11144_vm10 = vmmov %vm11041_vm9  ;;  %v11151_v22 = vld [vmem:[#allocation70_spill] sm:$0xff] }
 0x560   :  { %v5617_v36 = vmul.f32 %v6358_v29, %v5513_v60  ;;  %v4366_v13 = vcombine.low %v11136_v46, %v3293_v59  ;;  %v5734_v1 = vadd.f32 %v5733_v50, %v5732_v63  ;;  %v4772_v3 = vrot.slane %v4758_v6, %v8644_v57  ;;  %v5533_v19 = vpop.permute.xlu0 %5532  ;;  %v11147_v6 = vld [vmem:[#allocation94_spill] sm:$0xff]  ;;  %v11150_v63 = vld [vmem:[#allocation75_spill] sm:$0xff] }
 0x561   :  { %v4401_v27 = vcombine.low %v3326_v8, %v3328_v32  ;;  %v3362_v39 = vcombine.high %v3360_v33, %v3360_v33  ;;  %v4348_v31 = vcombine.low %v4340_v54, %v4347_v61  ;;  %v4381_v34 = vrot.slane %v4367_v0, %v8644_v57  ;;  %v6359_v8 = vld [vmem:[%s10407_s0 + $0x1a8] sm:$0xff]  ;;  %v6362_v61 = vld [vmem:[%s10407_s0 + $0x1b0] sm:$0xff] }
 0x562   :  { %v5735_v53 = vsel %vm11141_vm14, %v5617_v36, 0.0  ;;  %v11142_v16 = vcombine.high %v8970_v30, %v8970_v30  ;;  %v4765_v43 = vrot.slane %v4757_v48, %v8644_v57  ;;  %v4400_v58 = vcombine.low %v11139_v23, %v3327_v55  ;;  %v6360_v30 = vld [vmem:[%s10407_s0 + $0x1a0] sm:$0xff]  ;;  %v5529_v46 = vpop.permute.xlu1 %5528  ;;  %vm11149_vm14 = vmmov %vm11041_vm9 }
 0x563   :  { %v5736_v10 = vadd.f32 %v5735_v53, %v5734_v1  ;;  %v3361_v2 = vcombine.high %v11143_v15, %v11143_v15  ;;  %v5737_v40 = vsel %vm11041_vm9, %v5618_v37, 0.0  ;;  %v5620_v25 = vmul.f32 %v6359_v8, %v5525_v52  ;;  %4903 = vperm.xlu0 %6050, %v4348_v31  }
 0x564   :  { %v3394_v51 = vrot.slane %v11142_v16, %v8644_v57  ;;  %v5619_v12 = vmul.f32 %v6360_v30, %v5521_v9  ;;  %v4374_v4 = vrot.slane %v4366_v13, %v8644_v57  ;;  %v4773_v44 = vcombine.low %v4765_v43, %v4772_v3  ;;  %v5541_v13 = vpop.permute.xlu0 %5540  ;;  %v6363_v16 = vld [vmem:[%s10407_s0 + $0x1c8] sm:$0xff]  ;;  %v6365_v9 = vld [vmem:[%s10407_s0 + $0xd8] sm:$0xff] }
 0x565   :  { %v5738_v5 = vadd.f32 %v5737_v40, %v5736_v10  ;;  %v4415_v38 = vrot.slane %v4401_v27, %v8644_v57  ;;  %v4435_v45 = vcombine.low %v3360_v33, %v3362_v39  ;;  %v11146_v26 = vcombine.high %v11145_v41, %v11145_v41  ;;  %v11153_v39 = vld [vmem:[#allocation95_spill] sm:$0xff]  ;;  %v6364_v10 = vld [vmem:[%s10407_s0 + $0x1c0] sm:$0xff] }
 0x566   :  { %v5739_v42 = vsel %vm11144_vm10, %v5619_v12, 0.0  ;;  %v4382_v17 = vcombine.low %v4374_v4, %v4381_v34  ;;  %v3396_v24 = vcombine.high %v3394_v51, %v3394_v51  ;;  %v4408_v59 = vrot.slane %v4400_v58, %v8644_v57  ;;  %4978 = vperm.xlu1 %6051, %v4773_v44   ;;  %v5537_v1 = vpop.permute.xlu1 %5536  ;;  %vm11154_vm10 = vmmov %vm11041_vm9  ;;  %v11158_v4 = vld [vmem:[#allocation77_spill] sm:$0xff] }
 0x567   :  { %v3428_v35 = vrot.slane %v11146_v26, %v8644_v57  ;;  %v5740_v49 = vadd.f32 %v5739_v42, %v5738_v5  ;;  %v4434_v11 = vcombine.low %v11143_v15, %v3361_v2  ;;  %v3395_v32 = vcombine.high %v11147_v6, %v11147_v6  ;;  %v11155_v2 = vld [vmem:[#allocation78_spill] sm:$0xff]  ;;  %v6367_v26 = vld [vmem:[%s10407_s0 + $0x1d0] sm:$0xff] }
 0x568   :  { %v10051_v14 = vrot.slane %v11148_v56, %v8644_v57  ;;  %v5741_v33 = vsel %vm11149_vm14, %v5620_v25, 0.0  ;;  %v5622_v62 = vmul.f32 %v6361_v7, %v5533_v19  ;;  %v5621_v0 = vmul.f32 %v6362_v61, %v5529_v46  ;;  %4909 = vperm.xlu0 %6050, %v4382_v17   ;;  %vm11157_vm14 = vmmov %vm11041_vm9 }
 0x569   :  { %v3550_v28 = vcombine.high %v11150_v63, %v11150_v63  ;;  %v5742_v60 = vadd.f32 %v5741_v33, %v5740_v49  ;;  %v4416_v54 = vcombine.low %v4408_v59, %v4415_v38  ;;  %v4449_v48 = vrot.slane %v4435_v45, %v8644_v57  ;;  %v5549_v38 = vpop.permute.xlu0 %5548  ;;  %v11159_v49 = vld [vmem:[#allocation81_spill] sm:$0xff] }
 0x56a   :  { %v5743_v23 = vsel %vm11041_vm9, %v5621_v0, 0.0  ;;  %v4469_v55 = vcombine.low %v3394_v51, %v3396_v24  ;;  %v3430_v50 = vcombine.high %v3428_v35, %v3428_v35  ;;  %v11152_v37 = vcombine.high %v11151_v22, %v11151_v22  ;;  %5436 = vperm.xlu1 %6051, %v9812_v20   ;;  %v5545_v45 = vpop.permute.xlu1 %5544  ;;  %v6366_v24 = vld [vmem:[%s10407_s0 + $0x1d8] sm:$0xff] }
 0x56b   :  { %v5744_v36 = vadd.f32 %v5743_v23, %v5742_v60  ;;  %v4442_v3 = vrot.slane %v4434_v11, %v8644_v57  ;;  %v4468_v27 = vcombine.low %v11147_v6, %v3395_v32  ;;  %v3429_v53 = vcombine.high %v11153_v39, %v11153_v39 }
 0x56c   :  { %v3462_v29 = vrot.slane %v11152_v37, %v8644_v57  ;;  %v10074_v31 = vrot.slane %v11150_v63, %v8644_v57  ;;  %v5745_v34 = vsel %vm11154_vm10, %v5622_v62, 0.0  ;;  %v5624_v51 = vmul.f32 %v6363_v16, %v5541_v13  ;;  %4915 = vperm.xlu0 %6050, %v4416_v54   ;;  %vm11160_vm10 = vmmov %vm11041_vm9  ;;  %v6370_v63 = vld [vmem:[%s10407_s0 + $0x1e8] sm:$0xff] }
 0x56d   :  { %v5623_v52 = vmul.f32 %v6364_v10, %v5537_v1  ;;  %v5594_v43 = vmul.f32 %v6365_v9, %v9786_v47  ;;  %v5746_v58 = vadd.f32 %v5745_v34, %v5744_v36  ;;  %v4450_v15 = vcombine.low %v4442_v3, %v4449_v48  ;;  %v5553_v60 = vpop.permute.xlu0 %5552 }
 0x56e   :  { %v11156_v40 = vcombine.high %v11155_v2, %v11155_v2  ;;  %v4483_v30 = vrot.slane %v4469_v55, %v8644_v57  ;;  %v4503_v12 = vcombine.low %v3428_v35, %v3430_v50  ;;  %v3464_v20 = vcombine.high %v3462_v29, %v3462_v29  ;;  %v5425_v48 = vpop.permute.xlu1 %5424  ;;  %v11163_v55 = vld [vmem:[#allocation84_spill] sm:$0xff] }
 0x56f   :  { %v5747_v25 = vsel %vm11157_vm14, %v5623_v52, 0.0  ;;  %v3584_v5 = vcombine.high %v11158_v4, %v11158_v4  ;;  %v4476_v47 = vrot.slane %v4468_v27, %v8644_v57  ;;  %v4502_v42 = vcombine.low %v11153_v39, %v3429_v53  ;;  %vm11162_vm14 = vmmov %vm11041_vm9 }
 0x570   :  { %v3496_v8 = vrot.slane %v11156_v40, %v8644_v57  ;;  %v5748_v44 = vadd.f32 %v5747_v25, %v5746_v58  ;;  %v5749_v17 = vsel %vm11041_vm9, %v5624_v51, 0.0  ;;  %v5626_v41 = vmul.f32 %v6366_v24, %v5549_v38  ;;  %4921 = vperm.xlu0 %6050, %v4450_v15   ;;  %v6371_v15 = vld [vmem:[%s10407_s0 + $0xe8] sm:$0xff] }
 0x571   :  { %v5625_v35 = vmul.f32 %v6367_v26, %v5545_v45  ;;  %v3463_v19 = vcombine.high %v11159_v49, %v11159_v49  ;;  %v5684_v46 = vsel %vm11160_vm10, %v5594_v43, 0.0  ;;  %v11161_v6 = vcombine.high %v11148_v56, %v11148_v56  ;;  %v6368_v56 = vld [vmem:[%s10407_s0 + $0x1e0] sm:$0xff]  ;;  %vm11164_vm10 = vmmov %vm11041_vm9  ;;  %v5557_v9 = vpop.permute.xlu0 %5556 }
 0x572   :  { %v5750_v59 = vadd.f32 %v5749_v17, %v5748_v44  ;;  %v3498_v11 = vcombine.high %v3496_v8, %v3496_v8  ;;  %v4484_v7 = vcombine.low %v4476_v47, %v4483_v30  ;;  %v4517_v62 = vrot.slane %v4503_v12, %v8644_v57  ;;  %v5429_v43 = vpop.permute.xlu1 %5428 }
 0x573   :  { %v3530_v32 = vrot.slane %v11161_v6, %v8644_v57  ;;  %v5751_v33 = vsel %vm11162_vm14, %v5625_v35, 0.0  ;;  %v4537_v61 = vcombine.low %v3462_v29, %v3464_v20  ;;  %v5685_v54 = vadd.f32 %v5684_v46, %v9814_v18  ;;  %v6369_v29 = vld [vmem:[%s10407_s0 + $0xe0] sm:$0xff]  ;;  %vm11165_vm14 = vmmov %vm11041_vm9  ;;  %v6373_v46 = vld [vmem:[%s10407_s0 + $0xf0] sm:$0xff] }
 0x574   :  { %v5752_v0 = vadd.f32 %v5751_v33, %v5750_v59  ;;  %v4510_v23 = vrot.slane %v4502_v42, %v8644_v57  ;;  %v3497_v50 = vcombine.high %v11163_v55, %v11163_v55  ;;  %v5753_v22 = vsel %vm11041_vm9, %v5626_v41, 0.0  ;;  %4927 = vperm.xlu0 %6050, %v4484_v7  }
 0x575   :  { %v5627_v37 = vmul.f32 %v6368_v56, %v5553_v60  ;;  %v5595_v36 = vmul.f32 %v6369_v29, %v5425_v48  ;;  %v4536_v18 = vcombine.low %v11159_v49, %v3463_v19  ;;  %v4571_v1 = vcombine.low %v3496_v8, %v3498_v11  ;;  %v5561_v24 = vpop.permute.xlu0 %5560  ;;  %v6372_v49 = vld [vmem:[%s10407_s0 + $0x1f0] sm:$0xff]  ;;  %v11169_v60 = vld [vmem:[#allocation82_spill] sm:$0xff] }
 0x576   :  { %v5754_v13 = vadd.f32 %v5753_v22, %v5752_v0  ;;  %v3532_v3 = vcombine.high %v3530_v32, %v3530_v32  ;;  %v3564_v27 = vrot.slane %v3550_v28, %v8644_v57  ;;  %v4518_v34 = vcombine.low %v4510_v23, %v4517_v62  ;;  %v5433_v41 = vpop.permute.xlu1 %5432 }
 0x577   :  { %v5755_v39 = vsel %vm11164_vm10, %v5627_v37, 0.0  ;;  %v5686_v53 = vsel %vm11165_vm14, %v5595_v36, 0.0  ;;  %v4551_v16 = vrot.slane %v4537_v61, %v8644_v57  ;;  %v3591_v51 = vrot.slane %v11158_v4, %v8644_v57  ;;  %v11166_v4 = vld [vmem:[#allocation79_spill] sm:$0xff]  ;;  %vm11167_vm10 = vmmov %vm11041_vm9 }
 0x578   :  { %v5756_v10 = vadd.f32 %v5755_v39, %v5754_v13  ;;  %v5687_v52 = vadd.f32 %v5686_v53, %v5685_v54  ;;  %v4570_v58 = vcombine.low %v11163_v55, %v3497_v50  ;;  %v5628_v28 = vmul.f32 %v6370_v63, %v5557_v9  ;;  %4933 = vperm.xlu0 %6050, %v4518_v34   ;;  %vm11168_vm14 = vmmov %vm11041_vm9  ;;  %v11170_v54 = vld [vmem:[#allocation50_spill] sm:$0xff] }
 0x579   :  { %v5596_v2 = vmul.f32 %v6371_v15, %v5429_v43  ;;  %v4544_v40 = vrot.slane %v4536_v18, %v8644_v57  ;;  %v3531_v8 = vcombine.high %v10051_v14, %v10051_v14  ;;  %v4585_v25 = vrot.slane %v4571_v1, %v8644_v57  ;;  %v4793_v50 = vpop.permute.xlu0 %4792  ;;  %v11172_v9 = vld [vmem:[#allocation6_spill] sm:$0xff] }
 0x57a   :  { %v4605_v30 = vcombine.low %v3530_v32, %v3532_v3  ;;  %v3566_v12 = vcombine.high %v3564_v27, %v3564_v27  ;;  %v3598_v20 = vrot.slane %v3584_v5, %v8644_v57  ;;  %v3618_v44 = vcombine.high %v11166_v4, %v11166_v4 }
 0x57b   :  { %v5757_v38 = vsel %vm11041_vm9, %v5628_v28, 0.0  ;;  %v5688_v45 = vsel %vm11167_vm10, %v5596_v2, 0.0  ;;  %v4552_v47 = vcombine.low %v4544_v40, %v4551_v16  ;;  %v4578_v26 = vrot.slane %v4570_v58, %v8644_v57 }
 0x57c   :  { %v5758_v42 = vadd.f32 %v5757_v38, %v5756_v10  ;;  %v5689_v17 = vadd.f32 %v5688_v45, %v5687_v52  ;;  %v3565_v35 = vcombine.high %v10074_v31, %v10074_v31  ;;  %v3652_v5 = vcombine.high %v11028_v21, %v11028_v21  ;;  %v11171_v10 = vld [vmem:[#allocation8_spill] sm:$0xff] }
 0x57d   :  { %v5629_v19 = vmul.f32 %v6372_v49, %v5561_v24  ;;  %v5597_v59 = vmul.f32 %v6373_v46, %v5433_v41  ;;  %4939 = vperm.xlu0 %6050, %v4552_v47   ;;  %v4604_v11 = vcombine.low %v10051_v14, %v3531_v8  ;;  %v4586_v6 = vcombine.low %v4578_v26, %v4585_v25  ;;  %v10175_v14 = vpop.permute.xlu1 %4819  ;;  %v11174_v26 = vld [vmem:[#allocation13_spill] sm:$0xff] }
 0x57e   :  { %v4619_v32 = vrot.slane %v4605_v30, %v8644_v57  ;;  %v4639_v33 = vcombine.low %v3564_v27, %v3566_v12  ;;  %v3600_v7 = vcombine.high %v3598_v20, %v3598_v20  ;;  %v3632_v0 = vrot.slane %v3618_v44, %v8644_v57  ;;  %v11173_v30 = vld [vmem:[#allocation10_spill] sm:$0xff] }
 0x57f   :  { %v5759_v62 = vsel %vm11168_vm14, %v5629_v19, 0.0  ;;  %v5690_v61 = vsel %vm11041_vm9, %v5597_v59, 0.0  ;;  %v10169_v48 = vmul.f32 %v11170_v54, %v11169_v60  ;;  %v4638_v22 = vcombine.low %v10074_v31, %v3565_v35  ;;  %v4796_v31 = vpop.permute.xlu0 %4795 }
 0x580   :  { %v10171_v23 = vadd.f32 %v5759_v62, %v5758_v42  ;;  %v10173_v55 = vadd.f32 %v5690_v61, %v5689_v17  ;;  %v3599_v56 = vcombine.high %v3591_v51, %v3591_v51  ;;  %v3625_v37 = vrot.slane %v11166_v4, %v8644_v57 }
 0x581   :  { %4945 = vperm.xlu0 %6050, %v4586_v6   ;;  %v4612_v29 = vrot.slane %v4604_v11, %v8644_v57  ;;  %v4653_v36 = vrot.slane %v4639_v33, %v8644_v57  ;;  %v4673_v18 = vcombine.low %v3598_v20, %v3600_v7  ;;  %v3634_v1 = vcombine.high %v3632_v0, %v3632_v0  ;;  %v10185_v39 = vpop.permute.xlu1 %4834  ;;  %v11175_v7 = vld [vmem:[#allocation16_spill] sm:$0xff] }
 0x582   :  { %v3666_v3 = vrot.slane %v3652_v5, %v8644_v57  ;;  %v3686_v27 = vcombine.high %v10169_v48, %v10169_v48  ;;  %v4646_v53 = vrot.slane %v4638_v22, %v8644_v57  ;;  %v4672_v34 = vcombine.low %v3591_v51, %v3599_v56 }
 0x583   :  { %v4620_v13 = vcombine.low %v4612_v29, %v4619_v32  ;;  %v3659_v16 = vrot.slane %v11028_v21, %v8644_v57  ;;  %v4986_v52 = vrot.slane %v4793_v50, %v11171_v10  ;;  %v4990_v43 = vrot.slane %v4796_v31, %v11172_v9  ;;  %v4799_v51 = vpop.permute.xlu0 %4798 }
 0x584   :  { %v3633_v58 = vcombine.high %v3625_v37, %v3625_v37  ;;  %v4654_v63 = vcombine.low %v4646_v53, %v4653_v36  ;;  %v4687_v28 = vrot.slane %v4673_v18, %v8644_v57  ;;  %v4707_v2 = vcombine.low %v3632_v0, %v3634_v1 }
 0x585   :  { %4951 = vperm.xlu0 %6050, %v4620_v13   ;;  %v4991_v15 = vsel %vm1342_vm3, %v4990_v43, %v4986_v52  ;;  %v3668_v40 = vcombine.high %v3666_v3, %v3666_v3  ;;  %v3700_v8 = vrot.slane %v3686_v27, %v8644_v57  ;;  %v10195_v25 = vpop.permute.xlu1 %4840  ;;  %v4680_v21 = vrot.slane %v4672_v34, %v8644_v57  ;;  %v11177_v27 = vld [vmem:[#allocation20_spill] sm:$0xff]  ;;  %v11178_v52 = vld [vmem:[#allocation22_spill] sm:$0xff] }
 0x586   :  { %v4995_v12 = vrot.slane %v4799_v51, %v11173_v30  ;;  %v4706_v20 = vcombine.low %v3625_v37, %v3633_v58  ;;  %v3667_v4 = vcombine.high %v3659_v16, %v3659_v16  ;;  %v3693_v44 = vrot.slane %v10169_v48, %v8644_v57  ;;  %v11176_v37 = vld [vmem:[#allocation18_spill] sm:$0xff] }
 0x587   :  { %v4688_v38 = vcombine.low %v4680_v21, %v4687_v28  ;;  %v4721_v47 = vrot.slane %v4707_v2, %v8644_v57  ;;  %v4741_v42 = vcombine.low %v3666_v3, %v3668_v40  ;;  %v3702_v17 = vcombine.high %v3700_v8, %v3700_v8  ;;  %v4802_v41 = vpop.permute.xlu0 %4801  ;;  %v11180_v28 = vld [vmem:[#allocation24_spill] sm:$0xff]  ;;  %v11181_v2 = vld [vmem:[#allocation26_spill] sm:$0xff] }
 0x588   :  { %v4996_v45 = vsel %vm1349_vm4, %v4995_v12, %v4991_v15  ;;  %v5000_v35 = vrot.slane %v4802_v41, %v11174_v26  ;;  %v4714_v5 = vrot.slane %v4706_v20, %v8644_v57  ;;  %v4740_v49 = vcombine.low %v3659_v16, %v3667_v4  ;;  %v11183_v20 = vld [vmem:[#allocation28_spill] sm:$0xff]  ;;  %v11185_v41 = vld [vmem:[#allocation38_spill] sm:$0xff] }
 0x589   :  { %4957 = vperm.xlu0 %6050, %v4654_v63   ;;  %v10203_v24 = vpop.permute.xlu1 %4846  ;;  %v3701_v19 = vcombine.high %v3693_v44, %v3693_v44  ;;  %v4755_v11 = vrot.slane %v4741_v42, %v8644_v57  ;;  %v4775_v6 = vcombine.low %v3700_v8, %v3702_v17  ;;  %vm11179_vm10 = vcmask 523712  }
 0x58a   :  { %v5001_v46 = vsel %vm1356_vm5, %v5000_v35, %v4996_v45  ;;  %v4722_v59 = vcombine.low %v4714_v5, %v4721_v47  ;;  %v4748_v61 = vrot.slane %v4740_v49, %v8644_v57  ;;  %v5030_v40 = vrot.slane %v10175_v14, %v11181_v2  ;;  %v11184_v45 = vld [vmem:[#allocation30_spill] sm:$0xff] }
 0x58b   :  { %v4805_v33 = vpop.permute.xlu0 %4804  ;;  %v4774_v0 = vcombine.low %v3693_v44, %v3701_v19  ;;  %v4789_v50 = vrot.slane %v4775_v6, %v8644_v57  ;;  %vm11182_vm14 = vcmask 589312   ;;  %vm11186_vm9 = vcmask 851712   ;;  %v11187_v19 = vld [vmem:[#allocation31_spill] sm:$0xff] }
 0x58c   :  { %v5005_v62 = vrot.slane %v4805_v33, %v11175_v7  ;;  %v4756_v54 = vcombine.low %v4748_v61, %v4755_v11 }
 0x58d   :  { %4963 = vperm.xlu0 %6050, %v4688_v38   ;;  %v10209_v32 = vpop.permute.xlu1 %4852  ;;  %v4782_v36 = vrot.slane %v4774_v0, %v8644_v57  ;;  %v11189_v0 = vld [vmem:[#allocation40_spill] sm:$0xff] }
 0x58e   :  { %v5006_v60 = vsel %vm1363_vm6, %v5005_v62, %v5001_v46 }
 0x58f   :  { %v4808_v56 = vpop.permute.xlu0 %4807  ;;  %v4790_v13 = vcombine.low %v4782_v36, %v4789_v50  ;;  %v5074_v36 = vrot.slane %v10203_v24, %v11173_v30 }
 0x590   :  { %v5010_v29 = vrot.slane %v4808_v56, %v11176_v37 }
 0x591   :  { %4969 = vperm.xlu0 %6050, %v4722_v59   ;;  %v10215_v22 = vpop.permute.xlu1 %4858  ;;  %v11188_v59 = vld [vmem:[#allocation41_spill] sm:$0xff] }
 0x592   :  { %v5011_v18 = vsel %vm1370_vm7, %v5010_v29, %v5006_v60  ;;  %v5055_v11 = vrot.slane %v10185_v39, %v11188_v59  ;;  %v5065_v29 = vrot.slane %v10195_v25, %v11171_v10  ;;  %v5094_v24 = vrot.slane %v10215_v22, %v11177_v27 }
 0x593   :  { %v4811_v3 = vpop.permute.xlu0 %4810 }
 0x594   :  { %v5015_v31 = vrot.slane %v4811_v3, %v11177_v27 }
 0x595   :  { %4975 = vperm.xlu0 %6050, %v4756_v54   ;;  %v4865_v1 = vpop.permute.xlu1 %4864 }
 0x596   :  { %v5016_v53 = vsel %vm1377_vm8, %v5015_v31, %v5011_v18 }
 0x597   :  { %v4814_v16 = vpop.permute.xlu0 %4813 }
 0x598   :  { %v5020_v43 = vrot.slane %v4814_v16, %v11178_v52 }
 0x599   :  { %4981 = vperm.xlu0 %6050, %v4790_v13   ;;  %v10222_v34 = vpop.permute.xlu1 %4870 }
 0x59a   :  { %v5021_v58 = vsel %vm11179_vm10, %v5020_v43, %v5016_v53  ;;  %v5084_v53 = vrot.slane %v10209_v32, %v11175_v7  ;;  %v5114_v22 = vrot.slane %v10222_v34, %v11183_v20 }
 0x59b   :  { %v4817_v63 = vpop.permute.xlu0 %4816 }
 0x59c   :  { %v5025_v15 = vrot.slane %v4817_v63, %v11180_v28 }
 0x59d   :  { %5564 = vperm.xlu0 %6050, %v10169_v48   ;;  %v10227_v57 = vpop.permute.xlu1 %4876 }
 0x59e   :  { %v5026_v8 = vsel %vm11182_vm14, %v5025_v15, %v5021_v58 }
 0x59f   :  { %v5031_v21 = vsel %vm1398_vm11, %v5030_v40, %v5026_v8  ;;  %v4823_v12 = vpop.permute.xlu0 %4822 }
 0x5a0   :  { %v5035_v4 = vrot.slane %v4823_v12, %v11183_v20  ;;  %v5104_v12 = vrot.slane %v4865_v1, %v11180_v28  ;;  %v5124_v1 = vrot.slane %v10227_v57, %v11185_v41 }
 0x5a1   :  { %v10233_v51 = vpop.permute.xlu1 %4882 }
 0x5a2   :  { %v5036_v48 = vsel %vm1405_vm12, %v5035_v4, %v5031_v21 }
 0x5a3   :  { %v4826_v38 = vpop.permute.xlu0 %4825 }
 0x5a4   :  { %v5040_v47 = vrot.slane %v4826_v38, %v11184_v45 }
 0x5a5   :  { %v10238_v44 = vpop.permute.xlu1 %4888 }
 0x5a6   :  { %v5041_v42 = vsel %vm1412_vm13, %v5040_v47, %v5036_v48 }
 0x5a7   :  { %v4829_v14 = vpop.permute.xlu0 %4828 }
 0x5a8   :  { %v5045_v35 = vrot.slane %v4829_v14, %v11185_v41 }
 0x5a9   :  { %v10242_v17 = vpop.permute.xlu1 %4894 }
 0x5aa   :  { %v5046_v5 = vsel %vm11186_vm9, %v5045_v35, %v5041_v42 }
 0x5ab   :  { %v4832_v49 = vpop.permute.xlu0 %4831 }
 0x5ac   :  { %v5050_v46 = vrot.slane %v4832_v49, %v11187_v19 }
 0x5ad   :  { %v10249_v6 = vpop.permute.xlu1 %4900 }
 0x5ae   :  { %v5051_v33 = vsel %vm1426_vm15, %v5050_v46, %v5046_v5 }
 0x5af   :  { %v5056_v62 = vsel %vm1433_vm1, %v5055_v11, %v5051_v33  ;;  %v4838_v61 = vpop.permute.xlu0 %4837 }
 0x5b0   :  { %v5060_v60 = vrot.slane %v4838_v61, %v11189_v0  ;;  %v5134_v61 = vrot.slane %v10233_v51, %v11188_v59 }
 0x5b1   :  { %v10257_v50 = vpop.permute.xlu1 %4906 }
 0x5b2   :  { %v10255_v54 = vsel %vm1440_vm2, %v5060_v60, %v5056_v62 }
 0x5b3   :  { %v4844_v56 = vpop.permute.xlu0 %4843 }
 0x5b4   :  { %v5069_v39 = vrot.slane %v4844_v56, %v11172_v9 }
 0x5b5   :  { %v10269_v16 = vpop.permute.xlu1 %4912 }
 0x5b6   :  { %v5070_v18 = vsel %vm1342_vm3, %v5069_v39, %v5065_v29 }
 0x5b7   :  { %v5075_v13 = vsel %vm1349_vm4, %v5074_v36, %v5070_v18  ;;  %v4850_v3 = vpop.permute.xlu0 %4849 }
 0x5b8   :  { %v5079_v31 = vrot.slane %v4850_v3, %v11174_v26 }
 0x5b9   :  { %v10277_v40 = vpop.permute.xlu1 %4918 }
 0x5ba   :  { %v5080_v43 = vsel %vm1356_vm5, %v5079_v31, %v5075_v13 }
 0x5bb   :  { %v5085_v25 = vsel %vm1363_vm6, %v5084_v53, %v5080_v43  ;;  %v4856_v58 = vpop.permute.xlu0 %4855 }
 0x5bc   :  { %v5089_v63 = vrot.slane %v4856_v58, %v11176_v37 }
 0x5bd   :  { %v10287_v42 = vpop.permute.xlu1 %4924 }
 0x5be   :  { %v5090_v15 = vsel %vm1370_vm7, %v5089_v63, %v5085_v25 }
 0x5bf   :  { %v5095_v8 = vsel %vm1377_vm8, %v5094_v24, %v5090_v15  ;;  %v4862_v21 = vpop.permute.xlu0 %4861 }
 0x5c0   :  { %v5099_v32 = vrot.slane %v4862_v21, %v11178_v52 }
 0x5c1   :  { %v10295_v11 = vpop.permute.xlu1 %4930 }
 0x5c2   :  { %v5100_v4 = vsel %vm11179_vm10, %v5099_v32, %v5095_v8  ;;  %v5144_v32 = vrot.slane %v10238_v44, %v11171_v10 }
 0x5c3   :  { %v5105_v48 = vsel %vm11182_vm14, %v5104_v12, %v5100_v4  ;;  %v4868_v38 = vpop.permute.xlu0 %4867 }
 0x5c4   :  { %v5109_v47 = vrot.slane %v4868_v38, %v11181_v2 }
 0x5c5   :  { %v4937_v57 = vpop.permute.xlu1 %4936 }
 0x5c6   :  { %v5110_v14 = vsel %vm1398_vm11, %v5109_v47, %v5105_v48  ;;  %v5223_v4 = vrot.slane %v4937_v57, %v11171_v10 }
 0x5c7   :  { %v5115_v35 = vsel %vm1405_vm12, %v5114_v22, %v5110_v14  ;;  %v4874_v5 = vpop.permute.xlu0 %4873  ;;  %v5153_v22 = vrot.slane %v10242_v17, %v11173_v30 }
 0x5c8   :  { %v5119_v49 = vrot.slane %v4874_v5, %v11184_v45 }
 0x5c9   :  { %v4943_v13 = vpop.permute.xlu1 %4942 }
 0x5ca   :  { %v5120_v46 = vsel %vm1412_vm13, %v5119_v49, %v5115_v35  ;;  %v5232_v5 = vrot.slane %v4943_v13, %v11173_v30 }
 0x5cb   :  { %v5125_v33 = vsel %vm11186_vm9, %v5124_v1, %v5120_v46  ;;  %v4880_v62 = vpop.permute.xlu0 %4879 }
 0x5cc   :  { %v5129_v34 = vrot.slane %v4880_v62, %v11187_v19 }
 0x5cd   :  { %v4949_v53 = vpop.permute.xlu1 %4948 }
 0x5ce   :  { %v5130_v60 = vsel %vm1426_vm15, %v5129_v34, %v5125_v33  ;;  %v5242_v62 = vrot.slane %v4949_v53, %v11175_v7 }
 0x5cf   :  { %v5135_v56 = vsel %vm1433_vm1, %v5134_v61, %v5130_v60  ;;  %v4886_v29 = vpop.permute.xlu0 %4885 }
 0x5d0   :  { %v5139_v39 = vrot.slane %v4886_v29, %v11189_v0 }
 0x5d1   :  { %v4955_v25 = vpop.permute.xlu1 %4954 }
 0x5d2   :  { %v10305_v36 = vsel %vm1440_vm2, %v5139_v39, %v5135_v56  ;;  %v5252_v57 = vrot.slane %v4955_v25, %v11177_v27 }
 0x5d3   :  { %v4892_v18 = vpop.permute.xlu0 %4891 }
 0x5d4   :  { %v5148_v21 = vrot.slane %v4892_v18, %v11172_v9 }
 0x5d5   :  { %v4961_v63 = vpop.permute.xlu1 %4960 }
 0x5d6   :  { %v5149_v48 = vsel %vm1342_vm3, %v5148_v21, %v5144_v32  ;;  %v5262_v21 = vrot.slane %v4961_v63, %v11180_v28  ;;  %v6374_v32 = vld [vmem:[%s10407_s0 + $0xf8] sm:$0xff] }
 0x5d7   :  { %v4898_v3 = vpop.permute.xlu0 %4897  ;;  %v5154_v49 = vsel %vm1349_vm4, %v5153_v22, %v5149_v48 }
 0x5d8   :  { %v5158_v38 = vrot.slane %v4898_v3, %v11174_v26 }
 0x5d9   :  { %v4967_v15 = vpop.permute.xlu1 %4966 }
 0x5da   :  { %v5159_v1 = vsel %vm1356_vm5, %v5158_v38, %v5154_v49  ;;  %v5272_v63 = vrot.slane %v4967_v15, %v11183_v20 }
 0x5dd   :  { %v4973_v14 = vpop.permute.xlu1 %4972 }
 0x5de   :  { %v4904_v31 = vpop.permute.xlu0 %4903 }
 0x5df   :  { %v5168_v10 = vrot.slane %v4904_v31, %v11176_v37 }
 0x5e1   :  { %v4979_v34 = vpop.permute.xlu1 %4978 }
 0x5e3   :  { %v4910_v43 = vpop.permute.xlu0 %4909 }
 0x5e4   :  { %v5178_v56 = vrot.slane %v4910_v43, %v11178_v52 }
 0x5e5   :  { %v5437_v53 = vpop.permute.xlu1 %5436 }
 0x5e7   :  { %v4916_v58 = vpop.permute.xlu0 %4915 }
 0x5e8   :  { %v5188_v3 = vrot.slane %v4916_v58, %v11181_v2  ;;  %v5598_v58 = vmul.f32 %v6374_v32, %v5437_v53 }
 0x5eb   :  { %v4922_v51 = vpop.permute.xlu0 %4921 }
 0x5ef   :  { %v10307_v24 = vpop.permute.xlu0 %4927 }
 0x5f3   :  { %v10309_v8 = vpop.permute.xlu0 %4933 }
 0x5f8   :  { %v4940_v12 = vpop.permute.xlu0 %4939 }
 0x5f9   :  { %v5227_v47 = vrot.slane %v4940_v12, %v11172_v9  ;;  %v5163_v9 = vrot.slane %v10249_v6, %v11175_v7  ;;  %v5198_v12 = vrot.slane %v4922_v51, %v11184_v45  ;;  %v5208_v51 = vrot.slane %v10307_v24, %v11187_v19 }
 0x5fa   :  { %v5218_v24 = vrot.slane %v10309_v8, %v11189_v0 }
 0x5fb   :  { %v5228_v35 = vsel %vm1342_vm3, %v5227_v47, %v5223_v4  ;;  %v5164_v30 = vsel %vm1363_vm6, %v5163_v9, %v5159_v1  ;;  %vm11190_vm3 = vmmov %vm11179_vm10  ;;  %v5193_v4 = vrot.slane %v10277_v40, %v11183_v20  ;;  %v5203_v40 = vrot.slane %v10287_v42, %v11185_v41 }
 0x5fc   :  { %v4946_v44 = vpop.permute.xlu0 %4945  ;;  %v5233_v33 = vsel %vm1349_vm4, %v5232_v5, %v5228_v35  ;;  %v5169_v60 = vsel %vm1370_vm7, %v5168_v10, %v5164_v30  ;;  %vm11191_vm4 = vmmov %vm11190_vm3  ;;  %v5282_v20 = vrot.slane %v4973_v14, %v11185_v41  ;;  %v5213_v42 = vrot.slane %v10295_v11, %v11188_v59 }
 0x5fd   :  { %v5237_v46 = vrot.slane %v4946_v44, %v11174_v26  ;;  %v5173_v26 = vrot.slane %v10257_v50, %v11177_v27  ;;  %v5292_v41 = vrot.slane %v4979_v34, %v11188_v59 }
 0x5ff   :  { %v5238_v17 = vsel %vm1356_vm5, %v5237_v46, %v5233_v33  ;;  %v5174_v7 = vsel %vm1377_vm8, %v5173_v26, %v5169_v60  ;;  %vm11192_vm5 = vmmov %vm11182_vm14  ;;  %v6375_v60 = vld [vmem:[%s10407_s0 + $0x1f8] sm:$0xff]  ;;  %s6404_s0 = smov [#allocation3]  }
 0x600   :  { %v4952_v61 = vpop.permute.xlu0 %4951  ;;  %v5243_v6 = vsel %vm1363_vm6, %v5242_v62, %v5238_v17  ;;  %v5179_v13 = vsel %vm11190_vm3, %v5178_v56, %v5174_v7  ;;  %vm11193_vm6 = vmmov %vm11192_vm5  ;;  %s5782_s28 = sshll.u32 %s6404_s0, 4  ;;  %s5783_s28 = int_to_ptr.vmem [resolvable:$true] %s5782_s28 }
 0x601   :  { %v5247_v29 = vrot.slane %v4952_v61, %v11176_v37  ;;  %v5183_v37 = vrot.slane %v10269_v16, %v11180_v28  ;;  %s6377_s30 = scalar_lea.vmem %s5783_s28, 32  ;;  %p6382_p1 = scmp.lt.s32.totalorder %s5783_s28, %s5783_s28 }
 0x602   :  { %p6378_p0 = scmp.ne.s32.totalorder %s5783_s28, %s6377_s30  ;;  %p6383_p2 = scmp.lt.s32.totalorder %s6377_s30, %s6377_s30 }
 0x603   :  { %v5248_v39 = vsel %vm1370_vm7, %v5247_v29, %v5243_v6  ;;  %v5184_v27 = vsel %vm11192_vm5, %v5183_v37, %v5179_v13  ;;  %vm11194_vm7 = vcmask 130048   ;;  %v6376_v37 = vld [vmem:[%s10408_s1] sm:$0x3] }
 0x604   :  { %v4958_v18 = vpop.permute.xlu0 %4957  ;;  %v5253_v50 = vsel %vm1377_vm8, %v5252_v57, %v5248_v39  ;;  %v5692_v22 = vsel %vm11194_vm7, %v5598_v58, 0.0  ;;  %vm11195_vm8 = vmmov %vm11186_vm9  ;;  %p6384_p3 = por %p6383_p2, %p6382_p1 }
 0x605   :  { %v5257_v31 = vrot.slane %v4958_v18, %v11178_v52  ;;  %v5189_v52 = vsel %vm1398_vm11, %v5188_v3, %v5184_v27  ;;  %v5693_v15 = vadd.f32 %v5692_v22, %v10173_v55 }
 0x606   :  { %v5194_v38 = vsel %vm1405_vm12, %v5193_v4, %v5189_v52  ;;  %p6385_p4 = pnand %p6384_p3, %p6378_p0 }
 0x607   :  { %v5258_v43 = vsel %vm11191_vm4, %v5257_v31, %v5253_v50  ;;  %v5199_v35 = vsel %vm1412_vm13, %v5198_v12, %v5194_v38  ;;  %v5694_v55 = vrot.slane %v5693_v15, 4 }
 0x608   :  { %v4964_v25 = vpop.permute.xlu0 %4963  ;;  %v5263_v48 = vsel %vm11193_vm6, %v5262_v21, %v5258_v43  ;;  %v5204_v44 = vsel %vm11195_vm8, %v5203_v40, %v5199_v35 }
 0x609   :  { %v5267_v16 = vrot.slane %v4964_v25, %v11181_v2  ;;  %v5209_v10 = vsel %vm1426_vm15, %v5208_v51, %v5204_v44  ;;  %v5695_v30 = vadd.f32 %v5694_v55, %v5693_v15 }
 0x60a   :  { %v5214_v14 = vsel %vm1433_vm1, %v5213_v42, %v5209_v10 }
 0x60b   :  { %v5268_v28 = vsel %vm1398_vm11, %v5267_v16, %v5263_v48  ;;  %vm11196_vm11 = vmmov %vm11195_vm8  ;;  %v5219_v17 = vsel %vm1440_vm2, %v5218_v24, %v5214_v14  ;;  %v5696_v29 = vrot.slane %v5695_v30, 2 }
 0x60c   :  { %v4970_v47 = vpop.permute.xlu0 %4969  ;;  %v5273_v5 = vsel %vm1405_vm12, %v5272_v63, %v5268_v28  ;;  %v5299_v11 = vsel %vm1679_vm0, %v5219_v17, %v10255_v54  ;;  %vm11197_vm12 = vmmov %vm11194_vm7 }
 0x60d   :  { %v5277_v2 = vrot.slane %v4970_v47, %v11184_v45  ;;  %v5697_v6 = vadd.f32 %v5696_v29, %v5695_v30 }
 0x60f   :  { %v5278_v49 = vsel %vm1412_vm13, %v5277_v2, %v5273_v5  ;;  %v5698_v57 = vrot.slane %v5697_v6, 1  ;;  %vm5774_vm13 = vcmask 123904  }
 0x610   :  { %v4976_v1 = vpop.permute.xlu0 %4975  ;;  %v5283_v46 = vsel %vm11196_vm11, %v5282_v20, %v5278_v49 }
 0x611   :  { %v5287_v45 = vrot.slane %v4976_v1, %v11187_v19  ;;  %v5699_v13 = vadd.f32 %v5698_v57, %v5697_v6 }
 0x613   :  { %v5288_v9 = vsel %vm1426_vm15, %v5287_v45, %v5283_v46 }
 0x614   :  { %v4982_v33 = vpop.permute.xlu0 %4981  ;;  %v5293_v8 = vsel %vm1433_vm1, %v5292_v41, %v5288_v9 }
 0x615   :  { %v5297_v62 = vrot.slane %v4982_v33, %v11189_v0 }
 0x617   :  { %v5298_v19 = vsel %vm1440_vm2, %v5297_v62, %v5293_v8 }
 0x618   :  { %v5300_v61 = vsel %vm1679_vm0, %v5298_v19, %v10305_v36  ;;  %v5565_v59 = vpop.permute.xlu0 %5564 }
 0x619   :  { %v5301_v34 = vcombine.low %v5299_v11, %v5300_v61  ;;  %v5630_v56 = vmul.f32 %v6375_v60, %v5565_v59 }
 0x61b   :  { %5863 = vst.sshfl [vmem:[%s10416_s9] sm:$0x33 pattern:$0x76325410] %v5301_v34  ;;  %v5761_v0 = vsel %vm11197_vm12, %v5630_v56, 0.0 }
 0x61c   :  { %v5762_v26 = vadd.f32 %v5761_v0, %v10171_v23 }
 0x61e   :  { %v5763_v54 = vrot.slane %v5762_v26, 4 }
 0x620   :  { %v5764_v39 = vadd.f32 %v5763_v54, %v5762_v26 }
 0x622   :  { %v5765_v36 = vrot.slane %v5764_v39, 2 }
 0x624   :  { %v5766_v7 = vadd.f32 %v5765_v36, %v5764_v39 }
 0x626   :  { %v5767_v18 = vrot.slane %v5766_v7, 1 }
 0x628   :  { %v5768_v3 = vadd.f32 %v5767_v18, %v5766_v7 }
 0x62a   :  { %v5771_v31 = vsel %vm1679_vm0, %v5768_v3, %v5699_v13 }
 0x62b   :  { %v5773_v53 = vadd.f32 %v6376_v37, %v5771_v31 }
 0x62d   :  { %5775 = vst.msk [vmem:[#allocation3] sm:$0x3] %vm5774_vm13, %v5773_v53 }
 0x62e   :  { %6388 = shalt.err (!%p6385_p4)
}
 0x62f   :  { %5785 = dma.vmem_to_hbm [thread:$0]  %s5783_s28, 32, %s10415_s8, [#allocation4]  }
 0x630   :  { %6397 = dma.done.wait [#allocation4], 32  }
 0x631   :  { %6398 = vsyncadd [#allocation4], 4294967264 }
 0x632   :  { %5793 = vsyncpa [#allocation4], 1 }

</bundles_post_ra>
